<compile_context>
chip_gen: v7x
topology: tpu7x:2x2x1
jax: 0.10.0
libtpu: 0.0.40
codegen_flags: <defaults>
</compile_context>

<pallas_src>
import numpy as np
import jax
import jax.numpy as jnp
from jax.experimental import pallas as pl
from jax.experimental.pallas import tpu as pltpu

_K, _STRIDE, _PAD = 3, 2, 2
_NEG_SLOPE = 0.2
_BN_EPS = 1e-5
_OUT_LANES = 128  # lane-dense output width


def _conv_out(s):
    return (s + 2 * _PAD - _K) // _STRIDE + 1


# ------------------------------ fused kernel --------------------------------

def _dcgan_fused_kernel(
        p1_ref, w1_ref, b1_ref,
        s2_ref, w2_ref, b2_ref, g2_ref, be2_ref,
        s3_ref, w3_ref, b3_ref, g3_ref, be3_ref,
        wfc_ref, spool_ref, bfc_ref,
        o_ref):
    f32 = jnp.float32

    def lrelu(z):
        return jnp.where(z >= 0.0, z, _NEG_SLOPE * z)

    # conv1 (+bias) + LeakyReLU.  Patches were built outside (input is tiny
    # and read exactly once); weight is (tap, cin)-flattened -> one bf16 GEMM.
    y1 = jnp.dot(p1_ref[...], w1_ref[...], preferred_element_type=f32)
    y1 = lrelu(y1 + b1_ref[...])                                   # (M1, C1)

    def conv_bn_lrelu(y_prev, s_ref, w_ref, b_ref, g_ref, be_ref):
        # In-kernel im2col: for each of the 9 taps a static 0/1 selection
        # matmul picks the right rows of the previous activation (zero rows
        # encode conv padding); concat -> (M_out, 9*Cin) patches; one bf16
        # GEMM against the flattened weight.  Nothing leaves VMEM.
        y_b = y_prev.astype(jnp.bfloat16)
        taps = [jnp.dot(s_ref[t], y_b, preferred_element_type=f32)
                for t in range(_K * _K)]
        patches = jnp.concatenate(taps, axis=-1).astype(jnp.bfloat16)
        y = jnp.dot(patches, w_ref[...], preferred_element_type=f32) + b_ref[...]
        # Fused BatchNorm (biased batch stats over rows=(n,oh,ow)) + LeakyReLU
        # epilogue -- no extra kernel launch / HBM round trip.
        m = jnp.mean(y, axis=0, keepdims=True)
        v = jnp.mean((y - m) * (y - m), axis=0, keepdims=True)
        y = (y - m) * jax.lax.rsqrt(v + _BN_EPS) * g_ref[...] + be_ref[...]
        return lrelu(y)

    y2 = conv_bn_lrelu(y1, s2_ref, w2_ref, b2_ref, g2_ref, be2_ref)  # (M2, C2)
    y3 = conv_bn_lrelu(y2, s3_ref, w3_ref, b3_ref, g3_ref, be3_ref)  # (M3, C3)

    # fc + sigmoid.  Elementwise-mul + reductions instead of a lane-sparse
    # (M, 1) matmul; fc weights were permuted to channels-last row order at
    # trace time, so no flatten/transpose of activations is needed here.
    prod = y3 * wfc_ref[...]                                           # (M3, C3)
    per_n = jnp.dot(spool_ref[...], prod, preferred_element_type=f32)  # (N, C3)
    logit = jnp.sum(per_n, axis=-1, keepdims=True) + bfc_ref[...]      # (N, 1)
    out = 0.5 * (jnp.tanh(0.5 * logit) + 1.0)      # numerically stable sigmoid
    # Lane-dense store: broadcast across 128 lanes; column 0 sliced outside.
    o_ref[...] = jnp.broadcast_to(out, o_ref.shape).astype(o_ref.dtype)


# --------------------------- trace-time helpers ------------------------------

def _im2col_input(x_nchw):
    """(N, C, H, W) -> (N*OH*OW, K*K*C); rows (n, oh, ow), cols (tap, cin)."""
    n, c, h, w = x_nchw.shape
    oh, ow = _conv_out(h), _conv_out(w)
    xp = jnp.pad(x_nchw, ((0, 0), (0, 0), (_PAD, _PAD), (_PAD, _PAD)))
    cols = []
    for di in range(_K):
        for dj in range(_K):
            cols.append(xp[:, :, di:di + _STRIDE * oh:_STRIDE,
                               dj:dj + _STRIDE * ow:_STRIDE])      # (N,C,OH,OW)
    p = jnp.stack(cols, axis=-1)            # (N, C, OH, OW, 9)
    p = p.transpose(0, 2, 3, 4, 1)          # (N, OH, OW, 9, C)
    return p.reshape(n * oh * ow, _K * _K * c)


def _selection_matrices(n, h_in, w_in, h_out, w_out):
    """(9, N*h_out*w_out, N*h_in*w_in) static 0/1 matrices: S[t] @ act picks
    the tap-t input row of every output position; all-zero rows = padding."""
    m_out, m_in = n * h_out * w_out, n * h_in * w_in
    s = np.zeros((_K * _K, m_out, m_in), dtype=np.float32)
    for di in range(_K):
        for dj in range(_K):
            t = di * _K + dj
            for b in range(n):
                for oh in range(h_out):
                    h = _STRIDE * oh + di - _PAD
                    if h < 0 or h >= h_in:
                        continue
                    for ow in range(w_out):
                        w = _STRIDE * ow + dj - _PAD
                        if w < 0 or w >= w_in:
                            continue
                        s[t, (b * h_out + oh) * w_out + ow,
                             (b * h_in + h) * w_in + w] = 1.0
    return s


def _flatten_conv_w(w):
    """(Cout, Cin, kh, kw) -> (kh*kw*Cin, Cout), rows ordered (tap, cin)."""
    return w.transpose(2, 3, 1, 0).reshape(-1, w.shape[0])


# --------------------------------- forward ----------------------------------

@jax.jit
def dcgan_discriminator_forward(x, params):
    n, cin, h, w = x.shape
    c1 = params["w1"].shape[0]
    c2 = params["w2"].shape[0]
    c3 = params["w3"].shape[0]
    oh1, ow1 = _conv_out(h), _conv_out(w)
    oh2, ow2 = _conv_out(oh1), _conv_out(ow1)
    oh3, ow3 = _conv_out(oh2), _conv_out(ow2)
    m1, m2, m3 = n * oh1 * ow1, n * oh2 * ow2, n * oh3 * ow3

    bf16, f32 = jnp.bfloat16, jnp.float32

    # Layer-1 patches (input is tiny and read exactly once; at real DCGAN
    # sizes this too would move in-kernel / into a row-tiled grid).
    p1 = _im2col_input(x).astype(bf16)

    # Static in-kernel-im2col selection matrices (0/1 is exact in bf16).
    s2 = jnp.asarray(_selection_matrices(n, oh1, ow1, oh2, ow2), dtype=bf16)
    s3 = jnp.asarray(_selection_matrices(n, oh2, ow2, oh3, ow3), dtype=bf16)

    # Conv weights flattened (tap, cin) and cast to bf16 for the MXU.
    w1f = _flatten_conv_w(params["w1"]).astype(bf16)
    w2f = _flatten_conv_w(params["w2"]).astype(bf16)
    w3f = _flatten_conv_w(params["w3"]).astype(bf16)
    b1 = params["b1"].reshape(1, c1).astype(f32)
    b2 = params["b2"].reshape(1, c2).astype(f32)
    b3 = params["b3"].reshape(1, c3).astype(f32)
    g2 = params["g2"].reshape(1, c2).astype(f32)
    be2 = params["be2"].reshape(1, c2).astype(f32)
    g3 = params["g3"].reshape(1, c3).astype(f32)
    be3 = params["be3"].reshape(1, c3).astype(f32)

    # fc weight: permute rows ONCE from the PyTorch NCHW-flatten order to the
    # kernel's channels-last row order and tile per sample -> the kernel never
    # flattens or transposes activations.
    # TODO(synk): original forward's view() uses (time_window//2 - 6) while fc
    # was built with (time_window//2 - 7); internally inconsistent, so we keep
    # the fc's own in_features = C3*OH3*OW3 (same resolution as before).
    wfc_m = params["wfc"].reshape(c3, oh3, ow3).transpose(1, 2, 0)
    wfc_tile = jnp.tile(wfc_m.reshape(oh3 * ow3, c3), (n, 1)).astype(f32)
    bfc = params["bfc"].reshape(1, 1).astype(f32)
    spool = jnp.asarray(np.repeat(np.eye(n, dtype=np.float32),
                                  oh3 * ow3, axis=1), dtype=f32)      # (N, M3)

    inputs = (p1, w1f, b1, s2, w2f, b2, g2, be2,
              s3, w3f, b3, g3, be3, wfc_tile, spool, bfc)

    def full_block(a):
        zeros = (0,) * a.ndim
        return pl.BlockSpec(tuple(a.shape), lambda i, _z=zeros: _z)

    flops = 2 * (m1 * (_K * _K * cin) * c1
                 + _K * _K * m2 * m1 * c1 + m2 * (_K * _K * c1) * c2
                 + _K * _K * m3 * m2 * c2 + m3 * (_K * _K * c2) * c3
                 + n * m3 * c3)
    bytes_accessed = int(sum(int(np.prod(a.shape)) * a.dtype.itemsize
                             for a in inputs) + n * _OUT_LANES * 4)

    out_full = pl.pallas_call(
        _dcgan_fused_kernel,
        out_shape=jax.ShapeDtypeStruct((n, _OUT_LANES), f32),
        grid=(1,),      # whole net fits one VMEM-resident block at this size;
                        # a scaled-up version tiles rows with a "parallel" axis.
        in_specs=[full_block(a) for a in inputs],
        out_specs=pl.BlockSpec((n, _OUT_LANES), lambda i: (0, 0)),
        compiler_params=pltpu.CompilerParams(
            dimension_semantics=("arbitrary",),
            vmem_limit_bytes=32 * 1024 * 1024),
        cost_estimate=pl.CostEstimate(flops=flops,
                                      transcendentals=c2 + c3 + n,
                                      bytes_accessed=bytes_accessed),
    )(*inputs)
    return out_full[:, :1]                    # (N, 1); column 0 holds result


# ------------------------------ params / reference ---------------------------

def init_params(key, featmap_dim=32, n_channel=1, h3=5, w3=5):
    f4, f2, f = featmap_dim // 4, featmap_dim // 2, featmap_dim
    ks = jax.random.split(key, 12)

    def rnd(k, shape, scale=0.1):
        return scale * jax.random.normal(k, shape, dtype=jnp.float32)

    return dict(
        w1=rnd(ks[0], (f4, n_channel, 3, 3)), b1=rnd(ks[1], (f4,)),
        w2=rnd(ks[2], (f2, f4, 3, 3)),        b2=rnd(ks[3], (f2,)),
        g2=1.0 + rnd(ks[4], (f2,)),           be2=rnd(ks[5], (f2,)),
        w3=rnd(ks[6], (f, f2, 3, 3)),         b3=rnd(ks[7], (f,)),
        g3=1.0 + rnd(ks[8], (f,)),            be3=rnd(ks[9], (f,)),
        wfc=rnd(ks[10], (f * h3 * w3, 1)),    bfc=rnd(ks[11], (1,)),
    )


def _reference_forward(x, params):
    def conv(x, w, b):
        y = jax.lax.conv_general_dilated(
            x, w, window_strides=(2, 2), padding=((2, 2), (2, 2)),
            dimension_numbers=("NCHW", "OIHW", "NCHW"))
        return y + b.reshape(1, -1, 1, 1)

    def bn(x, g, bt):
        m = jnp.mean(x, axis=(0, 2, 3), keepdims=True)
        v = jnp.mean((x - m) ** 2, axis=(0, 2, 3), keepdims=True)
        return (x - m) * jax.lax.rsqrt(v + _BN_EPS) * g.reshape(1, -1, 1, 1) \
            + bt.reshape(1, -1, 1, 1)

    lrelu = lambda z: jnp.where(z >= 0, z, 0.2 * z)
    x = lrelu(conv(x, params["w1"], params["b1"]))
    x = lrelu(bn(conv(x, params["w2"], params["b2"]), params["g2"], params["be2"]))
    x = lrelu(bn(conv(x, params["w3"], params["b3"]), params["g3"], params["be3"]))
    flat = x.reshape(x.shape[0], -1)
    return jax.nn.sigmoid(flat @ params["wfc"] + params["bfc"])


# ----------------------------------------------------------------------------

if __name__ == "__main__":
    # img_size = time_window = 24 -> conv chain 24->13->8->5 and
    # featmap_dim*(24//2-7)**2 = fc in_features (the only consistent sizing).
    featmap_dim, n_channel = 32, 1
    img_size = time_window = 24
    batch = 2

    key = jax.random.PRNGKey(0)
    kx, kp = jax.random.split(key)
    x = jax.random.normal(kx, (batch, n_channel, time_window, img_size),
                          dtype=jnp.float32)
    params = init_params(kp, featmap_dim=featmap_dim, n_channel=n_channel,
                         h3=img_size // 2 - 7, w3=time_window // 2 - 7)

    out = jax.block_until_ready(dcgan_discriminator_forward(x, params))
    assert out.shape == (batch, 1), out.shape

    ref = jax.block_until_ready(_reference_forward(x, params))
    # Tolerance sized for bf16 MXU inputs (weights / patches); ref is all-f32.
    assert jnp.allclose(out, ref, rtol=2e-2, atol=2e-2), (out, ref)

    print("KERNEL_OK")
</pallas_src>

<mosaic_0001>
module attributes {stable_mosaic.version = 11 : i64} {
  func.func @_dcgan_fused_kernel(%arg0: i32, %arg1: memref<338x9xbf16, #tpu.memory_space<vmem>>, %arg2: memref<9x8xbf16, #tpu.memory_space<vmem>>, %arg3: memref<1x8xf32, #tpu.memory_space<vmem>>, %arg4: memref<9x128x338xbf16, #tpu.memory_space<vmem>>, %arg5: memref<72x16xbf16, #tpu.memory_space<vmem>>, %arg6: memref<1x16xf32, #tpu.memory_space<vmem>>, %arg7: memref<1x16xf32, #tpu.memory_space<vmem>>, %arg8: memref<1x16xf32, #tpu.memory_space<vmem>>, %arg9: memref<9x50x128xbf16, #tpu.memory_space<vmem>>, %arg10: memref<144x32xbf16, #tpu.memory_space<vmem>>, %arg11: memref<1x32xf32, #tpu.memory_space<vmem>>, %arg12: memref<1x32xf32, #tpu.memory_space<vmem>>, %arg13: memref<1x32xf32, #tpu.memory_space<vmem>>, %arg14: memref<50x32xf32, #tpu.memory_space<vmem>>, %arg15: memref<2x50xf32, #tpu.memory_space<vmem>>, %arg16: memref<1x1xf32, #tpu.memory_space<vmem>>, %arg17: memref<2x128xf32, #tpu.memory_space<vmem>>) attributes {dimension_semantics = [#tpu.dimension_semantics<arbitrary>], iteration_bounds = array<i64: 1>, scalar_prefetch = 0 : i64, scratch_operands = 0 : i64, tpu.core_type = #tpu.core_type<tc>, window_params = [{pipeline_mode = #tpu.pipeline_mode<synchronous>, transform_indices = @transform_0, window_bounds = array<i64: 338, 9>}, {pipeline_mode = #tpu.pipeline_mode<synchronous>, transform_indices = @transform_1, window_bounds = array<i64: 9, 8>}, {pipeline_mode = #tpu.pipeline_mode<synchronous>, transform_indices = @transform_2, window_bounds = array<i64: 1, 8>}, {pipeline_mode = #tpu.pipeline_mode<synchronous>, transform_indices = @transform_3, window_bounds = array<i64: 9, 128, 338>}, {pipeline_mode = #tpu.pipeline_mode<synchronous>, transform_indices = @transform_4, window_bounds = array<i64: 72, 16>}, {pipeline_mode = #tpu.pipeline_mode<synchronous>, transform_indices = @transform_5, window_bounds = array<i64: 1, 16>}, {pipeline_mode = #tpu.pipeline_mode<synchronous>, transform_indices = @transform_6, window_bounds = array<i64: 1, 16>}, {pipeline_mode = #tpu.pipeline_mode<synchronous>, transform_indices = @transform_7, window_bounds = array<i64: 1, 16>}, {pipeline_mode = #tpu.pipeline_mode<synchronous>, transform_indices = @transform_8, window_bounds = array<i64: 9, 50, 128>}, {pipeline_mode = #tpu.pipeline_mode<synchronous>, transform_indices = @transform_9, window_bounds = array<i64: 144, 32>}, {pipeline_mode = #tpu.pipeline_mode<synchronous>, transform_indices = @transform_10, window_bounds = array<i64: 1, 32>}, {pipeline_mode = #tpu.pipeline_mode<synchronous>, transform_indices = @transform_11, window_bounds = array<i64: 1, 32>}, {pipeline_mode = #tpu.pipeline_mode<synchronous>, transform_indices = @transform_12, window_bounds = array<i64: 1, 32>}, {pipeline_mode = #tpu.pipeline_mode<synchronous>, transform_indices = @transform_13, window_bounds = array<i64: 50, 32>}, {pipeline_mode = #tpu.pipeline_mode<synchronous>, transform_indices = @transform_14, window_bounds = array<i64: 2, 50>}, {pipeline_mode = #tpu.pipeline_mode<synchronous>, transform_indices = @transform_15, window_bounds = array<i64: 1, 1>}, {pipeline_mode = #tpu.pipeline_mode<synchronous>, transform_indices = @transform_16, window_bounds = array<i64: 2, 128>}]} {
    %c0 = arith.constant 0 : index
    %c0_0 = arith.constant 0 : index
    %0 = vector.load %arg1[%c0, %c0_0] : memref<338x9xbf16, #tpu.memory_space<vmem>>, vector<338x9xbf16>
    %c0_1 = arith.constant 0 : index
    %c0_2 = arith.constant 0 : index
    %1 = vector.load %arg2[%c0_1, %c0_2] : memref<9x8xbf16, #tpu.memory_space<vmem>>, vector<9x8xbf16>
    %cst = arith.constant dense<0.000000e+00> : vector<338x8xf32>
    %2 = tpu.matmul %0, %1, %cst {dimension_numbers = #tpu.dot_dimension_numbers<[1], [0], [0], [1], [0, 0, 1, 1], [], []>} : vector<338x9xbf16>, vector<9x8xbf16>, vector<338x8xf32> -> vector<338x8xf32>
    %c0_3 = arith.constant 0 : index
    %c0_4 = arith.constant 0 : index
    %3 = vector.load %arg3[%c0_3, %c0_4] : memref<1x8xf32, #tpu.memory_space<vmem>>, vector<1x8xf32>
    %4 = vector.broadcast %3 : vector<1x8xf32> to vector<338x8xf32>
    %5 = arith.addf %2, %4 : vector<338x8xf32>
    %cst_5 = arith.constant 0.000000e+00 : f32
    %6 = vector.broadcast %cst_5 : f32 to vector<338x8xf32>
    %7 = arith.cmpf oge, %5, %6 : vector<338x8xf32>
    %cst_6 = arith.constant 2.000000e-01 : f32
    %8 = vector.broadcast %cst_6 : f32 to vector<338x8xf32>
    %9 = arith.mulf %8, %5 : vector<338x8xf32>
    %10 = arith.select %7, %5, %9 : vector<338x8xi1>, vector<338x8xf32>
    %11 = arith.truncf %10 : vector<338x8xf32> to vector<338x8xbf16>
    %c0_7 = arith.constant 0 : index
    %c0_8 = arith.constant 0 : index
    %c0_9 = arith.constant 0 : index
    %12 = vector.load %arg4[%c0_7, %c0_8, %c0_9] : memref<9x128x338xbf16, #tpu.memory_space<vmem>>, vector<1x128x338xbf16>
    %13 = vector.shape_cast %12 : vector<1x128x338xbf16> to vector<128x338xbf16>
    %cst_10 = arith.constant dense<0.000000e+00> : vector<128x8xf32>
    %14 = tpu.matmul %13, %11, %cst_10 {dimension_numbers = #tpu.dot_dimension_numbers<[1], [0], [0], [1], [0, 0, 1, 1], [], []>} : vector<128x338xbf16>, vector<338x8xbf16>, vector<128x8xf32> -> vector<128x8xf32>
    %c1 = arith.constant 1 : index
    %c0_11 = arith.constant 0 : index
    %c0_12 = arith.constant 0 : index
    %15 = vector.load %arg4[%c1, %c0_11, %c0_12] : memref<9x128x338xbf16, #tpu.memory_space<vmem>>, vector<1x128x338xbf16>
    %16 = vector.shape_cast %15 : vector<1x128x338xbf16> to vector<128x338xbf16>
    %cst_13 = arith.constant dense<0.000000e+00> : vector<128x8xf32>
    %17 = tpu.matmul %16, %11, %cst_13 {dimension_numbers = #tpu.dot_dimension_numbers<[1], [0], [0], [1], [0, 0, 1, 1], [], []>} : vector<128x338xbf16>, vector<338x8xbf16>, vector<128x8xf32> -> vector<128x8xf32>
    %c2 = arith.constant 2 : index
    %c0_14 = arith.constant 0 : index
    %c0_15 = arith.constant 0 : index
    %18 = vector.load %arg4[%c2, %c0_14, %c0_15] : memref<9x128x338xbf16, #tpu.memory_space<vmem>>, vector<1x128x338xbf16>
    %19 = vector.shape_cast %18 : vector<1x128x338xbf16> to vector<128x338xbf16>
    %cst_16 = arith.constant dense<0.000000e+00> : vector<128x8xf32>
    %20 = tpu.matmul %19, %11, %cst_16 {dimension_numbers = #tpu.dot_dimension_numbers<[1], [0], [0], [1], [0, 0, 1, 1], [], []>} : vector<128x338xbf16>, vector<338x8xbf16>, vector<128x8xf32> -> vector<128x8xf32>
    %c3 = arith.constant 3 : index
    %c0_17 = arith.constant 0 : index
    %c0_18 = arith.constant 0 : index
    %21 = vector.load %arg4[%c3, %c0_17, %c0_18] : memref<9x128x338xbf16, #tpu.memory_space<vmem>>, vector<1x128x338xbf16>
    %22 = vector.shape_cast %21 : vector<1x128x338xbf16> to vector<128x338xbf16>
    %cst_19 = arith.constant dense<0.000000e+00> : vector<128x8xf32>
    %23 = tpu.matmul %22, %11, %cst_19 {dimension_numbers = #tpu.dot_dimension_numbers<[1], [0], [0], [1], [0, 0, 1, 1], [], []>} : vector<128x338xbf16>, vector<338x8xbf16>, vector<128x8xf32> -> vector<128x8xf32>
    %c4 = arith.constant 4 : index
    %c0_20 = arith.constant 0 : index
    %c0_21 = arith.constant 0 : index
    %24 = vector.load %arg4[%c4, %c0_20, %c0_21] : memref<9x128x338xbf16, #tpu.memory_space<vmem>>, vector<1x128x338xbf16>
    %25 = vector.shape_cast %24 : vector<1x128x338xbf16> to vector<128x338xbf16>
    %cst_22 = arith.constant dense<0.000000e+00> : vector<128x8xf32>
    %26 = tpu.matmul %25, %11, %cst_22 {dimension_numbers = #tpu.dot_dimension_numbers<[1], [0], [0], [1], [0, 0, 1, 1], [], []>} : vector<128x338xbf16>, vector<338x8xbf16>, vector<128x8xf32> -> vector<128x8xf32>
    %c5 = arith.constant 5 : index
    %c0_23 = arith.constant 0 : index
    %c0_24 = arith.constant 0 : index
    %27 = vector.load %arg4[%c5, %c0_23, %c0_24] : memref<9x128x338xbf16, #tpu.memory_space<vmem>>, vector<1x128x338xbf16>
    %28 = vector.shape_cast %27 : vector<1x128x338xbf16> to vector<128x338xbf16>
    %cst_25 = arith.constant dense<0.000000e+00> : vector<128x8xf32>
    %29 = tpu.matmul %28, %11, %cst_25 {dimension_numbers = #tpu.dot_dimension_numbers<[1], [0], [0], [1], [0, 0, 1, 1], [], []>} : vector<128x338xbf16>, vector<338x8xbf16>, vector<128x8xf32> -> vector<128x8xf32>
    %c6 = arith.constant 6 : index
    %c0_26 = arith.constant 0 : index
    %c0_27 = arith.constant 0 : index
    %30 = vector.load %arg4[%c6, %c0_26, %c0_27] : memref<9x128x338xbf16, #tpu.memory_space<vmem>>, vector<1x128x338xbf16>
    %31 = vector.shape_cast %30 : vector<1x128x338xbf16> to vector<128x338xbf16>
    %cst_28 = arith.constant dense<0.000000e+00> : vector<128x8xf32>
    %32 = tpu.matmul %31, %11, %cst_28 {dimension_numbers = #tpu.dot_dimension_numbers<[1], [0], [0], [1], [0, 0, 1, 1], [], []>} : vector<128x338xbf16>, vector<338x8xbf16>, vector<128x8xf32> -> vector<128x8xf32>
    %c7 = arith.constant 7 : index
    %c0_29 = arith.constant 0 : index
    %c0_30 = arith.constant 0 : index
    %33 = vector.load %arg4[%c7, %c0_29, %c0_30] : memref<9x128x338xbf16, #tpu.memory_space<vmem>>, vector<1x128x338xbf16>
    %34 = vector.shape_cast %33 : vector<1x128x338xbf16> to vector<128x338xbf16>
    %cst_31 = arith.constant dense<0.000000e+00> : vector<128x8xf32>
    %35 = tpu.matmul %34, %11, %cst_31 {dimension_numbers = #tpu.dot_dimension_numbers<[1], [0], [0], [1], [0, 0, 1, 1], [], []>} : vector<128x338xbf16>, vector<338x8xbf16>, vector<128x8xf32> -> vector<128x8xf32>
    %c8 = arith.constant 8 : index
    %c0_32 = arith.constant 0 : index
    %c0_33 = arith.constant 0 : index
    %36 = vector.load %arg4[%c8, %c0_32, %c0_33] : memref<9x128x338xbf16, #tpu.memory_space<vmem>>, vector<1x128x338xbf16>
    %37 = vector.shape_cast %36 : vector<1x128x338xbf16> to vector<128x338xbf16>
    %cst_34 = arith.constant dense<0.000000e+00> : vector<128x8xf32>
    %38 = tpu.matmul %37, %11, %cst_34 {dimension_numbers = #tpu.dot_dimension_numbers<[1], [0], [0], [1], [0, 0, 1, 1], [], []>} : vector<128x338xbf16>, vector<338x8xbf16>, vector<128x8xf32> -> vector<128x8xf32>
    %39 = tpu.concatenate %14, %17, %20, %23, %26, %29, %32, %35, %38 in 1 : vector<128x8xf32>, vector<128x8xf32>, vector<128x8xf32>, vector<128x8xf32>, vector<128x8xf32>, vector<128x8xf32>, vector<128x8xf32>, vector<128x8xf32>, vector<128x8xf32> -> vector<128x72xf32>
    %40 = arith.truncf %39 : vector<128x72xf32> to vector<128x72xbf16>
    %c0_35 = arith.constant 0 : index
    %c0_36 = arith.constant 0 : index
    %41 = vector.load %arg5[%c0_35, %c0_36] : memref<72x16xbf16, #tpu.memory_space<vmem>>, vector<72x16xbf16>
    %cst_37 = arith.constant dense<0.000000e+00> : vector<128x16xf32>
    %42 = tpu.matmul %40, %41, %cst_37 {dimension_numbers = #tpu.dot_dimension_numbers<[1], [0], [0], [1], [0, 0, 1, 1], [], []>} : vector<128x72xbf16>, vector<72x16xbf16>, vector<128x16xf32> -> vector<128x16xf32>
    %c0_38 = arith.constant 0 : index
    %c0_39 = arith.constant 0 : index
    %43 = vector.load %arg6[%c0_38, %c0_39] : memref<1x16xf32, #tpu.memory_space<vmem>>, vector<1x16xf32>
    %44 = vector.broadcast %43 : vector<1x16xf32> to vector<128x16xf32>
    %45 = arith.addf %42, %44 : vector<128x16xf32>
    %cst_40 = arith.constant dense<0.000000e+00> : vector<16xf32>
    %46 = vector.multi_reduction <add>, %45, %cst_40 [0] : vector<128x16xf32> to vector<16xf32>
    %47 = vector.shape_cast %46 : vector<16xf32> to vector<1x16xf32>
    %cst_41 = arith.constant 1.280000e+02 : f32
    %48 = vector.broadcast %cst_41 : f32 to vector<1x16xf32>
    %49 = arith.divf %47, %48 : vector<1x16xf32>
    %50 = vector.broadcast %49 : vector<1x16xf32> to vector<128x16xf32>
    %51 = arith.subf %45, %50 : vector<128x16xf32>
    %52 = vector.broadcast %49 : vector<1x16xf32> to vector<128x16xf32>
    %53 = arith.subf %45, %52 : vector<128x16xf32>
    %54 = arith.mulf %51, %53 : vector<128x16xf32>
    %cst_42 = arith.constant dense<0.000000e+00> : vector<16xf32>
    %55 = vector.multi_reduction <add>, %54, %cst_42 [0] : vector<128x16xf32> to vector<16xf32>
    %56 = vector.shape_cast %55 : vector<16xf32> to vector<1x16xf32>
    %cst_43 = arith.constant 1.280000e+02 : f32
    %57 = vector.broadcast %cst_43 : f32 to vector<1x16xf32>
    %58 = arith.divf %56, %57 : vector<1x16xf32>
    %59 = vector.broadcast %49 : vector<1x16xf32> to vector<128x16xf32>
    %60 = arith.subf %45, %59 : vector<128x16xf32>
    %cst_44 = arith.constant 9.99999974E-6 : f32
    %61 = vector.broadcast %cst_44 : f32 to vector<1x16xf32>
    %62 = arith.addf %58, %61 : vector<1x16xf32>
    %63 = math.rsqrt %62 : vector<1x16xf32>
    %64 = vector.broadcast %63 : vector<1x16xf32> to vector<128x16xf32>
    %65 = arith.mulf %60, %64 : vector<128x16xf32>
    %c0_45 = arith.constant 0 : index
    %c0_46 = arith.constant 0 : index
    %66 = vector.load %arg7[%c0_45, %c0_46] : memref<1x16xf32, #tpu.memory_space<vmem>>, vector<1x16xf32>
    %67 = vector.broadcast %66 : vector<1x16xf32> to vector<128x16xf32>
    %68 = arith.mulf %65, %67 : vector<128x16xf32>
    %c0_47 = arith.constant 0 : index
    %c0_48 = arith.constant 0 : index
    %69 = vector.load %arg8[%c0_47, %c0_48] : memref<1x16xf32, #tpu.memory_space<vmem>>, vector<1x16xf32>
    %70 = vector.broadcast %69 : vector<1x16xf32> to vector<128x16xf32>
    %71 = arith.addf %68, %70 : vector<128x16xf32>
    %cst_49 = arith.constant 0.000000e+00 : f32
    %72 = vector.broadcast %cst_49 : f32 to vector<128x16xf32>
    %73 = arith.cmpf oge, %71, %72 : vector<128x16xf32>
    %cst_50 = arith.constant 2.000000e-01 : f32
    %74 = vector.broadcast %cst_50 : f32 to vector<128x16xf32>
    %75 = arith.mulf %74, %71 : vector<128x16xf32>
    %76 = arith.select %73, %71, %75 : vector<128x16xi1>, vector<128x16xf32>
    %77 = arith.truncf %76 : vector<128x16xf32> to vector<128x16xbf16>
    %c0_51 = arith.constant 0 : index
    %c0_52 = arith.constant 0 : index
    %c0_53 = arith.constant 0 : index
    %78 = vector.load %arg9[%c0_51, %c0_52, %c0_53] : memref<9x50x128xbf16, #tpu.memory_space<vmem>>, vector<1x50x128xbf16>
    %79 = vector.shape_cast %78 : vector<1x50x128xbf16> to vector<50x128xbf16>
    %cst_54 = arith.constant dense<0.000000e+00> : vector<50x16xf32>
    %80 = tpu.matmul %79, %77, %cst_54 {dimension_numbers = #tpu.dot_dimension_numbers<[1], [0], [0], [1], [0, 0, 1, 1], [], []>} : vector<50x128xbf16>, vector<128x16xbf16>, vector<50x16xf32> -> vector<50x16xf32>
    %c1_55 = arith.constant 1 : index
    %c0_56 = arith.constant 0 : index
    %c0_57 = arith.constant 0 : index
    %81 = vector.load %arg9[%c1_55, %c0_56, %c0_57] : memref<9x50x128xbf16, #tpu.memory_space<vmem>>, vector<1x50x128xbf16>
    %82 = vector.shape_cast %81 : vector<1x50x128xbf16> to vector<50x128xbf16>
    %cst_58 = arith.constant dense<0.000000e+00> : vector<50x16xf32>
    %83 = tpu.matmul %82, %77, %cst_58 {dimension_numbers = #tpu.dot_dimension_numbers<[1], [0], [0], [1], [0, 0, 1, 1], [], []>} : vector<50x128xbf16>, vector<128x16xbf16>, vector<50x16xf32> -> vector<50x16xf32>
    %c2_59 = arith.constant 2 : index
    %c0_60 = arith.constant 0 : index
    %c0_61 = arith.constant 0 : index
    %84 = vector.load %arg9[%c2_59, %c0_60, %c0_61] : memref<9x50x128xbf16, #tpu.memory_space<vmem>>, vector<1x50x128xbf16>
    %85 = vector.shape_cast %84 : vector<1x50x128xbf16> to vector<50x128xbf16>
    %cst_62 = arith.constant dense<0.000000e+00> : vector<50x16xf32>
    %86 = tpu.matmul %85, %77, %cst_62 {dimension_numbers = #tpu.dot_dimension_numbers<[1], [0], [0], [1], [0, 0, 1, 1], [], []>} : vector<50x128xbf16>, vector<128x16xbf16>, vector<50x16xf32> -> vector<50x16xf32>
    %c3_63 = arith.constant 3 : index
    %c0_64 = arith.constant 0 : index
    %c0_65 = arith.constant 0 : index
    %87 = vector.load %arg9[%c3_63, %c0_64, %c0_65] : memref<9x50x128xbf16, #tpu.memory_space<vmem>>, vector<1x50x128xbf16>
    %88 = vector.shape_cast %87 : vector<1x50x128xbf16> to vector<50x128xbf16>
    %cst_66 = arith.constant dense<0.000000e+00> : vector<50x16xf32>
    %89 = tpu.matmul %88, %77, %cst_66 {dimension_numbers = #tpu.dot_dimension_numbers<[1], [0], [0], [1], [0, 0, 1, 1], [], []>} : vector<50x128xbf16>, vector<128x16xbf16>, vector<50x16xf32> -> vector<50x16xf32>
    %c4_67 = arith.constant 4 : index
    %c0_68 = arith.constant 0 : index
    %c0_69 = arith.constant 0 : index
    %90 = vector.load %arg9[%c4_67, %c0_68, %c0_69] : memref<9x50x128xbf16, #tpu.memory_space<vmem>>, vector<1x50x128xbf16>
    %91 = vector.shape_cast %90 : vector<1x50x128xbf16> to vector<50x128xbf16>
    %cst_70 = arith.constant dense<0.000000e+00> : vector<50x16xf32>
    %92 = tpu.matmul %91, %77, %cst_70 {dimension_numbers = #tpu.dot_dimension_numbers<[1], [0], [0], [1], [0, 0, 1, 1], [], []>} : vector<50x128xbf16>, vector<128x16xbf16>, vector<50x16xf32> -> vector<50x16xf32>
    %c5_71 = arith.constant 5 : index
    %c0_72 = arith.constant 0 : index
    %c0_73 = arith.constant 0 : index
    %93 = vector.load %arg9[%c5_71, %c0_72, %c0_73] : memref<9x50x128xbf16, #tpu.memory_space<vmem>>, vector<1x50x128xbf16>
    %94 = vector.shape_cast %93 : vector<1x50x128xbf16> to vector<50x128xbf16>
    %cst_74 = arith.constant dense<0.000000e+00> : vector<50x16xf32>
    %95 = tpu.matmul %94, %77, %cst_74 {dimension_numbers = #tpu.dot_dimension_numbers<[1], [0], [0], [1], [0, 0, 1, 1], [], []>} : vector<50x128xbf16>, vector<128x16xbf16>, vector<50x16xf32> -> vector<50x16xf32>
    %c6_75 = arith.constant 6 : index
    %c0_76 = arith.constant 0 : index
    %c0_77 = arith.constant 0 : index
    %96 = vector.load %arg9[%c6_75, %c0_76, %c0_77] : memref<9x50x128xbf16, #tpu.memory_space<vmem>>, vector<1x50x128xbf16>
    %97 = vector.shape_cast %96 : vector<1x50x128xbf16> to vector<50x128xbf16>
    %cst_78 = arith.constant dense<0.000000e+00> : vector<50x16xf32>
    %98 = tpu.matmul %97, %77, %cst_78 {dimension_numbers = #tpu.dot_dimension_numbers<[1], [0], [0], [1], [0, 0, 1, 1], [], []>} : vector<50x128xbf16>, vector<128x16xbf16>, vector<50x16xf32> -> vector<50x16xf32>
    %c7_79 = arith.constant 7 : index
    %c0_80 = arith.constant 0 : index
    %c0_81 = arith.constant 0 : index
    %99 = vector.load %arg9[%c7_79, %c0_80, %c0_81] : memref<9x50x128xbf16, #tpu.memory_space<vmem>>, vector<1x50x128xbf16>
    %100 = vector.shape_cast %99 : vector<1x50x128xbf16> to vector<50x128xbf16>
    %cst_82 = arith.constant dense<0.000000e+00> : vector<50x16xf32>
    %101 = tpu.matmul %100, %77, %cst_82 {dimension_numbers = #tpu.dot_dimension_numbers<[1], [0], [0], [1], [0, 0, 1, 1], [], []>} : vector<50x128xbf16>, vector<128x16xbf16>, vector<50x16xf32> -> vector<50x16xf32>
    %c8_83 = arith.constant 8 : index
    %c0_84 = arith.constant 0 : index
    %c0_85 = arith.constant 0 : index
    %102 = vector.load %arg9[%c8_83, %c0_84, %c0_85] : memref<9x50x128xbf16, #tpu.memory_space<vmem>>, vector<1x50x128xbf16>
    %103 = vector.shape_cast %102 : vector<1x50x128xbf16> to vector<50x128xbf16>
    %cst_86 = arith.constant dense<0.000000e+00> : vector<50x16xf32>
    %104 = tpu.matmul %103, %77, %cst_86 {dimension_numbers = #tpu.dot_dimension_numbers<[1], [0], [0], [1], [0, 0, 1, 1], [], []>} : vector<50x128xbf16>, vector<128x16xbf16>, vector<50x16xf32> -> vector<50x16xf32>
    %105 = tpu.concatenate %80, %83, %86, %89, %92, %95, %98, %101, %104 in 1 : vector<50x16xf32>, vector<50x16xf32>, vector<50x16xf32>, vector<50x16xf32>, vector<50x16xf32>, vector<50x16xf32>, vector<50x16xf32>, vector<50x16xf32>, vector<50x16xf32> -> vector<50x144xf32>
    %106 = arith.truncf %105 : vector<50x144xf32> to vector<50x144xbf16>
    %c0_87 = arith.constant 0 : index
    %c0_88 = arith.constant 0 : index
    %107 = vector.load %arg10[%c0_87, %c0_88] : memref<144x32xbf16, #tpu.memory_space<vmem>>, vector<144x32xbf16>
    %cst_89 = arith.constant dense<0.000000e+00> : vector<50x32xf32>
    %108 = tpu.matmul %106, %107, %cst_89 {dimension_numbers = #tpu.dot_dimension_numbers<[1], [0], [0], [1], [0, 0, 1, 1], [], []>} : vector<50x144xbf16>, vector<144x32xbf16>, vector<50x32xf32> -> vector<50x32xf32>
    %c0_90 = arith.constant 0 : index
    %c0_91 = arith.constant 0 : index
    %109 = vector.load %arg11[%c0_90, %c0_91] : memref<1x32xf32, #tpu.memory_space<vmem>>, vector<1x32xf32>
    %110 = vector.broadcast %109 : vector<1x32xf32> to vector<50x32xf32>
    %111 = arith.addf %108, %110 : vector<50x32xf32>
    %cst_92 = arith.constant dense<0.000000e+00> : vector<32xf32>
    %112 = vector.multi_reduction <add>, %111, %cst_92 [0] : vector<50x32xf32> to vector<32xf32>
    %113 = vector.shape_cast %112 : vector<32xf32> to vector<1x32xf32>
    %cst_93 = arith.constant 5.000000e+01 : f32
    %114 = vector.broadcast %cst_93 : f32 to vector<1x32xf32>
    %115 = arith.divf %113, %114 : vector<1x32xf32>
    %116 = vector.broadcast %115 : vector<1x32xf32> to vector<50x32xf32>
    %117 = arith.subf %111, %116 : vector<50x32xf32>
    %118 = vector.broadcast %115 : vector<1x32xf32> to vector<50x32xf32>
    %119 = arith.subf %111, %118 : vector<50x32xf32>
    %120 = arith.mulf %117, %119 : vector<50x32xf32>
    %cst_94 = arith.constant dense<0.000000e+00> : vector<32xf32>
    %121 = vector.multi_reduction <add>, %120, %cst_94 [0] : vector<50x32xf32> to vector<32xf32>
    %122 = vector.shape_cast %121 : vector<32xf32> to vector<1x32xf32>
    %cst_95 = arith.constant 5.000000e+01 : f32
    %123 = vector.broadcast %cst_95 : f32 to vector<1x32xf32>
    %124 = arith.divf %122, %123 : vector<1x32xf32>
    %125 = vector.broadcast %115 : vector<1x32xf32> to vector<50x32xf32>
    %126 = arith.subf %111, %125 : vector<50x32xf32>
    %cst_96 = arith.constant 9.99999974E-6 : f32
    %127 = vector.broadcast %cst_96 : f32 to vector<1x32xf32>
    %128 = arith.addf %124, %127 : vector<1x32xf32>
    %129 = math.rsqrt %128 : vector<1x32xf32>
    %130 = vector.broadcast %129 : vector<1x32xf32> to vector<50x32xf32>
    %131 = arith.mulf %126, %130 : vector<50x32xf32>
    %c0_97 = arith.constant 0 : index
    %c0_98 = arith.constant 0 : index
    %132 = vector.load %arg12[%c0_97, %c0_98] : memref<1x32xf32, #tpu.memory_space<vmem>>, vector<1x32xf32>
    %133 = vector.broadcast %132 : vector<1x32xf32> to vector<50x32xf32>
    %134 = arith.mulf %131, %133 : vector<50x32xf32>
    %c0_99 = arith.constant 0 : index
    %c0_100 = arith.constant 0 : index
    %135 = vector.load %arg13[%c0_99, %c0_100] : memref<1x32xf32, #tpu.memory_space<vmem>>, vector<1x32xf32>
    %136 = vector.broadcast %135 : vector<1x32xf32> to vector<50x32xf32>
    %137 = arith.addf %134, %136 : vector<50x32xf32>
    %cst_101 = arith.constant 0.000000e+00 : f32
    %138 = vector.broadcast %cst_101 : f32 to vector<50x32xf32>
    %139 = arith.cmpf oge, %137, %138 : vector<50x32xf32>
    %cst_102 = arith.constant 2.000000e-01 : f32
    %140 = vector.broadcast %cst_102 : f32 to vector<50x32xf32>
    %141 = arith.mulf %140, %137 : vector<50x32xf32>
    %142 = arith.select %139, %137, %141 : vector<50x32xi1>, vector<50x32xf32>
    %c0_103 = arith.constant 0 : index
    %c0_104 = arith.constant 0 : index
    %143 = vector.load %arg14[%c0_103, %c0_104] : memref<50x32xf32, #tpu.memory_space<vmem>>, vector<50x32xf32>
    %144 = arith.mulf %142, %143 : vector<50x32xf32>
    %c0_105 = arith.constant 0 : index
    %c0_106 = arith.constant 0 : index
    %145 = vector.load %arg15[%c0_105, %c0_106] : memref<2x50xf32, #tpu.memory_space<vmem>>, vector<2x50xf32>
    %cst_107 = arith.constant dense<0.000000e+00> : vector<2x32xf32>
    %146 = tpu.matmul %145, %144, %cst_107 {dimension_numbers = #tpu.dot_dimension_numbers<[1], [0], [0], [1], [0, 0, 1, 1], [], []>} : vector<2x50xf32>, vector<50x32xf32>, vector<2x32xf32> -> vector<2x32xf32>
    %cst_108 = arith.constant dense<0.000000e+00> : vector<2xf32>
    %147 = vector.multi_reduction <add>, %146, %cst_108 [1] : vector<2x32xf32> to vector<2xf32>
    %148 = vector.shape_cast %147 : vector<2xf32> to vector<2x1xf32>
    %c0_109 = arith.constant 0 : index
    %c0_110 = arith.constant 0 : index
    %149 = vector.load %arg16[%c0_109, %c0_110] : memref<1x1xf32, #tpu.memory_space<vmem>>, vector<1x1xf32>
    %150 = vector.broadcast %149 : vector<1x1xf32> to vector<2x1xf32>
    %151 = arith.addf %148, %150 : vector<2x1xf32>
    %cst_111 = arith.constant 5.000000e-01 : f32
    %152 = vector.broadcast %cst_111 : f32 to vector<2x1xf32>
    %153 = arith.mulf %152, %151 : vector<2x1xf32>
    %154 = math.tanh %153 : vector<2x1xf32>
    %cst_112 = arith.constant 1.000000e+00 : f32
    %155 = vector.broadcast %cst_112 : f32 to vector<2x1xf32>
    %156 = arith.addf %154, %155 : vector<2x1xf32>
    %cst_113 = arith.constant 5.000000e-01 : f32
    %157 = vector.broadcast %cst_113 : f32 to vector<2x1xf32>
    %158 = arith.mulf %157, %156 : vector<2x1xf32>
    %159 = vector.shape_cast %158 : vector<2x1xf32> to vector<2x1xf32>
    %160 = vector.broadcast %159 : vector<2x1xf32> to vector<2x128xf32>
    %c0_114 = arith.constant 0 : index
    %c0_115 = arith.constant 0 : index
    %161 = vector.load %arg17[%c0_114, %c0_115] : memref<2x128xf32, #tpu.memory_space<vmem>>, vector<2x128xf32>
    tpu.vector_store %arg17[%c0_114, %c0_115], %160 {strides = array<i32>} : memref<2x128xf32, #tpu.memory_space<vmem>>, vector<2x128xf32>,
    return
  }
  func.func @transform_0(%arg0: i32) -> (i32, i32) {
    %c0_i32 = arith.constant 0 : i32
    %c0_i32_0 = arith.constant 0 : i32
    %c0_i32_1 = arith.constant 0 : i32
    return %c0_i32, %c0_i32_0 : i32, i32
  }
  func.func @transform_1(%arg0: i32) -> (i32, i32) {
    %c0_i32 = arith.constant 0 : i32
    %c0_i32_0 = arith.constant 0 : i32
    %c0_i32_1 = arith.constant 0 : i32
    return %c0_i32, %c0_i32_0 : i32, i32
  }
  func.func @transform_2(%arg0: i32) -> (i32, i32) {
    %c0_i32 = arith.constant 0 : i32
    %c0_i32_0 = arith.constant 0 : i32
    %c0_i32_1 = arith.constant 0 : i32
    return %c0_i32, %c0_i32_0 : i32, i32
  }
  func.func @transform_3(%arg0: i32) -> (i32, i32, i32) {
    %c0_i32 = arith.constant 0 : i32
    %c0_i32_0 = arith.constant 0 : i32
    %c0_i32_1 = arith.constant 0 : i32
    %c0_i32_2 = arith.constant 0 : i32
    return %c0_i32, %c0_i32_0, %c0_i32_1 : i32, i32, i32
  }
  func.func @transform_4(%arg0: i32) -> (i32, i32) {
    %c0_i32 = arith.constant 0 : i32
    %c0_i32_0 = arith.constant 0 : i32
    %c0_i32_1 = arith.constant 0 : i32
    return %c0_i32, %c0_i32_0 : i32, i32
  }
  func.func @transform_5(%arg0: i32) -> (i32, i32) {
    %c0_i32 = arith.constant 0 : i32
    %c0_i32_0 = arith.constant 0 : i32
    %c0_i32_1 = arith.constant 0 : i32
    return %c0_i32, %c0_i32_0 : i32, i32
  }
  func.func @transform_6(%arg0: i32) -> (i32, i32) {
    %c0_i32 = arith.constant 0 : i32
    %c0_i32_0 = arith.constant 0 : i32
    %c0_i32_1 = arith.constant 0 : i32
    return %c0_i32, %c0_i32_0 : i32, i32
  }
  func.func @transform_7(%arg0: i32) -> (i32, i32) {
    %c0_i32 = arith.constant 0 : i32
    %c0_i32_0 = arith.constant 0 : i32
    %c0_i32_1 = arith.constant 0 : i32
    return %c0_i32, %c0_i32_0 : i32, i32
  }
  func.func @transform_8(%arg0: i32) -> (i32, i32, i32) {
    %c0_i32 = arith.constant 0 : i32
    %c0_i32_0 = arith.constant 0 : i32
    %c0_i32_1 = arith.constant 0 : i32
    %c0_i32_2 = arith.constant 0 : i32
    return %c0_i32, %c0_i32_0, %c0_i32_1 : i32, i32, i32
  }
  func.func @transform_9(%arg0: i32) -> (i32, i32) {
    %c0_i32 = arith.constant 0 : i32
    %c0_i32_0 = arith.constant 0 : i32
    %c0_i32_1 = arith.constant 0 : i32
    return %c0_i32, %c0_i32_0 : i32, i32
  }
  func.func @transform_10(%arg0: i32) -> (i32, i32) {
    %c0_i32 = arith.constant 0 : i32
    %c0_i32_0 = arith.constant 0 : i32
    %c0_i32_1 = arith.constant 0 : i32
    return %c0_i32, %c0_i32_0 : i32, i32
  }
  func.func @transform_11(%arg0: i32) -> (i32, i32) {
    %c0_i32 = arith.constant 0 : i32
    %c0_i32_0 = arith.constant 0 : i32
    %c0_i32_1 = arith.constant 0 : i32
    return %c0_i32, %c0_i32_0 : i32, i32
  }
  func.func @transform_12(%arg0: i32) -> (i32, i32) {
    %c0_i32 = arith.constant 0 : i32
    %c0_i32_0 = arith.constant 0 : i32
    %c0_i32_1 = arith.constant 0 : i32
    return %c0_i32, %c0_i32_0 : i32, i32
  }
  func.func @transform_13(%arg0: i32) -> (i32, i32) {
    %c0_i32 = arith.constant 0 : i32
    %c0_i32_0 = arith.constant 0 : i32
    %c0_i32_1 = arith.constant 0 : i32
    return %c0_i32, %c0_i32_0 : i32, i32
  }
  func.func @transform_14(%arg0: i32) -> (i32, i32) {
    %c0_i32 = arith.constant 0 : i32
    %c0_i32_0 = arith.constant 0 : i32
    %c0_i32_1 = arith.constant 0 : i32
    return %c0_i32, %c0_i32_0 : i32, i32
  }
  func.func @transform_15(%arg0: i32) -> (i32, i32) {
    %c0_i32 = arith.constant 0 : i32
    %c0_i32_0 = arith.constant 0 : i32
    %c0_i32_1 = arith.constant 0 : i32
    return %c0_i32, %c0_i32_0 : i32, i32
  }
  func.func @transform_16(%arg0: i32) -> (i32, i32) {
    %c0_i32 = arith.constant 0 : i32
    %c0_i32_0 = arith.constant 0 : i32
    %c0_i32_1 = arith.constant 0 : i32
    return %c0_i32, %c0_i32_0 : i32, i32
  }
}

</mosaic_0001>

<bundles_post_ra>
// kernel: tile.7
= control target key start
LH: loop header
LB: loop body
LE: loop exit
PB: predicated region body
PF: predicated region fallthrough
CT: control target
= control target key end

     0   :  { %vm162_vm0 = vcmask 1047556   ;;  %s304_s10 = smov 25   ;;  %vm164_vm1 = vcmask 203776   ;;  %vm201_vm2 = vcmask 408776   ;;  %s451_s0 = inlined_call_operand.vmem [shape: f32[2,25,32], index: 0, kind: input, shape index: {}]   ;;  %s452_s1 = inlined_call_operand.vmem [shape: f32[50,32], index: 1, kind: output, shape index: {}]  }
   0x1   :  { %v290_v0 = vld [vmem:[%s451_s0 + $0xe] sm:$0x3]  ;;  %v291_v1 = vld [vmem:[%s451_s0 + $0xc] sm:$0x3]  ;;  %v292_v2 = vld [vmem:[%s451_s0 + $0xa] sm:$0x3] }
   0x2   :  { %128 = vst [vmem:[#allocation0 + $0x38] sm:$0x3] %v290_v0  ;;  %133 = vst [vmem:[#allocation0 + $0x30] sm:$0x3] %v291_v1  ;;  %v293_v3 = vld [vmem:[%s451_s0 + $0x8] sm:$0x3] }
   0x3   :  { %138 = vst [vmem:[#allocation0 + $0x28] sm:$0x3] %v292_v2  ;;  %v294_v4 = vld [vmem:[%s451_s0 + $0x6] sm:$0x3]  ;;  %v295_v5 = vld [vmem:[%s451_s0 + $0x4] sm:$0x3] }
   0x4   :  { %143 = vst [vmem:[#allocation0 + $0x20] sm:$0x3] %v293_v3  ;;  %148 = vst [vmem:[#allocation0 + $0x18] sm:$0x3] %v294_v4  ;;  %v296_v6 = vld [vmem:[%s451_s0 + $0x2] sm:$0x3] }
   0x5   :  { %153 = vst [vmem:[#allocation0 + $0x10] sm:$0x3] %v295_v5  ;;  %v158_v7 = vld [vmem:[%s451_s0] sm:$0x3]  ;;  %157 = vst [vmem:[#allocation0 + $0x8] sm:$0x3] %v296_v6 }
   0x6   :  { %159 = vst [vmem:[#allocation0] sm:$0x3] %v158_v7  ;;  %v274_v8 = vld [vmem:[%s451_s0 + $0x2e] sm:$0x3]  ;;  %v275_v9 = vld [vmem:[%s451_s0 + $0x2c] sm:$0x3] }
   0x7   :  { %v276_v10 = vld [vmem:[%s451_s0 + $0x2a] sm:$0x3]  ;;  %48 = vst [vmem:[#allocation0 + $0xb8] sm:$0x3] %v274_v8  ;;  %53 = vst [vmem:[#allocation0 + $0xb0] sm:$0x3] %v275_v9 }
   0x8   :  { %58 = vst [vmem:[#allocation0 + $0xa8] sm:$0x3] %v276_v10  ;;  %v277_v11 = vld [vmem:[%s451_s0 + $0x28] sm:$0x3]  ;;  %v278_v12 = vld [vmem:[%s451_s0 + $0x26] sm:$0x3] }
   0x9   :  { %v279_v13 = vld [vmem:[%s451_s0 + $0x24] sm:$0x3]  ;;  %63 = vst [vmem:[#allocation0 + $0xa0] sm:$0x3] %v277_v11  ;;  %68 = vst [vmem:[#allocation0 + $0x98] sm:$0x3] %v278_v12 }
   0xa   :  { %73 = vst [vmem:[#allocation0 + $0x90] sm:$0x3] %v279_v13  ;;  %v280_v14 = vld [vmem:[%s451_s0 + $0x22] sm:$0x3]  ;;  %v281_v15 = vld [vmem:[%s451_s0 + $0x20] sm:$0x3] }
   0xb   :  { %v282_v16 = vld [vmem:[%s451_s0 + $0x1e] sm:$0x3]  ;;  %78 = vst [vmem:[#allocation0 + $0x88] sm:$0x3] %v280_v14  ;;  %83 = vst [vmem:[#allocation0 + $0x80] sm:$0x3] %v281_v15 }
   0xc   :  { %88 = vst [vmem:[#allocation0 + $0x78] sm:$0x3] %v282_v16  ;;  %v283_v17 = vld [vmem:[%s451_s0 + $0x1c] sm:$0x3]  ;;  %v284_v18 = vld [vmem:[%s451_s0 + $0x1a] sm:$0x3] }
   0xd   :  { %v285_v19 = vld [vmem:[%s451_s0 + $0x18] sm:$0x3]  ;;  %93 = vst [vmem:[#allocation0 + $0x70] sm:$0x3] %v283_v17  ;;  %98 = vst [vmem:[#allocation0 + $0x68] sm:$0x3] %v284_v18 }
   0xe   :  { %103 = vst [vmem:[#allocation0 + $0x60] sm:$0x3] %v285_v19  ;;  %v286_v20 = vld [vmem:[%s451_s0 + $0x16] sm:$0x3]  ;;  %v287_v21 = vld [vmem:[%s451_s0 + $0x14] sm:$0x3] }
   0xf   :  { %v288_v22 = vld [vmem:[%s451_s0 + $0x12] sm:$0x3]  ;;  %108 = vst [vmem:[#allocation0 + $0x58] sm:$0x3] %v286_v20  ;;  %113 = vst [vmem:[#allocation0 + $0x50] sm:$0x3] %v287_v21 }
  0x10   :  { %118 = vst [vmem:[#allocation0 + $0x48] sm:$0x3] %v288_v22  ;;  %v289_v23 = vld [vmem:[%s451_s0 + $0x10] sm:$0x3]  ;;  %v266_v24 = vld [vmem:[%s451_s0 + $0x3e] sm:$0x3] }
  0x11   :  { %v267_v25 = vld [vmem:[%s451_s0 + $0x3c] sm:$0x3]  ;;  %v196_v26 = vld [vmem:[#allocation0 + $0x1] ss:$8 sm:$0xf0]  }
  0x12   :  { %123 = vst [vmem:[#allocation0 + $0x40] sm:$0x3] %v289_v23  ;;  %8 = vst [vmem:[#allocation0 + $0xf8] sm:$0x3] %v266_v24  ;;  %v268_v27 = vld [vmem:[%s451_s0 + $0x3a] sm:$0x3] }
  0x13   :  { %13 = vst [vmem:[#allocation0 + $0xf0] sm:$0x3] %v267_v25  ;;  %v194_v28 = vld [vmem:[#allocation0 + $0x1] ss:$8 sm:$0xf]  }
  0x14   :  { %18 = vst [vmem:[#allocation0 + $0xe8] sm:$0x3] %v268_v27  ;;  %v269_v29 = vld [vmem:[%s451_s0 + $0x38] sm:$0x3]  ;;  %v198_v30 = vsel %vm162_vm0, %v196_v26, %v194_v28  ;;  %v270_v31 = vld [vmem:[%s451_s0 + $0x36] sm:$0x3] }
  0x15   :  { %23 = vst [vmem:[#allocation0 + $0xe0] sm:$0x3] %v269_v29  ;;  %v271_v32 = vld [vmem:[%s451_s0 + $0x34] sm:$0x3]  ;;  %v272_v33 = vld [vmem:[%s451_s0 + $0x32] sm:$0x3]  ;;  %199 = vrot.lane.b32.xlu0 %v198_v30, %s304_s10 }
  0x16   :  { %v217_v34 = vld [vmem:[#allocation0 + $0x81] ss:$8 sm:$0xf0]   ;;  %28 = vst [vmem:[#allocation0 + $0xd8] sm:$0x3] %v270_v31 }
  0x17   :  { %33 = vst [vmem:[#allocation0 + $0xd0] sm:$0x3] %v271_v32  ;;  %38 = vst [vmem:[#allocation0 + $0xc8] sm:$0x3] %v272_v33  ;;  %v273_v35 = vld [vmem:[%s451_s0 + $0x30] sm:$0x3] }
  0x18   :  { %v215_v36 = vld [vmem:[#allocation0 + $0x81] ss:$8 sm:$0xf]   ;;  %43 = vst [vmem:[#allocation0 + $0xc0] sm:$0x3] %v273_v35 }
  0x19   :  { %v160_v37 = vld [vmem:[#allocation0] ss:$8 sm:$0xf]   ;;  %v219_v38 = vsel %vm162_vm0, %v217_v34, %v215_v36  ;;  %v206_v39 = vld [vmem:[#allocation0 + $0x41] ss:$8 sm:$0xf0]  }
  0x1a   :  { %v161_v40 = vld [vmem:[#allocation0] ss:$8 sm:$0xf0]   ;;  %220 = vrot.lane.b32.xlu1 %v219_v38, %s304_s10  ;;  %v204_v44 = vld [vmem:[#allocation0 + $0x41] ss:$8 sm:$0xf]  }
  0x1b   :  { %v163_v41 = vsel %vm162_vm0, %v161_v40, %v160_v37  ;;  %v176_v42 = vld [vmem:[#allocation0 + $0x80] ss:$8 sm:$0xf]   ;;  %v208_v47 = vsel %vm162_vm0, %v206_v39, %v204_v44 }
  0x1c   :  { %v178_v43 = vld [vmem:[#allocation0 + $0x80] ss:$8 sm:$0xf0]   ;;  %165 = vst.msk [vmem:[%s452_s1] sm:$0xff] %vm164_vm1, %v163_v41   ;;  %209 = vrot.lane.b32.xlu0 %v208_v47, %s304_s10 }
  0x1d   :  { %v180_v45 = vsel %vm162_vm0, %v178_v43, %v176_v42  ;;  %v167_v46 = vld [vmem:[#allocation0 + $0x40] ss:$8 sm:$0xf]   ;;  %v228_v49 = vld [vmem:[#allocation0 + $0xc1] ss:$8 sm:$0xf0]  }
  0x1e   :  { %298 = vst.msk [vmem:[%s452_s1 + $0x10] sm:$0xff] %vm164_vm1, %v180_v45   ;;  %v169_v48 = vld [vmem:[#allocation0 + $0x40] ss:$8 sm:$0xf0]  }
  0x1f   :  { %v171_v50 = vsel %vm162_vm0, %v169_v48, %v167_v46  ;;  %v187_v51 = vld [vmem:[#allocation0 + $0xc0] ss:$8 sm:$0xf0]   ;;  %v226_v52 = vld [vmem:[#allocation0 + $0xc1] ss:$8 sm:$0xf]  }
  0x20   :  { %297 = vst.msk [vmem:[%s452_s1 + $0x8] sm:$0xff] %vm164_vm1, %v171_v50   ;;  %v185_v53 = vld [vmem:[#allocation0 + $0xc0] ss:$8 sm:$0xf]   ;;  %v230_v54 = vsel %vm162_vm0, %v228_v49, %v226_v52 }
  0x21   :  { %v189_v55 = vsel %vm162_vm0, %v187_v51, %v185_v53  ;;  %231 = vrot.lane.b32.xlu1 %v230_v54, %s304_s10 }
  0x22   :  { %299 = vst.msk [vmem:[%s452_s1 + $0x18] sm:$0xff] %vm164_vm1, %v189_v55  }
  0x87   :  { %v200_v56 = vpop.permute.xlu0 %199  }
  0x88   :  { %202 = vst.msk [vmem:[%s452_s1] sm:$0xff] %vm201_vm2, %v200_v56  }
  0x8c   :  { %v221_v57 = vpop.permute.xlu1 %220  }
  0x8d   :  { %301 = vst.msk [vmem:[%s452_s1 + $0x10] sm:$0xff] %vm201_vm2, %v221_v57  }
  0x8e   :  { %v210_v58 = vpop.permute.xlu0 %209  }
  0x8f   :  { %300 = vst.msk [vmem:[%s452_s1 + $0x8] sm:$0xff] %vm201_vm2, %v210_v58  }
  0x93   :  { %v232_v59 = vpop.permute.xlu1 %231  }
  0x94   :  { %302 = vst.msk [vmem:[%s452_s1 + $0x18] sm:$0xff] %vm201_vm2, %v232_v59  }

// kernel: dcgan_discriminator_forward.1
= control target key start
LH: loop header
LB: loop body
LE: loop exit
PB: predicated region body
PF: predicated region fallthrough
CT: control target
= control target key end

     0   :  { %vm288_vm0 = vcmask 1043456   ;;  %vm289_vm1 = vcmask 1044480   ;;  %vm221_vm2 = vcmask 72704   ;;  %v9495_v1 = vmov 65535   ;;  %s9496_s20 = smov 8   ;;  %s9497_s30 = smov 16   ;;  %s12216_s1 = inlined_call_operand.vmem [shape: bf16[9,8], index: 1, kind: input, shape index: {}]   ;;  %s12217_s0 = inlined_call_operand.vmem [shape: bf16[338,9], index: 0, kind: input, shape index: {}]   ;;  %s12218_s3 = inlined_call_operand.vmem [shape: bf16[9,128,338], index: 3, kind: input, shape index: {}]   ;;  %s12219_s2 = inlined_call_operand.vmem [shape: f32[1,8], index: 2, kind: input, shape index: {}]   ;;  %s12220_s4 = inlined_call_operand.vmem [shape: bf16[72,16], index: 4, kind: input, shape index: {}]   ;;  %s12221_s5 = inlined_call_operand.vmem [shape: f32[1,16], index: 5, kind: input, shape index: {}]   ;;  %s12222_s8 = inlined_call_operand.vmem [shape: bf16[9,50,128], index: 8, kind: input, shape index: {}]   ;;  %s12223_s6 = inlined_call_operand.vmem [shape: f32[1,16], index: 6, kind: input, shape index: {}]   ;;  %s12224_s7 = inlined_call_operand.vmem [shape: f32[1,16], index: 7, kind: input, shape index: {}]   ;;  %s12225_s9 = inlined_call_operand.vmem [shape: bf16[144,32], index: 9, kind: input, shape index: {}]   ;;  %s12226_s10 = inlined_call_operand.vmem [shape: f32[1,32], index: 10, kind: input, shape index: {}]   ;;  %s12227_s11 = inlined_call_operand.vmem [shape: f32[1,32], index: 11, kind: input, shape index: {}]   ;;  %s12228_s12 = inlined_call_operand.vmem [shape: f32[1,32], index: 12, kind: input, shape index: {}]   ;;  %s12229_s13 = inlined_call_operand.vmem [shape: f32[50,32], index: 13, kind: input, shape index: {}]   ;;  %s12230_s14 = inlined_call_operand.vmem [shape: f32[2,50], index: 14, kind: input, shape index: {}]   ;;  %s12231_s15 = inlined_call_operand.<no memory space> [shape: f32[1,1], index: 15, kind: input, shape index: {}]   ;;  %s12232_s16 = inlined_call_operand.vmem [shape: f32[2,128], index: 16, kind: output, shape index: {}]  }
   0x1   :  { %12237 = sst [smem:[#allocation6_spill]] %s12216_s1  ;;  %v290_v2 = vsel %vm288_vm0, 4294967295, %v9495_v1  ;;  %v9129_v3 = vld [vmem:[%s12217_s0] sm:$0xff]   ;;  %v9130_v6 = vld [vmem:[%s12217_s0 + $0x8] sm:$0xff]   ;;  %v9131_v7 = vld [vmem:[%s12217_s0 + $0x10] sm:$0xff]   ;;  %vm806_vm3 = vcmask 670720  }
   0x2   :  { %s12238_s23 = sld [smem:[#allocation6_spill]]  ;;  %v291_v4 = vsel %vm289_vm1, %v290_v2, 0  ;;  %8111 = vmatprep.mubr.msk.bf16.mxu0 %vm221_vm2, %v9129_v3  ;;  %v9132_v8 = vld [vmem:[%s12217_s0 + $0x18] sm:$0xff]   ;;  %v9133_v9 = vld [vmem:[%s12217_s0 + $0x20] sm:$0xff]   ;;  %v9134_v10 = vld [vmem:[%s12217_s0 + $0x28] sm:$0xff]   ;;  %s9498_s21 = smov 24  }
   0x3   :  { %v9135_v11 = vld [vmem:[%s12217_s0 + $0x30] sm:$0xff]   ;;  %v9136_v12 = vld [vmem:[%s12217_s0 + $0x38] sm:$0xff]   ;;  %v9137_v13 = vld [vmem:[%s12217_s0 + $0x40] sm:$0xff]   ;;  %s9505_s1 = smov 80  }
   0x4   :  { %v9138_v14 = vld [vmem:[%s12217_s0 + $0x48] sm:$0xff]   ;;  %v9139_v15 = vld [vmem:[%s12217_s0 + $0x50] sm:$0xff]   ;;  %v9140_v16 = vld [vmem:[%s12217_s0 + $0x58] sm:$0xff]  }
   0x5   :  { %v9141_v17 = vld [vmem:[%s12217_s0 + $0x60] sm:$0xff]   ;;  %v9142_v18 = vld [vmem:[%s12217_s0 + $0x68] sm:$0xff]   ;;  %v9143_v19 = vld [vmem:[%s12217_s0 + $0x70] sm:$0xff]  }
   0x6   :  { %v9144_v20 = vld [vmem:[%s12217_s0 + $0x78] sm:$0xff]   ;;  %v9145_v21 = vld [vmem:[%s12217_s0 + $0x80] sm:$0xff]   ;;  %v9146_v22 = vld [vmem:[%s12217_s0 + $0x88] sm:$0xff]  }
   0x7   :  { %v9147_v23 = vld [vmem:[%s12217_s0 + $0x90] sm:$0xff]   ;;  %v9148_v24 = vld [vmem:[%s12217_s0 + $0x98] sm:$0xff]   ;;  %v9149_v25 = vld [vmem:[%s12217_s0 + $0xa0] sm:$0xff]  }
   0x8   :  { %v9128_v0 = vld [vmem:[%s12238_s23] sm:$0x1f]   ;;  %v9150_v26 = vld [vmem:[%s12217_s0 + $0xa8] ss:$0 sps:$4 sm:$0x11]   ;;  %s9501_s0 = smov 48  }
   0x9   :  { %v293_v5 = vand.u32 %v9128_v0, %v291_v4  ;;  %v9153_v27 = vld [vmem:[%s12218_s3 + $0x4] ss:$12 sps:$4 sm:$0xff]   ;;  %v9162_v28 = vld [vmem:[%s12218_s3 + $0x8] ss:$12 sps:$4 sm:$0xff]   ;;  %v9698_v29 = vld [vmem:[%s12219_s2] ss:$0 sm:$0xff] }
   0xa   :  { %867 = vmatprep.mubr.bf16.mxu1 %v9153_v27  ;;  %s9502_s2 = smov 56  }
   0xb   :  { %8109 = vmatprep.subr.bf16.mxu0 %v293_v5 }
   0xc   :  { %8110 = vmatpush3.bf16.msra.mxu0 %v293_v5 }
   0xf   :  { %8112 = vmatmul.mubr.msk.bf16.vlgmr.msra.gmra.mrb[0].mxu0 %vm221_vm2, %v9130_v6 }
  0x10   :  { %8115 = vmatprep.mubr.msk.bf16.mxu0 %vm221_vm2, %v9131_v7 }
  0x17   :  { %8116 = vmatmul.mubr.msk.bf16.gmra.mrb[4].mxu0 %vm221_vm2, %v9132_v8 }
  0x18   :  { %8119 = vmatprep.mubr.msk.bf16.mxu0 %vm221_vm2, %v9133_v9 }
  0x1f   :  { %8120 = vmatmul.mubr.msk.bf16.gmra.mrb[8].mxu0 %vm221_vm2, %v9134_v10 }
  0x20   :  { %8123 = vmatprep.mubr.msk.bf16.mxu0 %vm221_vm2, %v9135_v11 }
  0x27   :  { %8124 = vmatmul.mubr.msk.bf16.gmra.mrb[12].mxu0 %vm221_vm2, %v9136_v12 }
  0x28   :  { %8127 = vmatprep.mubr.msk.bf16.mxu0 %vm221_vm2, %v9137_v13 }
  0x2f   :  { %8128 = vmatmul.mubr.msk.bf16.gmra.mrb[16].mxu0 %vm221_vm2, %v9138_v14 }
  0x30   :  { %8131 = vmatprep.mubr.msk.bf16.mxu0 %vm221_vm2, %v9139_v15 }
  0x37   :  { %8132 = vmatmul.mubr.msk.bf16.gmra.mrb[20].mxu0 %vm221_vm2, %v9140_v16 }
  0x38   :  { %8135 = vmatprep.mubr.msk.bf16.mxu0 %vm221_vm2, %v9141_v17 }
  0x3f   :  { %8136 = vmatmul.mubr.msk.bf16.gmra.mrb[24].mxu0 %vm221_vm2, %v9142_v18 }
  0x40   :  { %8139 = vmatprep.mubr.msk.bf16.mxu0 %vm221_vm2, %v9143_v19 }
  0x47   :  { %8140 = vmatmul.mubr.msk.bf16.gmra.mrb[28].mxu0 %vm221_vm2, %v9144_v20 }
  0x48   :  { %8143 = vmatprep.mubr.msk.bf16.mxu0 %vm221_vm2, %v9145_v21 }
  0x4f   :  { %8144 = vmatmul.mubr.msk.bf16.gmra.mrb[32].mxu0 %vm221_vm2, %v9146_v22 }
  0x50   :  { %8147 = vmatprep.mubr.msk.bf16.mxu0 %vm221_vm2, %v9147_v23 }
  0x57   :  { %8148 = vmatmul.mubr.msk.bf16.gmra.mrb[36].mxu0 %vm221_vm2, %v9148_v24 }
  0x58   :  { %8151 = vmatprep.mubr.msk.bf16.mxu0 %vm221_vm2, %v9149_v25 }
  0x5f   :  { %8152 = vmatmul.mubr.msk.bf16.gmra.mrb[40].mxu0 %vm221_vm2, %v9150_v26 }
  0x60   :  { %8167 = vmatprep.mubr.msk.bf16.mxu0 %vm806_vm3, %v9162_v28 }
  0xe2   :  { %v8113_v30 = vpop.f32.mrb[0].mxu0 }
  0xe3   :  { %v338_v31 = vadd.f32 %v8113_v30, %v9698_v29  ;;  %v329_v32 = vpop.f32.mrb[1].mxu0 }
  0xe4   :  { %v330_v33 = vadd.f32 %v9698_v29, %v329_v32  ;;  %v8114_v34 = vpop.f32.mrb[2].mxu0 }
  0xe5   :  { %vm505_vm4 = vcmp.ge.f32.partialorder %v338_v31, 0.0  ;;  %v548_v35 = vmul.f32 0.2, %v338_v31  ;;  %v341_v36 = vadd.f32 %v8114_v34, %v9698_v29  ;;  %v332_v37 = vpop.f32.mrb[3].mxu0 }
  0xe6   :  { %vm503_vm5 = vcmp.ge.f32.partialorder %v330_v33, 0.0  ;;  %v546_v38 = vmul.f32 0.2, %v330_v33  ;;  %v333_v39 = vadd.f32 %v9698_v29, %v332_v37 }
  0xe7   :  { %vm506_vm6 = vcmp.ge.f32.partialorder %v341_v36, 0.0  ;;  %v549_v40 = vmul.f32 0.2, %v341_v36  ;;  %v591_v42 = vsel %vm505_vm4, %v338_v31, %v548_v35 }
  0xe8   :  { %vm504_vm7 = vcmp.ge.f32.partialorder %v333_v39, 0.0  ;;  %v547_v41 = vmul.f32 0.2, %v333_v39  ;;  %v589_v44 = vsel %vm503_vm5, %v330_v33, %v546_v38 }
  0xe9   :  { %v592_v43 = vsel %vm506_vm6, %v341_v36, %v549_v40 }
  0xea   :  { %v9704_v45 = vpack.c.bf16 %v592_v43, %v591_v42  ;;  %v590_v46 = vsel %vm504_vm7, %v333_v39, %v547_v41  ;;  %v8117_v47 = vpop.f32.mrb[4].mxu0 }
  0xeb   :  { %v9706_v48 = vpack.c.bf16 %v590_v46, %v589_v44  ;;  %v354_v49 = vadd.f32 %v8117_v47, %v9698_v29  ;;  %v345_v50 = vpop.f32.mrb[5].mxu0 }
  0xec   :  { %v346_v51 = vadd.f32 %v9698_v29, %v345_v50  ;;  %v8118_v52 = vpop.f32.mrb[6].mxu0 }
  0xed   :  { %vm509_vm8 = vcmp.ge.f32.partialorder %v354_v49, 0.0  ;;  %v552_v53 = vmul.f32 0.2, %v354_v49  ;;  %v357_v54 = vadd.f32 %v8118_v52, %v9698_v29  ;;  %v348_v55 = vpop.f32.mrb[7].mxu0 }
  0xee   :  { %vm507_vm9 = vcmp.ge.f32.partialorder %v346_v51, 0.0  ;;  %v550_v56 = vmul.f32 0.2, %v346_v51  ;;  %v349_v57 = vadd.f32 %v9698_v29, %v348_v55 }
  0xef   :  { %vm510_vm10 = vcmp.ge.f32.partialorder %v357_v54, 0.0  ;;  %v553_v58 = vmul.f32 0.2, %v357_v54  ;;  %v595_v60 = vsel %vm509_vm8, %v354_v49, %v552_v53 }
  0xf0   :  { %vm508_vm11 = vcmp.ge.f32.partialorder %v349_v57, 0.0  ;;  %v551_v59 = vmul.f32 0.2, %v349_v57  ;;  %v593_v62 = vsel %vm507_vm9, %v346_v51, %v550_v56 }
  0xf1   :  { %v596_v61 = vsel %vm510_vm10, %v357_v54, %v553_v58 }
  0xf2   :  { %v9712_v63 = vpack.c.bf16 %v596_v61, %v595_v60  ;;  %v594_v0 = vsel %vm508_vm11, %v349_v57, %v551_v59  ;;  %v8121_v1 = vpop.f32.mrb[8].mxu0 }
  0xf3   :  { %v9714_v2 = vpack.c.bf16 %v594_v0, %v593_v62  ;;  %v370_v3 = vadd.f32 %v8121_v1, %v9698_v29  ;;  %v361_v4 = vpop.f32.mrb[9].mxu0 }
  0xf4   :  { %v362_v5 = vadd.f32 %v9698_v29, %v361_v4  ;;  %v8122_v6 = vpop.f32.mrb[10].mxu0 }
  0xf5   :  { %vm513_vm12 = vcmp.ge.f32.partialorder %v370_v3, 0.0  ;;  %v556_v7 = vmul.f32 0.2, %v370_v3  ;;  %v373_v8 = vadd.f32 %v8122_v6, %v9698_v29  ;;  %v364_v9 = vpop.f32.mrb[11].mxu0 }
  0xf6   :  { %vm511_vm13 = vcmp.ge.f32.partialorder %v362_v5, 0.0  ;;  %v554_v10 = vmul.f32 0.2, %v362_v5  ;;  %v365_v11 = vadd.f32 %v9698_v29, %v364_v9 }
  0xf7   :  { %vm514_vm14 = vcmp.ge.f32.partialorder %v373_v8, 0.0  ;;  %v557_v12 = vmul.f32 0.2, %v373_v8  ;;  %v599_v14 = vsel %vm513_vm12, %v370_v3, %v556_v7 }
  0xf8   :  { %vm512_vm15 = vcmp.ge.f32.partialorder %v365_v11, 0.0  ;;  %v555_v13 = vmul.f32 0.2, %v365_v11  ;;  %v597_v16 = vsel %vm511_vm13, %v362_v5, %v554_v10 }
  0xf9   :  { %v600_v15 = vsel %vm514_vm14, %v373_v8, %v557_v12 }
  0xfa   :  { %v9720_v17 = vpack.c.bf16 %v600_v15, %v599_v14  ;;  %v598_v18 = vsel %vm512_vm15, %v365_v11, %v555_v13  ;;  %v8125_v19 = vpop.f32.mrb[12].mxu0 }
  0xfb   :  { %v9722_v20 = vpack.c.bf16 %v598_v18, %v597_v16  ;;  %v386_v21 = vadd.f32 %v8125_v19, %v9698_v29  ;;  %v377_v22 = vpop.f32.mrb[13].mxu0 }
  0xfc   :  { %v378_v23 = vadd.f32 %v9698_v29, %v377_v22  ;;  %v8126_v24 = vpop.f32.mrb[14].mxu0 }
  0xfd   :  { %vm517_vm1 = vcmp.ge.f32.partialorder %v386_v21, 0.0  ;;  %v560_v25 = vmul.f32 0.2, %v386_v21  ;;  %v389_v26 = vadd.f32 %v8126_v24, %v9698_v29  ;;  %v380_v27 = vpop.f32.mrb[15].mxu0 }
  0xfe   :  { %vm515_vm2 = vcmp.ge.f32.partialorder %v378_v23, 0.0  ;;  %v558_v28 = vmul.f32 0.2, %v378_v23  ;;  %v381_v30 = vadd.f32 %v9698_v29, %v380_v27 }
  0xff   :  { %vm518_vm4 = vcmp.ge.f32.partialorder %v389_v26, 0.0  ;;  %v561_v31 = vmul.f32 0.2, %v389_v26  ;;  %v603_v33 = vsel %vm517_vm1, %v386_v21, %v560_v25 }
 0x100   :  { %vm516_vm5 = vcmp.ge.f32.partialorder %v381_v30, 0.0  ;;  %v559_v32 = vmul.f32 0.2, %v381_v30  ;;  %v601_v35 = vsel %vm515_vm2, %v378_v23, %v558_v28 }
 0x101   :  { %v604_v34 = vsel %vm518_vm4, %v389_v26, %v561_v31 }
 0x102   :  { %v9728_v36 = vpack.c.bf16 %v604_v34, %v603_v33  ;;  %v602_v37 = vsel %vm516_vm5, %v381_v30, %v559_v32  ;;  %v8129_v38 = vpop.f32.mrb[16].mxu0 }
 0x103   :  { %v9730_v39 = vpack.c.bf16 %v602_v37, %v601_v35  ;;  %v402_v40 = vadd.f32 %v8129_v38, %v9698_v29  ;;  %v393_v41 = vpop.f32.mrb[17].mxu0 }
 0x104   :  { %v394_v42 = vadd.f32 %v9698_v29, %v393_v41  ;;  %v8130_v43 = vpop.f32.mrb[18].mxu0 }
 0x105   :  { %vm521_vm6 = vcmp.ge.f32.partialorder %v402_v40, 0.0  ;;  %v564_v44 = vmul.f32 0.2, %v402_v40  ;;  %v405_v46 = vadd.f32 %v8130_v43, %v9698_v29  ;;  %v396_v47 = vpop.f32.mrb[19].mxu0 }
 0x106   :  { %vm519_vm7 = vcmp.ge.f32.partialorder %v394_v42, 0.0  ;;  %v562_v49 = vmul.f32 0.2, %v394_v42  ;;  %v397_v50 = vadd.f32 %v9698_v29, %v396_v47 }
 0x107   :  { %vm522_vm8 = vcmp.ge.f32.partialorder %v405_v46, 0.0  ;;  %v565_v51 = vmul.f32 0.2, %v405_v46  ;;  %v607_v53 = vsel %vm521_vm6, %v402_v40, %v564_v44 }
 0x108   :  { %vm520_vm9 = vcmp.ge.f32.partialorder %v397_v50, 0.0  ;;  %v563_v52 = vmul.f32 0.2, %v397_v50  ;;  %v605_v55 = vsel %vm519_vm7, %v394_v42, %v562_v49 }
 0x109   :  { %v608_v54 = vsel %vm522_vm8, %v405_v46, %v565_v51 }
 0x10a   :  { %v9736_v56 = vpack.c.bf16 %v608_v54, %v607_v53  ;;  %v606_v57 = vsel %vm520_vm9, %v397_v50, %v563_v52  ;;  %v8133_v58 = vpop.f32.mrb[20].mxu0 }
 0x10b   :  { %v9738_v59 = vpack.c.bf16 %v606_v57, %v605_v55  ;;  %v418_v60 = vadd.f32 %v8133_v58, %v9698_v29  ;;  %v409_v61 = vpop.f32.mrb[21].mxu0 }
 0x10c   :  { %v410_v62 = vadd.f32 %v9698_v29, %v409_v61  ;;  %v8134_v0 = vpop.f32.mrb[22].mxu0 }
 0x10d   :  { %vm525_vm10 = vcmp.ge.f32.partialorder %v418_v60, 0.0  ;;  %v568_v1 = vmul.f32 0.2, %v418_v60  ;;  %v421_v3 = vadd.f32 %v8134_v0, %v9698_v29  ;;  %v412_v4 = vpop.f32.mrb[23].mxu0  ;;  %7278 = vmatprep.subr.bf16.mxu1 %v9738_v59 }
 0x10e   :  { %vm523_vm11 = vcmp.ge.f32.partialorder %v410_v62, 0.0  ;;  %v566_v5 = vmul.f32 0.2, %v410_v62  ;;  %v413_v6 = vadd.f32 %v9698_v29, %v412_v4  ;;  %7279 = vmatpush3.bf16.msra.mxu1 %v9706_v48 }
 0x10f   :  { %vm526_vm12 = vcmp.ge.f32.partialorder %v421_v3, 0.0  ;;  %v569_v7 = vmul.f32 0.2, %v421_v3  ;;  %7280 = vmatprep.subr.bf16.mxu1 %v9736_v56  ;;  %v611_v9 = vsel %vm525_vm10, %v418_v60, %v568_v1 }
 0x110   :  { %vm524_vm13 = vcmp.ge.f32.partialorder %v413_v6, 0.0  ;;  %v567_v8 = vmul.f32 0.2, %v413_v6  ;;  %v609_v11 = vsel %vm523_vm11, %v410_v62, %v566_v5 }
 0x111   :  { %v612_v10 = vsel %vm526_vm12, %v421_v3, %v569_v7 }
 0x112   :  { %v9747_v12 = vpack.c.bf16 %v612_v10, %v611_v9  ;;  %v610_v13 = vsel %vm524_vm13, %v413_v6, %v567_v8  ;;  %v8137_v14 = vpop.f32.mrb[24].mxu0  ;;  %7281 = vmatpush3.bf16.msra.mxu1 %v9704_v45  ;;  %v9151_v10 = vld [vmem:[%s12218_s3] ss:$12 sps:$4 sm:$0xff]  }
 0x113   :  { %v9750_v15 = vpack.c.bf16 %v610_v13, %v609_v11  ;;  %v434_v16 = vadd.f32 %v8137_v14, %v9698_v29  ;;  %v425_v18 = vpop.f32.mrb[25].mxu0 }
 0x114   :  { %v426_v19 = vadd.f32 %v9698_v29, %v425_v18  ;;  %v8138_v21 = vpop.f32.mrb[26].mxu0 }
 0x115   :  { %vm529_vm14 = vcmp.ge.f32.partialorder %v434_v16, 0.0  ;;  %v572_v22 = vmul.f32 0.2, %v434_v16  ;;  %v437_v23 = vadd.f32 %v8138_v21, %v9698_v29  ;;  %v428_v24 = vpop.f32.mrb[27].mxu0  ;;  %7282 = vmatprep.subr.bf16.mxu1 %v9750_v15 }
 0x116   :  { %vm527_vm15 = vcmp.ge.f32.partialorder %v426_v19, 0.0  ;;  %v570_v25 = vmul.f32 0.2, %v426_v19  ;;  %v429_v26 = vadd.f32 %v9698_v29, %v428_v24  ;;  %7283 = vmatpush3.bf16.msra.mxu1 %v9714_v2 }
 0x117   :  { %vm530_vm1 = vcmp.ge.f32.partialorder %v437_v23, 0.0  ;;  %v573_v27 = vmul.f32 0.2, %v437_v23  ;;  %7284 = vmatprep.subr.bf16.mxu1 %v9747_v12  ;;  %v615_v30 = vsel %vm529_vm14, %v434_v16, %v572_v22 }
 0x118   :  { %vm528_vm2 = vcmp.ge.f32.partialorder %v429_v26, 0.0  ;;  %v571_v28 = vmul.f32 0.2, %v429_v26  ;;  %v613_v32 = vsel %vm527_vm15, %v426_v19, %v570_v25 }
 0x119   :  { %v616_v31 = vsel %vm530_vm1, %v437_v23, %v573_v27 }
 0x11a   :  { %v9759_v33 = vpack.c.bf16 %v616_v31, %v615_v30  ;;  %v614_v34 = vsel %vm528_vm2, %v429_v26, %v571_v28  ;;  %v8141_v35 = vpop.f32.mrb[28].mxu0  ;;  %7285 = vmatpush3.bf16.msra.mxu1 %v9712_v63  ;;  %v9154_v26 = vld [vmem:[%s12218_s3 + $0x1c] ss:$12 sps:$4 sm:$0xff]  }
 0x11b   :  { %v9762_v37 = vpack.c.bf16 %v614_v34, %v613_v32  ;;  %v450_v38 = vadd.f32 %v8141_v35, %v9698_v29  ;;  %v441_v40 = vpop.f32.mrb[29].mxu0 }
 0x11c   :  { %v442_v41 = vadd.f32 %v9698_v29, %v441_v40  ;;  %v8142_v42 = vpop.f32.mrb[30].mxu0 }
 0x11d   :  { %v576_v43 = vmul.f32 0.2, %v450_v38  ;;  %v453_v44 = vadd.f32 %v8142_v42, %v9698_v29  ;;  %v444_v46 = vpop.f32.mrb[31].mxu0  ;;  %7286 = vmatprep.subr.bf16.mxu1 %v9762_v37  ;;  %vm533_vm4 = vcmp.ge.f32.partialorder %v450_v38, 0.0  ;;  %v9156_v42 = vld [vmem:[%s12218_s3 + $0x18] ss:$12 sps:$4 sm:$0xff]  }
 0x11e   :  { %v574_v47 = vmul.f32 0.2, %v442_v41  ;;  %v445_v49 = vadd.f32 %v9698_v29, %v444_v46  ;;  %7287 = vmatpush3.bf16.msra.mxu1 %v9722_v20  ;;  %vm531_vm5 = vcmp.ge.f32.partialorder %v442_v41, 0.0 }
 0x11f   :  { %vm534_vm6 = vcmp.ge.f32.partialorder %v453_v44, 0.0  ;;  %v577_v50 = vmul.f32 0.2, %v453_v44  ;;  %7288 = vmatprep.subr.bf16.mxu1 %v9759_v33  ;;  %v619_v52 = vsel %vm533_vm4, %v450_v38, %v576_v43 }
 0x120   :  { %vm532_vm7 = vcmp.ge.f32.partialorder %v445_v49, 0.0  ;;  %v575_v51 = vmul.f32 0.2, %v445_v49  ;;  %v617_v54 = vsel %vm531_vm5, %v442_v41, %v574_v47  ;;  %vm831_vm5 = vcmask 1040384  }
 0x121   :  { %v620_v53 = vsel %vm534_vm6, %v453_v44, %v577_v50  ;;  %vm4509_vm6 = vcmask 64512  }
 0x122   :  { %v9771_v55 = vpack.c.bf16 %v620_v53, %v619_v52  ;;  %v618_v57 = vsel %vm532_vm7, %v445_v49, %v575_v51  ;;  %v8145_v58 = vpop.f32.mrb[32].mxu0  ;;  %7289 = vmatpush3.bf16.msra.mxu1 %v9720_v17  ;;  %v9157_v53 = vld [vmem:[%s12218_s3 + $0x34] ss:$12 sps:$4 sm:$0xff]   ;;  %vm4543_vm7 = vcmask 195584  }
 0x123   :  { %v9774_v60 = vpack.c.bf16 %v618_v57, %v617_v54  ;;  %v466_v61 = vadd.f32 %v8145_v58, %v9698_v29  ;;  %v457_v62 = vpop.f32.mrb[33].mxu0 }
 0x124   :  { %v458_v0 = vadd.f32 %v9698_v29, %v457_v62  ;;  %v8146_v1 = vpop.f32.mrb[34].mxu0 }
 0x125   :  { %vm537_vm8 = vcmp.ge.f32.partialorder %v466_v61, 0.0  ;;  %v580_v3 = vmul.f32 0.2, %v466_v61  ;;  %v469_v4 = vadd.f32 %v8146_v1, %v9698_v29  ;;  %v460_v5 = vpop.f32.mrb[35].mxu0  ;;  %7290 = vmatprep.subr.bf16.mxu1 %v9774_v60 }
 0x126   :  { %vm535_vm9 = vcmp.ge.f32.partialorder %v458_v0, 0.0  ;;  %v578_v6 = vmul.f32 0.2, %v458_v0  ;;  %v461_v7 = vadd.f32 %v9698_v29, %v460_v5  ;;  %7291 = vmatpush3.bf16.msra.mxu1 %v9730_v39 }
 0x127   :  { %v623_v8 = vsel %vm537_vm8, %v466_v61, %v580_v3  ;;  %vm538_vm10 = vcmp.ge.f32.partialorder %v469_v4, 0.0  ;;  %v581_v9 = vmul.f32 0.2, %v469_v4  ;;  %7292 = vmatprep.subr.bf16.mxu1 %v9771_v55  ;;  %v9159_v3 = vld [vmem:[%s12218_s3 + $0x30] ss:$12 sps:$4 sm:$0xff]   ;;  %vm12235_vm8 = vcmask 261120  }
 0x128   :  { %v621_v11 = vsel %vm535_vm9, %v458_v0, %v578_v6  ;;  %vm536_vm11 = vcmp.ge.f32.partialorder %v461_v7, 0.0  ;;  %v579_v13 = vmul.f32 0.2, %v461_v7  ;;  %v9160_v6 = vld [vmem:[%s12218_s3 + $0x4c] ss:$12 sps:$4 sm:$0xff]   ;;  %vm12234_vm9 = vcmask 392192  }
 0x129   :  { %v624_v14 = vsel %vm538_vm10, %v469_v4, %v581_v9  ;;  %v9164_v9 = vld [vmem:[%s12218_s3 + $0x20] ss:$12 sps:$4 sm:$0xff]   ;;  %vm4611_vm10 = vcmask 457728  }
 0x12a   :  { %v9786_v16 = vpack.c.bf16 %v624_v14, %v623_v8  ;;  %v622_v18 = vsel %vm536_vm11, %v461_v7, %v579_v13  ;;  %v8149_v19 = vpop.f32.mrb[36].mxu0  ;;  %7293 = vmatpush3.bf16.msra.mxu1 %v9728_v36  ;;  %v9163_v8 = vld [vmem:[%s12218_s3 + $0x48] ss:$12 sps:$4 sm:$0xff]   ;;  %v9168_v13 = vld [vmem:[%s12218_s3 + $0x60] ss:$12 sps:$4 sm:$0xff]   ;;  %vm12233_vm11 = vcmask 523264  }
 0x12b   :  { %v9789_v21 = vpack.c.bf16 %v622_v18, %v621_v11  ;;  %v482_v22 = vadd.f32 %v8149_v19, %v9698_v29  ;;  %v473_v23 = vpop.f32.mrb[37].mxu0  ;;  %7356 = vmatprep.subr.bf16.mxu1 %v9738_v59  ;;  %v9167_v11 = vld [vmem:[%s12218_s3 + $0x38] ss:$12 sps:$4 sm:$0xff]   ;;  %v9169_v14 = vld [vmem:[%s12218_s3 + $0x50] ss:$12 sps:$4 sm:$0xff]  }
 0x12c   :  { %v474_v24 = vadd.f32 %v9698_v29, %v473_v23  ;;  %v8150_v25 = vpop.f32.mrb[38].mxu0  ;;  %v9170_v18 = vld [vmem:[%s12218_s3 + $0x7c] ss:$12 sps:$4 sm:$0xff]   ;;  %v9174_v23 = vld [vmem:[%s12218_s3 + $0x80] ss:$12 sps:$4 sm:$0xff]  }
 0x12d   :  { %vm541_vm12 = vcmp.ge.f32.partialorder %v482_v22, 0.0  ;;  %v584_v27 = vmul.f32 0.2, %v482_v22  ;;  %v485_v28 = vadd.f32 %v8150_v25, %v9698_v29  ;;  %v476_v30 = vpop.f32.mrb[39].mxu0  ;;  %868 = vmatmul.mubr.bf16.vlgmr.msra.gmra.mrb[0].mxu1 %v9151_v10  ;;  %8155 = vmatprep.subr.bf16.mxu0 %v9789_v21  ;;  %v9165_v10 = vld [vmem:[%s12218_s3 + $0x64] ss:$12 sps:$4 sm:$0xff]  }
 0x12e   :  { %vm539_vm13 = vcmp.ge.f32.partialorder %v474_v24, 0.0  ;;  %v582_v31 = vmul.f32 0.2, %v474_v24  ;;  %v477_v32 = vadd.f32 %v9698_v29, %v476_v30  ;;  %8156 = vmatpush3.bf16.msra.mxu0 %v9789_v21  ;;  %7357 = vmatpush3.bf16.msra.mxu1 %v9706_v48  ;;  %v9172_v19 = vld [vmem:[%s12218_s3 + $0x68] ss:$12 sps:$4 sm:$0xff]  }
 0x12f   :  { %vm542_vm14 = vcmp.ge.f32.partialorder %v485_v28, 0.0  ;;  %v585_v34 = vmul.f32 0.2, %v485_v28  ;;  %v627_v35 = vsel %vm541_vm12, %v482_v22, %v584_v27  ;;  %8157 = vmatprep.subr.bf16.mxu0 %v9786_v16  ;;  %7358 = vmatprep.subr.bf16.mxu1 %v9736_v56  ;;  %v9173_v22 = vld [vmem:[%s12218_s3 + $0x78] ss:$12 sps:$4 sm:$0xff]   ;;  %vm4696_vm12 = vcmask 588800  }
 0x130   :  { %vm540_vm15 = vcmp.ge.f32.partialorder %v477_v32, 0.0  ;;  %v583_v38 = vmul.f32 0.2, %v477_v32  ;;  %v625_v40 = vsel %vm539_vm13, %v474_v24, %v582_v31  ;;  %875 = vmatprep.mubr.bf16.mxu1 %v9154_v26  ;;  %v9175_v24 = vld [vmem:[%s12218_s3 + $0x94] ss:$12 sps:$4 sm:$0xff]  }
 0x131   :  { %v628_v41 = vsel %vm542_vm14, %v485_v28, %v585_v34  ;;  %v9177_v25 = vld [vmem:[%s12218_s3 + $0x98] ss:$12 sps:$4 sm:$0xff]   ;;  %v9178_v26 = vld [vmem:[%s12218_s3 + $0x90] ss:$12 sps:$4 sm:$0xff]   ;;  %v9182_v30 = vld [vmem:[%s12218_s3 + $0xc8] ss:$12 sps:$4 sm:$0xff]  }
 0x132   :  { %v9807_v43 = vpack.c.bf16 %v628_v41, %v627_v35  ;;  %v626_v44 = vsel %vm540_vm15, %v477_v32, %v583_v38  ;;  %v8153_v46 = vpop.f32.mrb[40].mxu0  ;;  %8158 = vmatpush3.bf16.msra.mxu0 %v9786_v16  ;;  %7359 = vmatpush3.bf16.msra.mxu1 %v9704_v45  ;;  %v9179_v27 = vld [vmem:[%s12218_s3 + $0xb0] ss:$12 sps:$4 sm:$0xff]   ;;  %v9180_v28 = vld [vmem:[%s12218_s3 + $0xac] ss:$12 sps:$4 sm:$0xff]  }
 0x133   :  { %v9811_v47 = vpack.c.bf16 %v626_v44, %v625_v40  ;;  %v498_v49 = vadd.f32 %v8153_v46, %v9698_v29  ;;  %v489_v50 = vpop.f32.mrb[41].mxu0  ;;  %7360 = vmatprep.subr.bf16.mxu1 %v9750_v15  ;;  %v9183_v31 = vld [vmem:[%s12218_s3 + $0xa8] ss:$12 sps:$4 sm:$0xff]   ;;  %v9184_v32 = vld [vmem:[%s12218_s3 + $0xe0] ss:$12 sps:$4 sm:$0xff]  }
 0x134   :  { %v490_v51 = vadd.f32 %v9698_v29, %v489_v50  ;;  %v8154_v52 = vpop.f32.mrb[42].mxu0  ;;  %v9187_v34 = vld [vmem:[%s12218_s3 + $0xc4] ss:$12 sps:$4 sm:$0xff]   ;;  %v9185_v38 = vld [vmem:[%s12218_s3 + $0xc0] ss:$12 sps:$4 sm:$0xff]  }
 0x135   :  { %vm545_vm1 = vcmp.ge.f32.partialorder %v498_v49, 0.0  ;;  %v588_v54 = vmul.f32 0.2, %v498_v49  ;;  %v492_v57 = vpop.f32.mrb[43].mxu0  ;;  %876 = vmatmul.mubr.bf16.gmra.mrb[4].mxu1 %v9156_v42  ;;  %8159 = vmatprep.subr.bf16.mxu0 %v9811_v47  ;;  %v9188_v35 = vld [vmem:[%s12218_s3 + $0xf8] ss:$12 sps:$4 sm:$0xff]  }
 0x136   :  { %vm543_vm2 = vcmp.ge.f32.partialorder %v490_v51, 0.0  ;;  %v586_v58 = vmul.f32 0.2, %v490_v51  ;;  %v493_v61 = vadd.f32 %v9698_v29, %v492_v57  ;;  %8160 = vmatpush3.bf16.msra.mxu0 %v9811_v47  ;;  %7361 = vmatpush3.bf16.msra.mxu1 %v9714_v2  ;;  %v9189_v40 = vld [vmem:[%s12218_s3 + $0x110] ss:$12 sps:$4 sm:$0xff]  }
 0x137   :  { %7362 = vmatprep.subr.bf16.mxu1 %v9747_v12  ;;  %8161 = vmatprep.subr.bf16.mxu0 %v9807_v43  ;;  %v631_v62 = vsel %vm545_vm1, %v498_v49, %v588_v54  ;;  %v9190_v41 = vld [vmem:[%s12218_s3 + $0xdc] ss:$12 sps:$4 sm:$0xff]   ;;  %v9193_v44 = vld [vmem:[%s12218_s3 + $0xd8] ss:$12 sps:$4 sm:$0xff]   ;;  %v9194_v46 = vld [vmem:[%s12218_s3 + $0x140] ss:$12 sps:$4 sm:$0xff]  }
 0x138   :  { %v629_v0 = vsel %vm543_vm2, %v490_v51, %v586_v58  ;;  %vm544_vm4 = vcmp.ge.f32.partialorder %v493_v61, 0.0  ;;  %v587_v1 = vmul.f32 0.2, %v493_v61  ;;  %883 = vmatprep.mubr.bf16.mxu1 %v9157_v53  ;;  %v9830_v29 = vpack.c.bf16 %v631_v62, %v631_v62  ;;  %v9192_v42 = vld [vmem:[%s12218_s3 + $0x128] ss:$12 sps:$4 sm:$0xff]  }
 0x139   :  { %v9195_v49 = vld [vmem:[%s12218_s3 + $0xf4] ss:$12 sps:$4 sm:$0xff]   ;;  %v9197_v50 = vld [vmem:[%s12218_s3 + $0x158] ss:$12 sps:$4 sm:$0xff]   ;;  %v9198_v51 = vld [vmem:[%s12218_s3 + $0xf0] ss:$12 sps:$4 sm:$0xff]  }
 0x13a   :  { %v630_v4 = vsel %vm544_vm4, %v493_v61, %v587_v1  ;;  %8162 = vmatpush3.bf16.msra.mxu0 %v9807_v43  ;;  %7363 = vmatpush3.bf16.msra.mxu1 %v9712_v63  ;;  %v9846_v7 = vsel %vm831_vm5, %v9830_v29, 0  ;;  %v9199_v52 = vld [vmem:[%s12218_s3 + $0x170] ss:$12 sps:$4 sm:$0xff]   ;;  %v9200_v53 = vld [vmem:[%s12218_s3 + $0x10c] ss:$12 sps:$4 sm:$0xff]  }
 0x13b   :  { %v9832_v5 = vpack.c.bf16 %v630_v4, %v629_v0  ;;  %7364 = vmatprep.subr.bf16.mxu1 %v9762_v37  ;;  %v9204_v54 = vld [vmem:[%s12218_s3 + $0x184] ss:$12 sps:$4 sm:$0xff]   ;;  %v9202_v57 = vld [vmem:[%s12218_s3 + $0x180] ss:$12 sps:$4 sm:$0xff]   ;;  %v9205_v58 = vld [vmem:[%s12218_s3 + $0x108] ss:$12 sps:$4 sm:$0xff]  }
 0x13c   :  { %v9206_v61 = vld [vmem:[%s12218_s3 + $0x124] ss:$12 sps:$4 sm:$0xff]   ;;  %v9208_v62 = vld [vmem:[%s12218_s3 + $0x19c] ss:$12 sps:$4 sm:$0xff]   ;;  %v9210_v0 = vld [vmem:[%s12218_s3 + $0x120] ss:$12 sps:$4 sm:$0xff]  }
 0x13d   :  { %884 = vmatmul.mubr.bf16.gmra.mrb[8].mxu1 %v9159_v3  ;;  %8163 = vmatprep.subr.bf16.mxu0 %v9832_v5  ;;  %v9211_v1 = vld [vmem:[%s12218_s3 + $0x198] ss:$12 sps:$4 sm:$0xff]   ;;  %v9212_v3 = vld [vmem:[%s12218_s3 + $0x13c] ss:$12 sps:$4 sm:$0xff]   ;;  %v9214_v4 = vld [vmem:[%s12218_s3 + $0x1b4] ss:$12 sps:$4 sm:$0xff]  }
 0x13e   :  { %8164 = vmatpush3.bf16.msra.mxu0 %v9832_v5  ;;  %7365 = vmatpush3.bf16.msra.mxu1 %v9722_v20 }
 0x13f   :  { %7366 = vmatprep.subr.bf16.mxu1 %v9759_v33  ;;  %8675 = vmatprep.subr.msk.bf16.mxu0 %vm831_vm5, %v9830_v29 }
 0x140   :  { %891 = vmatprep.mubr.bf16.mxu1 %v9160_v6  ;;  %v9216_v6 = vld [vmem:[%s12218_s3 + $0x138] ss:$12 sps:$4 sm:$0xff]  }
 0x142   :  { %8166 = vmatpush3.bf16.msra.mxu0 %v9846_v7  ;;  %7367 = vmatpush3.bf16.msra.mxu1 %v9720_v17 }
 0x143   :  { %7368 = vmatprep.subr.bf16.mxu1 %v9774_v60  ;;  %8183 = vmatprep.subr.bf16.mxu0 %v9789_v21 }
 0x145   :  { %892 = vmatmul.mubr.bf16.gmra.mrb[12].mxu1 %v9163_v8  ;;  %8168 = vmatmul.mubr.msk.bf16.vlgmr.msra.gmra.mrb[44].mxu0 %vm806_vm3, %v9164_v9  ;;  %v9217_v8 = vld [vmem:[%s12218_s3 + $0x1b0] ss:$12 sps:$4 sm:$0xff]   ;;  %v9218_v9 = vld [vmem:[%s12218_s3 + $0x154] ss:$12 sps:$4 sm:$0xff]  }
 0x146   :  { %7369 = vmatpush3.bf16.msra.mxu1 %v9730_v39  ;;  %8184 = vmatpush3.bf16.msra.mxu0 %v9789_v21 }
 0x147   :  { %7370 = vmatprep.subr.bf16.mxu1 %v9771_v55  ;;  %8185 = vmatprep.subr.bf16.mxu0 %v9786_v16 }
 0x148   :  { %899 = vmatprep.mubr.bf16.mxu1 %v9165_v10  ;;  %8171 = vmatprep.mubr.msk.bf16.mxu0 %vm806_vm3, %v9167_v11  ;;  %v9220_v10 = vld [vmem:[%s12218_s3 + $0x1cc] ss:$12 sps:$4 sm:$0xff]   ;;  %v9222_v11 = vld [vmem:[%s12218_s3 + $0x150] ss:$12 sps:$4 sm:$0xff]  }
 0x14a   :  { %7371 = vmatpush3.bf16.msra.mxu1 %v9728_v36  ;;  %8186 = vmatpush3.bf16.msra.mxu0 %v9786_v16 }
 0x14b   :  { %8187 = vmatprep.subr.bf16.mxu0 %v9811_v47  ;;  %8211 = vmatprep.subr.bf16.mxu1 %v9789_v21 }
 0x14d   :  { %900 = vmatmul.mubr.bf16.gmra.mrb[16].mxu1 %v9168_v13  ;;  %8172 = vmatmul.mubr.msk.bf16.gmra.mrb[48].mxu0 %vm806_vm3, %v9169_v14  ;;  %v9223_v13 = vld [vmem:[%s12218_s3 + $0x1c8] ss:$12 sps:$4 sm:$0xff]   ;;  %v9224_v14 = vld [vmem:[%s12218_s3 + $0x16c] ss:$12 sps:$4 sm:$0xff]  }
 0x14e   :  { %8188 = vmatpush3.bf16.msra.mxu0 %v9811_v47  ;;  %907 = vmatprep.mubr.bf16.mxu1 %v9170_v18  ;;  %v9226_v18 = vld [vmem:[%s12218_s3 + $0x1e4] ss:$12 sps:$4 sm:$0xff]  }
 0x14f   :  { %8189 = vmatprep.subr.bf16.mxu0 %v9807_v43  ;;  %8175 = vmatprep.mubr.msk.bf16.mxu0 %vm806_vm3, %v9172_v19  ;;  %v9228_v19 = vld [vmem:[%s12218_s3 + $0x168] ss:$12 sps:$4 sm:$0xff]  }
 0x152   :  { %8190 = vmatpush3.bf16.msra.mxu0 %v9807_v43 }
 0x153   :  { %8191 = vmatprep.subr.bf16.mxu0 %v9832_v5 }
 0x155   :  { %908 = vmatmul.mubr.bf16.gmra.mrb[20].mxu1 %v9173_v22  ;;  %8176 = vmatmul.mubr.msk.bf16.gmra.mrb[52].mxu0 %vm806_vm3, %v9174_v23  ;;  %v9229_v22 = vld [vmem:[%s12218_s3 + $0x1e0] ss:$12 sps:$4 sm:$0xff]   ;;  %v9230_v23 = vld [vmem:[%s12218_s3 + $0x1fc] ss:$12 sps:$4 sm:$0xff]  }
 0x156   :  { %8192 = vmatpush3.bf16.msra.mxu0 %v9832_v5  ;;  %915 = vmatprep.mubr.bf16.mxu1 %v9175_v24  ;;  %v9232_v24 = vld [vmem:[%s12218_s3 + $0x188] ss:$12 sps:$4 sm:$0xff]  }
 0x157   :  { %8676 = vmatprep.subr.msk.bf16.mxu0 %vm831_vm5, %v9830_v29  ;;  %8179 = vmatprep.mubr.msk.bf16.mxu0 %vm806_vm3, %v9177_v25  ;;  %v9233_v25 = vld [vmem:[%s12218_s3 + $0x1f8] ss:$12 sps:$4 sm:$0xff]  }
 0x15a   :  { %8194 = vmatpush3.bf16.msra.mxu0 %v9846_v7 }
 0x15b   :  { %7434 = vmatprep.subr.bf16.mxu0 %v9738_v59 }
 0x15d   :  { %916 = vmatmul.mubr.bf16.gmra.mrb[24].mxu1 %v9178_v26  ;;  %8180 = vmatmul.mubr.msk.bf16.gmra.mrb[56].mxu0 %vm806_vm3, %v9179_v27  ;;  %v9234_v26 = vld [vmem:[%s12218_s3 + $0x1a0] ss:$12 sps:$4 sm:$0xff]  }
 0x15e   :  { %923 = vmatprep.mubr.bf16.mxu1 %v9180_v28  ;;  %8195 = vmatprep.mubr.msk.bf16.mxu0 %vm806_vm3, %v9182_v30  ;;  %v9235_v27 = vld [vmem:[%s12218_s3 + $0x214] ss:$12 sps:$4 sm:$0xff]   ;;  %v9237_v28 = vld [vmem:[%s12218_s3 + $0x1b8] ss:$12 sps:$4 sm:$0xff]   ;;  %v9238_v30 = vld [vmem:[%s12218_s3 + $0x210] ss:$12 sps:$4 sm:$0xff]  }
 0x165   :  { %924 = vmatmul.mubr.bf16.gmra.mrb[28].mxu1 %v9183_v31  ;;  %8196 = vmatmul.mubr.msk.bf16.vlgmr.msra.gmra.mrb[60].mxu0 %vm806_vm3, %v9184_v32  ;;  %v9239_v31 = vld [vmem:[%s12218_s3 + $0x1d0] ss:$12 sps:$4 sm:$0xff]   ;;  %v9240_v32 = vld [vmem:[%s12218_s3 + $0x22c] ss:$12 sps:$4 sm:$0xff]  }
 0x166   :  { %7435 = vmatpush3.bf16.msra.mxu0 %v9706_v48  ;;  %1238 = vmatprep.mubr.bf16.mxu1 %v9187_v34  ;;  %v9242_v34 = vld [vmem:[%s12218_s3 + $0x1e8] ss:$12 sps:$4 sm:$0xff]  }
 0x167   :  { %7436 = vmatprep.subr.bf16.mxu0 %v9736_v56  ;;  %8199 = vmatprep.mubr.msk.bf16.mxu0 %vm806_vm3, %v9188_v35  ;;  %v9243_v35 = vld [vmem:[%s12218_s3 + $0x228] ss:$12 sps:$4 sm:$0xff]  }
 0x16a   :  { %7437 = vmatpush3.bf16.msra.mxu0 %v9704_v45 }
 0x16b   :  { %7438 = vmatprep.subr.bf16.mxu0 %v9750_v15 }
 0x16d   :  { %1239 = vmatmul.mubr.bf16.vlgmr.msra.gmra.mrb[32].mxu1 %v9185_v38  ;;  %8200 = vmatmul.mubr.msk.bf16.gmra.mrb[64].mxu0 %vm806_vm3, %v9189_v40  ;;  %v9244_v38 = vld [vmem:[%s12218_s3 + $0x200] ss:$12 sps:$4 sm:$0xff]   ;;  %v9245_v40 = vld [vmem:[%s12218_s3 + $0x218] ss:$12 sps:$4 sm:$0xff]  }
 0x16e   :  { %7439 = vmatpush3.bf16.msra.mxu0 %v9714_v2  ;;  %8212 = vmatpush3.bf16.msra.mxu1 %v9789_v21 }
 0x16f   :  { %7440 = vmatprep.subr.bf16.mxu0 %v9747_v12  ;;  %8213 = vmatprep.subr.bf16.mxu1 %v9786_v16 }
 0x170   :  { %1246 = vmatprep.mubr.bf16.mxu1 %v9190_v41  ;;  %8203 = vmatprep.mubr.msk.bf16.mxu0 %vm806_vm3, %v9192_v42  ;;  %v9246_v41 = vld [vmem:[%s12218_s3 + $0x248] ss:$12 sps:$4 sm:$0xff]   ;;  %v9247_v42 = vld [vmem:[%s12218_s3 + $0x230] ss:$12 sps:$4 sm:$0xff]  }
 0x172   :  { %7441 = vmatpush3.bf16.msra.mxu0 %v9712_v63  ;;  %8214 = vmatpush3.bf16.msra.mxu1 %v9786_v16 }
 0x173   :  { %7442 = vmatprep.subr.bf16.mxu0 %v9762_v37  ;;  %8215 = vmatprep.subr.bf16.mxu1 %v9811_v47 }
 0x175   :  { %1247 = vmatmul.mubr.bf16.gmra.mrb[36].mxu1 %v9193_v44  ;;  %8204 = vmatmul.mubr.msk.bf16.gmra.mrb[68].mxu0 %vm806_vm3, %v9194_v46  ;;  %v9248_v44 = vld [vmem:[%s12218_s3 + $0x260] ss:$12 sps:$4 sm:$0xff]   ;;  %v9251_v46 = vld [vmem:[%s12218_s3 + $0x244] ss:$12 sps:$4 sm:$0xff]  }
 0x176   :  { %7443 = vmatpush3.bf16.msra.mxu0 %v9722_v20  ;;  %8216 = vmatpush3.bf16.msra.mxu1 %v9811_v47 }
 0x177   :  { %7444 = vmatprep.subr.bf16.mxu0 %v9759_v33  ;;  %8217 = vmatprep.subr.bf16.mxu1 %v9807_v43 }
 0x178   :  { %1254 = vmatprep.mubr.bf16.mxu1 %v9195_v49  ;;  %8207 = vmatprep.mubr.msk.bf16.mxu0 %vm806_vm3, %v9197_v50  ;;  %v9252_v49 = vld [vmem:[%s12218_s3 + $0x278] ss:$12 sps:$4 sm:$0xff]   ;;  %v9249_v50 = vld [vmem:[%s12218_s3 + $0x240] ss:$12 sps:$4 sm:$0xff]  }
 0x17a   :  { %7445 = vmatpush3.bf16.msra.mxu0 %v9720_v17  ;;  %8218 = vmatpush3.bf16.msra.mxu1 %v9807_v43 }
 0x17b   :  { %7446 = vmatprep.subr.bf16.mxu0 %v9774_v60  ;;  %8219 = vmatprep.subr.bf16.mxu1 %v9832_v5 }
 0x17d   :  { %1255 = vmatmul.mubr.bf16.gmra.mrb[40].mxu1 %v9198_v51  ;;  %8208 = vmatmul.mubr.msk.bf16.gmra.mrb[72].mxu0 %vm806_vm3, %v9199_v52  ;;  %v9253_v51 = vld [vmem:[%s12218_s3 + $0x290] ss:$12 sps:$4 sm:$0xff]  }
 0x17e   :  { %7447 = vmatpush3.bf16.msra.mxu0 %v9730_v39  ;;  %8220 = vmatpush3.bf16.msra.mxu1 %v9832_v5  ;;  %v9254_v52 = vld [vmem:[%s12218_s3 + $0x25c] ss:$12 sps:$4 sm:$0xff]  }
 0x17f   :  { %7448 = vmatprep.subr.bf16.mxu0 %v9771_v55  ;;  %8677 = vmatprep.subr.msk.bf16.mxu1 %vm831_vm5, %v9830_v29 }
 0x180   :  { %1262 = vmatprep.mubr.bf16.mxu1 %v9200_v53  ;;  %1609 = vmatprep.mubr.bf16.mxu0 %v9204_v54  ;;  %v9256_v53 = vld [vmem:[%s12218_s3 + $0x2a8] ss:$12 sps:$4 sm:$0xff]   ;;  %v9257_v54 = vld [vmem:[%s12218_s3 + $0x258] ss:$12 sps:$4 sm:$0xff]  }
 0x182   :  { %7449 = vmatpush3.bf16.msra.mxu0 %v9728_v36  ;;  %8222 = vmatpush3.bf16.msra.mxu1 %v9846_v7 }
 0x183   :  { %7512 = vmatprep.subr.bf16.mxu1 %v9738_v59  ;;  %8239 = vmatprep.subr.bf16.mxu0 %v9789_v21 }
 0x185   :  { %1263 = vmatmul.mubr.bf16.gmra.mrb[44].mxu1 %v9205_v58  ;;  %1610 = vmatmul.mubr.bf16.vlgmr.msra.gmra.mrb[76].mxu0 %v9202_v57  ;;  %v9258_v57 = vld [vmem:[%s12218_s3 + $0x2c0] ss:$12 sps:$4 sm:$0xff]  }
 0x186   :  { %8240 = vmatpush3.bf16.msra.mxu0 %v9789_v21  ;;  %1270 = vmatprep.mubr.bf16.mxu1 %v9206_v61  ;;  %v9259_v58 = vld [vmem:[%s12218_s3 + $0x274] ss:$12 sps:$4 sm:$0xff]   ;;  %v9261_v61 = vld [vmem:[%s12218_s3 + $0x2d8] ss:$12 sps:$4 sm:$0xff]  }
 0x187   :  { %8241 = vmatprep.subr.bf16.mxu0 %v9786_v16  ;;  %1617 = vmatprep.mubr.bf16.mxu0 %v9208_v62  ;;  %v9262_v62 = vld [vmem:[%s12218_s3 + $0x270] ss:$12 sps:$4 sm:$0xff]  }
 0x18a   :  { %8242 = vmatpush3.bf16.msra.mxu0 %v9786_v16 }
 0x18b   :  { %8243 = vmatprep.subr.bf16.mxu0 %v9811_v47 }
 0x18d   :  { %1271 = vmatmul.mubr.bf16.gmra.mrb[48].mxu1 %v9210_v0  ;;  %1618 = vmatmul.mubr.bf16.gmra.mrb[80].mxu0 %v9211_v1  ;;  %v9263_v0 = vld [vmem:[%s12218_s3 + $0x2f0] ss:$12 sps:$4 sm:$0xff]   ;;  %v9264_v1 = vld [vmem:[%s12218_s3 + $0x28c] ss:$12 sps:$4 sm:$0xff]  }
 0x18e   :  { %8244 = vmatpush3.bf16.msra.mxu0 %v9811_v47  ;;  %1278 = vmatprep.mubr.bf16.mxu1 %v9212_v3  ;;  %v9268_v3 = vld [vmem:[%s12218_s3 + $0x304] ss:$12 sps:$4 sm:$0xff]  }
 0x18f   :  { %8245 = vmatprep.subr.bf16.mxu0 %v9807_v43  ;;  %1625 = vmatprep.mubr.bf16.mxu0 %v9214_v4  ;;  %v9266_v4 = vld [vmem:[%s12218_s3 + $0x300] ss:$12 sps:$4 sm:$0xff]  }
 0x192   :  { %8246 = vmatpush3.bf16.msra.mxu0 %v9807_v43 }
 0x193   :  { %8247 = vmatprep.subr.bf16.mxu0 %v9832_v5 }
 0x195   :  { %1279 = vmatmul.mubr.bf16.gmra.mrb[52].mxu1 %v9216_v6  ;;  %1626 = vmatmul.mubr.bf16.gmra.mrb[84].mxu0 %v9217_v8  ;;  %v9269_v6 = vld [vmem:[%s12218_s3 + $0x288] ss:$12 sps:$4 sm:$0xff]   ;;  %v9270_v8 = vld [vmem:[%s12218_s3 + $0x2a4] ss:$12 sps:$4 sm:$0xff]  }
 0x196   :  { %8248 = vmatpush3.bf16.msra.mxu0 %v9832_v5  ;;  %1286 = vmatprep.mubr.bf16.mxu1 %v9218_v9  ;;  %v9272_v9 = vld [vmem:[%s12218_s3 + $0x31c] ss:$12 sps:$4 sm:$0xff]  }
 0x197   :  { %8678 = vmatprep.subr.msk.bf16.mxu0 %vm831_vm5, %v9830_v29  ;;  %1633 = vmatprep.mubr.bf16.mxu0 %v9220_v10  ;;  %v9274_v10 = vld [vmem:[%s12218_s3 + $0x2a0] ss:$12 sps:$4 sm:$0xff]  }
 0x19a   :  { %8250 = vmatpush3.bf16.msra.mxu0 %v9846_v7 }
 0x19b   :  { %7590 = vmatprep.subr.bf16.mxu0 %v9738_v59 }
 0x19d   :  { %1287 = vmatmul.mubr.bf16.gmra.mrb[56].mxu1 %v9222_v11  ;;  %1634 = vmatmul.mubr.bf16.gmra.mrb[88].mxu0 %v9223_v13  ;;  %v9275_v11 = vld [vmem:[%s12218_s3 + $0x318] ss:$12 sps:$4 sm:$0xff]   ;;  %v9276_v13 = vld [vmem:[%s12218_s3 + $0x2bc] ss:$12 sps:$4 sm:$0xff]  }
 0x19e   :  { %1294 = vmatprep.mubr.bf16.mxu1 %v9224_v14  ;;  %1641 = vmatprep.mubr.bf16.mxu0 %v9226_v18  ;;  %v9278_v14 = vld [vmem:[%s12218_s3 + $0x334] ss:$12 sps:$4 sm:$0xff]   ;;  %v9280_v18 = vld [vmem:[%s12218_s3 + $0x2b8] ss:$12 sps:$4 sm:$0xff]  }
 0x1a5   :  { %1295 = vmatmul.mubr.bf16.gmra.mrb[60].mxu1 %v9228_v19  ;;  %1642 = vmatmul.mubr.bf16.gmra.mrb[92].mxu0 %v9229_v22  ;;  %v9281_v19 = vld [vmem:[%s12218_s3 + $0x330] ss:$12 sps:$4 sm:$0xff]   ;;  %v9282_v22 = vld [vmem:[%s12218_s3 + $0x2d4] ss:$12 sps:$4 sm:$0xff]  }
 0x1a6   :  { %1649 = vmatprep.mubr.bf16.mxu0 %v9230_v23  ;;  %8223 = vmatprep.mubr.msk.bf16.mxu1 %vm806_vm3, %v9232_v24  ;;  %v9284_v23 = vld [vmem:[%s12218_s3 + $0x34c] ss:$12 sps:$4 sm:$0xff]   ;;  %v9286_v24 = vld [vmem:[%s12218_s3 + $0x2d0] ss:$12 sps:$4 sm:$0xff]  }
 0x1ad   :  { %1650 = vmatmul.mubr.bf16.gmra.mrb[96].mxu0 %v9233_v25  ;;  %8224 = vmatmul.mubr.msk.bf16.vlgmr.msra.gmra.mrb[64].mxu1 %vm806_vm3, %v9234_v26  ;;  %v9287_v25 = vld [vmem:[%s12218_s3 + $0x348] ss:$12 sps:$4 sm:$0xff]   ;;  %v9288_v26 = vld [vmem:[%s12218_s3 + $0x2ec] ss:$12 sps:$4 sm:$0xff]  }
 0x1ae   :  { %7513 = vmatpush3.bf16.msra.mxu1 %v9706_v48  ;;  %1657 = vmatprep.mubr.bf16.mxu0 %v9235_v27  ;;  %v9290_v27 = vld [vmem:[%s12218_s3 + $0x364] ss:$12 sps:$4 sm:$0xff]  }
 0x1af   :  { %7514 = vmatprep.subr.bf16.mxu1 %v9736_v56  ;;  %8227 = vmatprep.mubr.msk.bf16.mxu1 %vm806_vm3, %v9237_v28 }
 0x1b2   :  { %7515 = vmatpush3.bf16.msra.mxu1 %v9704_v45 }
 0x1b3   :  { %7516 = vmatprep.subr.bf16.mxu1 %v9750_v15 }
 0x1b5   :  { %1658 = vmatmul.mubr.bf16.gmra.mrb[100].mxu0 %v9238_v30  ;;  %8228 = vmatmul.mubr.msk.bf16.gmra.mrb[68].mxu1 %vm806_vm3, %v9239_v31  ;;  %v9292_v30 = vld [vmem:[%s12218_s3 + $0x2e8] ss:$12 sps:$4 sm:$0xff]   ;;  %v9293_v31 = vld [vmem:[%s12218_s3 + $0x360] ss:$12 sps:$4 sm:$0xff]  }
 0x1b6   :  { %7517 = vmatpush3.bf16.msra.mxu1 %v9714_v2  ;;  %1665 = vmatprep.mubr.bf16.mxu0 %v9240_v32 }
 0x1b7   :  { %7518 = vmatprep.subr.bf16.mxu1 %v9747_v12  ;;  %8231 = vmatprep.mubr.msk.bf16.mxu1 %vm806_vm3, %v9242_v34  ;;  %v9294_v34 = vld [vmem:[%s12218_s3 + $0x37c] ss:$12 sps:$4 sm:$0xff]  }
 0x1ba   :  { %7519 = vmatpush3.bf16.msra.mxu1 %v9712_v63 }
 0x1bb   :  { %7520 = vmatprep.subr.bf16.mxu1 %v9762_v37 }
 0x1bd   :  { %1666 = vmatmul.mubr.bf16.gmra.mrb[104].mxu0 %v9243_v35  ;;  %8232 = vmatmul.mubr.msk.bf16.gmra.mrb[72].mxu1 %vm806_vm3, %v9244_v38  ;;  %v9296_v35 = vld [vmem:[%s12218_s3 + $0x308] ss:$12 sps:$4 sm:$0xff]  }
 0x1be   :  { %7521 = vmatpush3.bf16.msra.mxu1 %v9722_v20  ;;  %8235 = vmatprep.mubr.msk.bf16.mxu1 %vm806_vm3, %v9245_v40 }
 0x1bf   :  { %7522 = vmatprep.subr.bf16.mxu1 %v9759_v33  ;;  %8251 = vmatprep.mubr.msk.bf16.mxu0 %vm806_vm3, %v9246_v41 }
 0x1c2   :  { %7523 = vmatpush3.bf16.msra.mxu1 %v9720_v17 }
 0x1c3   :  { %7524 = vmatprep.subr.bf16.mxu1 %v9774_v60 }
 0x1c5   :  { %8236 = vmatmul.mubr.msk.bf16.gmra.mrb[76].mxu1 %vm806_vm3, %v9247_v42  ;;  %8252 = vmatmul.mubr.msk.bf16.vlgmr.msra.gmra.mrb[108].mxu0 %vm806_vm3, %v9248_v44 }
 0x1c6   :  { %7525 = vmatpush3.bf16.msra.mxu1 %v9730_v39  ;;  %7591 = vmatpush3.bf16.msra.mxu0 %v9706_v48 }
 0x1c7   :  { %7526 = vmatprep.subr.bf16.mxu1 %v9771_v55  ;;  %7592 = vmatprep.subr.bf16.mxu0 %v9736_v56 }
 0x1c8   :  { %1980 = vmatprep.mubr.bf16.mxu1 %v9251_v46  ;;  %8255 = vmatprep.mubr.msk.bf16.mxu0 %vm806_vm3, %v9252_v49  ;;  %v9297_v46 = vld [vmem:[%s12218_s3 + $0x378] ss:$12 sps:$4 sm:$0xff]   ;;  %v9298_v49 = vld [vmem:[%s12218_s3 + $0x320] ss:$12 sps:$4 sm:$0xff]  }
 0x1ca   :  { %7527 = vmatpush3.bf16.msra.mxu1 %v9728_v36  ;;  %7593 = vmatpush3.bf16.msra.mxu0 %v9704_v45 }
 0x1cb   :  { %7594 = vmatprep.subr.bf16.mxu0 %v9750_v15  ;;  %8267 = vmatprep.subr.bf16.mxu1 %v9789_v21 }
 0x1cd   :  { %1981 = vmatmul.mubr.bf16.vlgmr.msra.gmra.mrb[80].mxu1 %v9249_v50  ;;  %8256 = vmatmul.mubr.msk.bf16.gmra.mrb[112].mxu0 %vm806_vm3, %v9253_v51  ;;  %v9299_v51 = vld [vmem:[%s12218_s3 + $0x394] ss:$12 sps:$4 sm:$0xff]  }
 0x1ce   :  { %7595 = vmatpush3.bf16.msra.mxu0 %v9714_v2  ;;  %8268 = vmatpush3.bf16.msra.mxu1 %v9789_v21 }
 0x1cf   :  { %7596 = vmatprep.subr.bf16.mxu0 %v9747_v12  ;;  %8269 = vmatprep.subr.bf16.mxu1 %v9786_v16 }
 0x1d0   :  { %1988 = vmatprep.mubr.bf16.mxu1 %v9254_v52  ;;  %8259 = vmatprep.mubr.msk.bf16.mxu0 %vm806_vm3, %v9256_v53 }
 0x1d2   :  { %7597 = vmatpush3.bf16.msra.mxu0 %v9712_v63  ;;  %8270 = vmatpush3.bf16.msra.mxu1 %v9786_v16 }
 0x1d3   :  { %7598 = vmatprep.subr.bf16.mxu0 %v9762_v37  ;;  %8271 = vmatprep.subr.bf16.mxu1 %v9811_v47 }
 0x1d5   :  { %1989 = vmatmul.mubr.bf16.gmra.mrb[84].mxu1 %v9257_v54  ;;  %8260 = vmatmul.mubr.msk.bf16.gmra.mrb[116].mxu0 %vm806_vm3, %v9258_v57  ;;  %v9301_v54 = vld [vmem:[%s12218_s3 + $0x338] ss:$12 sps:$4 sm:$0xff]  }
 0x1d6   :  { %7599 = vmatpush3.bf16.msra.mxu0 %v9722_v20  ;;  %8272 = vmatpush3.bf16.msra.mxu1 %v9811_v47 }
 0x1d7   :  { %7600 = vmatprep.subr.bf16.mxu0 %v9759_v33  ;;  %8273 = vmatprep.subr.bf16.mxu1 %v9807_v43 }
 0x1d8   :  { %1996 = vmatprep.mubr.bf16.mxu1 %v9259_v58  ;;  %8263 = vmatprep.mubr.msk.bf16.mxu0 %vm806_vm3, %v9261_v61 }
 0x1da   :  { %7601 = vmatpush3.bf16.msra.mxu0 %v9720_v17  ;;  %8274 = vmatpush3.bf16.msra.mxu1 %v9807_v43 }
 0x1db   :  { %7602 = vmatprep.subr.bf16.mxu0 %v9774_v60  ;;  %8275 = vmatprep.subr.bf16.mxu1 %v9832_v5 }
 0x1dd   :  { %1997 = vmatmul.mubr.bf16.gmra.mrb[88].mxu1 %v9262_v62  ;;  %8264 = vmatmul.mubr.msk.bf16.gmra.mrb[120].mxu0 %vm806_vm3, %v9263_v0  ;;  %v9302_v62 = vld [vmem:[%s12218_s3 + $0x390] ss:$12 sps:$4 sm:$0xff]  }
 0x1de   :  { %7603 = vmatpush3.bf16.msra.mxu0 %v9730_v39  ;;  %8276 = vmatpush3.bf16.msra.mxu1 %v9832_v5  ;;  %v9303_v0 = vld [vmem:[%s12218_s3 + $0x350] ss:$12 sps:$4 sm:$0xff]  }
 0x1df   :  { %7604 = vmatprep.subr.bf16.mxu0 %v9771_v55  ;;  %8679 = vmatprep.subr.msk.bf16.mxu1 %vm831_vm5, %v9830_v29 }
 0x1e0   :  { %2004 = vmatprep.mubr.bf16.mxu1 %v9264_v1  ;;  %2351 = vmatprep.mubr.bf16.mxu0 %v9268_v3  ;;  %v9304_v3 = vld [vmem:[%s12218_s3 + $0x3ac] ss:$12 sps:$4 sm:$0xff]  }
 0x1e2   :  { %7605 = vmatpush3.bf16.msra.mxu0 %v9728_v36  ;;  %8278 = vmatpush3.bf16.msra.mxu1 %v9846_v7 }
 0x1e3   :  { %7668 = vmatprep.subr.bf16.mxu1 %v9738_v59  ;;  %8295 = vmatprep.subr.bf16.mxu0 %v9789_v21 }
 0x1e5   :  { %2005 = vmatmul.mubr.bf16.gmra.mrb[92].mxu1 %v9269_v6  ;;  %2352 = vmatmul.mubr.bf16.vlgmr.msra.gmra.mrb[124].mxu0 %v9266_v4 }
 0x1e6   :  { %8296 = vmatpush3.bf16.msra.mxu0 %v9789_v21  ;;  %2012 = vmatprep.mubr.bf16.mxu1 %v9270_v8  ;;  %v9306_v8 = vld [vmem:[%s12218_s3 + $0x368] ss:$12 sps:$4 sm:$0xff]  }
 0x1e7   :  { %8297 = vmatprep.subr.bf16.mxu0 %v9786_v16  ;;  %2359 = vmatprep.mubr.bf16.mxu0 %v9272_v9 }
 0x1ea   :  { %8298 = vmatpush3.bf16.msra.mxu0 %v9786_v16 }
 0x1eb   :  { %8299 = vmatprep.subr.bf16.mxu0 %v9811_v47 }
 0x1ed   :  { %2013 = vmatmul.mubr.bf16.gmra.mrb[96].mxu1 %v9274_v10  ;;  %2360 = vmatmul.mubr.bf16.gmra.mrb[128].mxu0 %v9275_v11 }
 0x1ee   :  { %8300 = vmatpush3.bf16.msra.mxu0 %v9811_v47  ;;  %2020 = vmatprep.mubr.bf16.mxu1 %v9276_v13 }
 0x1ef   :  { %8301 = vmatprep.subr.bf16.mxu0 %v9807_v43  ;;  %2367 = vmatprep.mubr.bf16.mxu0 %v9278_v14 }
 0x1f2   :  { %8302 = vmatpush3.bf16.msra.mxu0 %v9807_v43 }
 0x1f3   :  { %8303 = vmatprep.subr.bf16.mxu0 %v9832_v5 }
 0x1f5   :  { %2021 = vmatmul.mubr.bf16.gmra.mrb[100].mxu1 %v9280_v18  ;;  %2368 = vmatmul.mubr.bf16.gmra.mrb[132].mxu0 %v9281_v19  ;;  %v9307_v18 = vld [vmem:[%s12218_s3 + $0x3a8] ss:$12 sps:$4 sm:$0xff]   ;;  %v9308_v19 = vld [vmem:[%s12218_s3 + $0x380] ss:$12 sps:$4 sm:$0xff]  }
 0x1f6   :  { %8304 = vmatpush3.bf16.msra.mxu0 %v9832_v5  ;;  %2028 = vmatprep.mubr.bf16.mxu1 %v9282_v22 }
 0x1f7   :  { %8680 = vmatprep.subr.msk.bf16.mxu0 %vm831_vm5, %v9830_v29  ;;  %2375 = vmatprep.mubr.bf16.mxu0 %v9284_v23 }
 0x1fa   :  { %8306 = vmatpush3.bf16.msra.mxu0 %v9846_v7 }
 0x1fb   :  { %7746 = vmatprep.subr.bf16.mxu0 %v9738_v59 }
 0x1fd   :  { %2029 = vmatmul.mubr.bf16.gmra.mrb[104].mxu1 %v9286_v24  ;;  %2376 = vmatmul.mubr.bf16.gmra.mrb[136].mxu0 %v9287_v25 }
 0x1fe   :  { %2036 = vmatprep.mubr.bf16.mxu1 %v9288_v26  ;;  %2383 = vmatprep.mubr.bf16.mxu0 %v9290_v27  ;;  %v9309_v26 = vld [vmem:[%s12218_s3 + $0x398] ss:$12 sps:$4 sm:$0xff]  }
 0x200   :  { %v7294_v28 = vpop.f32.mrb[0].mxu1 }
 0x201   :  { %v7295_v32 = vpop.f32.mrb[1].mxu1 }
 0x202   :  { %v7297_v38 = vpop.f32.mrb[2].mxu1  ;;  %v7296_v40 = vadd.f32 %v7295_v32, %v7294_v28  ;;  %v9310_v32 = vld [vmem:[%s12218_s3 + $0x3c8] ss:$12 sps:$4 sm:$0xff]  }
 0x203   :  { %v7298_v41 = vpop.f32.mrb[3].mxu1 }
 0x204   :  { %v7299_v42 = vadd.f32 %v7298_v41, %v7297_v38 }
 0x205   :  { %2037 = vmatmul.mubr.bf16.gmra.mrb[108].mxu1 %v9292_v30  ;;  %2384 = vmatmul.mubr.bf16.gmra.mrb[140].mxu0 %v9293_v31 }
 0x206   :  { %2391 = vmatprep.mubr.bf16.mxu0 %v9294_v34  ;;  %8279 = vmatprep.mubr.msk.bf16.mxu1 %vm806_vm3, %v9296_v35 }
 0x208   :  { %v7300_v44 = vpop.f32.mrb[4].mxu1 }
 0x209   :  { %v7301_v50 = vpop.f32.mrb[5].mxu1 }
 0x20a   :  { %v7302_v52 = vadd.f32 %v7301_v50, %v7300_v44  ;;  %v7303_v53 = vpop.f32.mrb[6].mxu1  ;;  %v9311_v44 = vld [vmem:[%s12218_s3 + $0x3b0] ss:$12 sps:$4 sm:$0xff]  }
 0x20b   :  { %v7304_v57 = vpop.f32.mrb[7].mxu1 }
 0x20c   :  { %v7305_v58 = vadd.f32 %v7304_v57, %v7303_v53 }
 0x20d   :  { %2392 = vmatmul.mubr.bf16.gmra.mrb[144].mxu0 %v9297_v46  ;;  %8280 = vmatmul.mubr.msk.bf16.vlgmr.msra.gmra.mrb[112].mxu1 %vm806_vm3, %v9298_v49 }
 0x20e   :  { %7669 = vmatpush3.bf16.msra.mxu1 %v9706_v48  ;;  %2399 = vmatprep.mubr.bf16.mxu0 %v9299_v51 }
 0x20f   :  { %7670 = vmatprep.subr.bf16.mxu1 %v9736_v56  ;;  %8283 = vmatprep.mubr.msk.bf16.mxu1 %vm806_vm3, %v9301_v54 }
 0x210   :  { %v7306_v61 = vpop.f32.mrb[8].mxu1 }
 0x211   :  { %v7307_v1 = vpop.f32.mrb[9].mxu1 }
 0x212   :  { %7671 = vmatpush3.bf16.msra.mxu1 %v9704_v45  ;;  %v7309_v4 = vpop.f32.mrb[10].mxu1  ;;  %v7308_v6 = vadd.f32 %v7307_v1, %v7306_v61  ;;  %v9316_v1 = vld [vmem:[%s12218_s3 + $0x3f8] ss:$12 sps:$4 sm:$0xff]  }
 0x213   :  { %7672 = vmatprep.subr.bf16.mxu1 %v9750_v15  ;;  %v7310_v9 = vpop.f32.mrb[11].mxu1 }
 0x214   :  { %v7311_v10 = vadd.f32 %v7310_v9, %v7309_v4  ;;  %v9317_v9 = vld [vmem:[%s12218_s3 + $0x410] ss:$12 sps:$4 sm:$0xff]  }
 0x215   :  { %2400 = vmatmul.mubr.bf16.gmra.mrb[148].mxu0 %v9302_v62  ;;  %8284 = vmatmul.mubr.msk.bf16.gmra.mrb[116].mxu1 %vm806_vm3, %v9303_v0  ;;  %v9315_v0 = vld [vmem:[%s12218_s3 + $0x3c4] ss:$12 sps:$4 sm:$0xff]  }
 0x216   :  { %7673 = vmatpush3.bf16.msra.mxu1 %v9714_v2  ;;  %2407 = vmatprep.mubr.bf16.mxu0 %v9304_v3 }
 0x217   :  { %7674 = vmatprep.subr.bf16.mxu1 %v9747_v12  ;;  %8287 = vmatprep.mubr.msk.bf16.mxu1 %vm806_vm3, %v9306_v8  ;;  %v9313_v8 = vld [vmem:[%s12218_s3 + $0x3c0] ss:$12 sps:$4 sm:$0xff]  }
 0x218   :  { %v8169_v11 = vpop.f32.mrb[44].mxu0  ;;  %v7312_v13 = vpop.f32.mrb[12].mxu1 }
 0x219   :  { %v966_v14 = vpop.f32.mrb[45].mxu0  ;;  %v10341_v22 = vadd.f32 %v8169_v11, %v7302_v52  ;;  %v7313_v23 = vpop.f32.mrb[13].mxu1 }
 0x21a   :  { %v10343_v24 = vadd.f32 %v7296_v40, %v966_v14  ;;  %7675 = vmatpush3.bf16.msra.mxu1 %v9712_v63  ;;  %v8170_v25 = vpop.f32.mrb[46].mxu0  ;;  %v7314_v27 = vadd.f32 %v7313_v23, %v7312_v13  ;;  %v7315_v28 = vpop.f32.mrb[14].mxu1 }
 0x21b   :  { %7676 = vmatprep.subr.bf16.mxu1 %v9762_v37  ;;  %v969_v30 = vpop.f32.mrb[47].mxu0  ;;  %v10350_v31 = vadd.f32 %v8170_v25, %v7305_v58  ;;  %v7316_v34 = vpop.f32.mrb[15].mxu1 }
 0x21c   :  { %v10355_v35 = vadd.f32 %v7299_v42, %v969_v30  ;;  %v7317_v38 = vadd.f32 %v7316_v34, %v7315_v28  ;;  %v9312_v42 = vld [vmem:[%s12218_s3 + $0x3e0] ss:$12 sps:$4 sm:$0xff]  }
 0x21d   :  { %2408 = vmatmul.mubr.bf16.gmra.mrb[152].mxu0 %v9307_v18  ;;  %8288 = vmatmul.mubr.msk.bf16.gmra.mrb[120].mxu1 %vm806_vm3, %v9308_v19 }
 0x21e   :  { %7677 = vmatpush3.bf16.msra.mxu1 %v9722_v20  ;;  %8291 = vmatprep.mubr.msk.bf16.mxu1 %vm806_vm3, %v9309_v26  ;;  %v9318_v26 = vld [vmem:[%s12218_s3 + $0x3dc] ss:$12 sps:$4 sm:$0xff]  }
 0x21f   :  { %7678 = vmatprep.subr.bf16.mxu1 %v9759_v33  ;;  %8307 = vmatprep.mubr.msk.bf16.mxu0 %vm806_vm3, %v9310_v32 }
 0x220   :  { %v8173_v40 = vpop.f32.mrb[48].mxu0  ;;  %v7318_v41 = vpop.f32.mrb[16].mxu1 }
 0x221   :  { %v982_v46 = vpop.f32.mrb[49].mxu0  ;;  %v10368_v49 = vadd.f32 %v8173_v40, %v7314_v27  ;;  %v7319_v50 = vpop.f32.mrb[17].mxu1  ;;  %v9320_v27 = vld [vmem:[%s12218_s3 + $0x428] ss:$12 sps:$4 sm:$0xff]  }
 0x222   :  { %7679 = vmatpush3.bf16.msra.mxu1 %v9720_v17  ;;  %v10371_v51 = vadd.f32 %v7308_v6, %v982_v46  ;;  %v8174_v52 = vpop.f32.mrb[50].mxu0  ;;  %v7321_v53 = vpop.f32.mrb[18].mxu1  ;;  %v7320_v54 = vadd.f32 %v7319_v50, %v7318_v41  ;;  %v9321_v41 = vld [vmem:[%s12218_s3 + $0x3d8] ss:$12 sps:$4 sm:$0xff]  }
 0x223   :  { %7680 = vmatprep.subr.bf16.mxu1 %v9774_v60  ;;  %v985_v57 = vpop.f32.mrb[51].mxu0  ;;  %v10374_v58 = vadd.f32 %v8174_v52, %v7317_v38  ;;  %v7322_v61 = vpop.f32.mrb[19].mxu1 }
 0x224   :  { %v10376_v62 = vadd.f32 %v7311_v10, %v985_v57  ;;  %v7323_v3 = vadd.f32 %v7322_v61, %v7321_v53  ;;  %v9323_v61 = vld [vmem:[%s12218_s3 + $0x3f4] ss:$12 sps:$4 sm:$0xff]  }
 0x225   :  { %8292 = vmatmul.mubr.msk.bf16.gmra.mrb[124].mxu1 %vm806_vm3, %v9311_v44  ;;  %8308 = vmatmul.mubr.msk.bf16.vlgmr.msra.gmra.mrb[156].mxu0 %vm806_vm3, %v9312_v42  ;;  %v9322_v44 = vld [vmem:[%s12218_s3 + $0x440] ss:$12 sps:$4 sm:$0xff]  }
 0x226   :  { %7681 = vmatpush3.bf16.msra.mxu1 %v9730_v39  ;;  %7747 = vmatpush3.bf16.msra.mxu0 %v9706_v48 }
 0x227   :  { %7682 = vmatprep.subr.bf16.mxu1 %v9771_v55  ;;  %7748 = vmatprep.subr.bf16.mxu0 %v9736_v56 }
 0x228   :  { %2722 = vmatprep.mubr.bf16.mxu1 %v9315_v0  ;;  %8311 = vmatprep.mubr.msk.bf16.mxu0 %vm806_vm3, %v9316_v1  ;;  %v7324_v4 = vpop.f32.mrb[20].mxu1  ;;  %v8177_v6 = vpop.f32.mrb[52].mxu0  ;;  %v9325_v0 = vld [vmem:[%s12218_s3 + $0x458] ss:$12 sps:$4 sm:$0xff]  }
 0x229   :  { %v7325_v10 = vpop.f32.mrb[21].mxu1  ;;  %v998_v11 = vpop.f32.mrb[53].mxu0 }
 0x22a   :  { %7683 = vmatpush3.bf16.msra.mxu1 %v9728_v36  ;;  %7749 = vmatpush3.bf16.msra.mxu0 %v9704_v45  ;;  %v7327_v13 = vpop.f32.mrb[22].mxu1  ;;  %v7326_v14 = vadd.f32 %v7325_v10, %v7324_v4  ;;  %v10399_v18 = vadd.f32 %v7320_v54, %v998_v11  ;;  %v8178_v19 = vpop.f32.mrb[54].mxu0  ;;  %v9326_v10 = vld [vmem:[%s12218_s3 + $0x3f0] ss:$12 sps:$4 sm:$0xff]  }
 0x22b   :  { %7750 = vmatprep.subr.bf16.mxu0 %v9750_v15  ;;  %8323 = vmatprep.subr.bf16.mxu1 %v9789_v21  ;;  %v7328_v23 = vpop.f32.mrb[23].mxu1  ;;  %v1001_v25 = vpop.f32.mrb[55].mxu0  ;;  %v9327_v11 = vld [vmem:[%s12218_s3 + $0x470] ss:$12 sps:$4 sm:$0xff]  }
 0x22c   :  { %v10409_v28 = vadd.f32 %v8177_v6, %v7326_v14  ;;  %v7329_v30 = vadd.f32 %v7328_v23, %v7327_v13  ;;  %v10411_v32 = vadd.f32 %v7323_v3, %v1001_v25 }
 0x22d   :  { %2723 = vmatmul.mubr.bf16.vlgmr.msra.gmra.mrb[128].mxu1 %v9313_v8  ;;  %8312 = vmatmul.mubr.msk.bf16.gmra.mrb[160].mxu0 %vm806_vm3, %v9317_v9 }
 0x22e   :  { %7751 = vmatpush3.bf16.msra.mxu0 %v9714_v2  ;;  %8324 = vmatpush3.bf16.msra.mxu1 %v9789_v21  ;;  %v10416_v34 = vadd.f32 %v8178_v19, %v7329_v30 }
 0x22f   :  { %7752 = vmatprep.subr.bf16.mxu0 %v9747_v12  ;;  %8325 = vmatprep.subr.bf16.mxu1 %v9786_v16 }
 0x230   :  { %2730 = vmatprep.mubr.bf16.mxu1 %v9318_v26  ;;  %8315 = vmatprep.mubr.msk.bf16.mxu0 %vm806_vm3, %v9320_v27  ;;  %v7330_v38 = vpop.f32.mrb[24].mxu1  ;;  %v8181_v40 = vpop.f32.mrb[56].mxu0 }
 0x231   :  { %v7331_v42 = vpop.f32.mrb[25].mxu1  ;;  %v1014_v46 = vpop.f32.mrb[57].mxu0 }
 0x232   :  { %7753 = vmatpush3.bf16.msra.mxu0 %v9712_v63  ;;  %8326 = vmatpush3.bf16.msra.mxu1 %v9786_v16  ;;  %v7333_v50 = vpop.f32.mrb[26].mxu1  ;;  %v7332_v52 = vadd.f32 %v7331_v42, %v7330_v38  ;;  %v8182_v53 = vpop.f32.mrb[58].mxu0  ;;  %v9328_v38 = vld [vmem:[%s12218_s3 + $0x40c] ss:$12 sps:$4 sm:$0xff]  }
 0x233   :  { %7754 = vmatprep.subr.bf16.mxu0 %v9762_v37  ;;  %8327 = vmatprep.subr.bf16.mxu1 %v9811_v47  ;;  %v7334_v54 = vpop.f32.mrb[27].mxu1  ;;  %v1017_v57 = vpop.f32.mrb[59].mxu0 }
 0x234   :  { %v10437_v1 = vadd.f32 %v7332_v52, %v1014_v46  ;;  %v7335_v3 = vadd.f32 %v7334_v54, %v7333_v50  ;;  %v9330_v50 = vld [vmem:[%s12218_s3 + $0x480] ss:$12 sps:$4 sm:$0xff]   ;;  %v9333_v52 = vld [vmem:[%s12218_s3 + $0x408] ss:$12 sps:$4 sm:$0xff]  }
 0x235   :  { %2731 = vmatmul.mubr.bf16.gmra.mrb[132].mxu1 %v9321_v41  ;;  %8316 = vmatmul.mubr.msk.bf16.gmra.mrb[164].mxu0 %vm806_vm3, %v9322_v44  ;;  %v9332_v41 = vld [vmem:[%s12218_s3 + $0x484] ss:$12 sps:$4 sm:$0xff]  }
 0x236   :  { %7755 = vmatpush3.bf16.msra.mxu0 %v9722_v20  ;;  %8328 = vmatpush3.bf16.msra.mxu1 %v9811_v47  ;;  %v10442_v4 = vadd.f32 %v7335_v3, %v1017_v57 }
 0x237   :  { %7756 = vmatprep.subr.bf16.mxu0 %v9759_v33  ;;  %8329 = vmatprep.subr.bf16.mxu1 %v9807_v43 }
 0x238   :  { %12239 = vst [vmem:[#allocation3_spill] sm:$0xff] %v10442_v4  ;;  %v7336_v6 = vpop.f32.mrb[28].mxu1  ;;  %2738 = vmatprep.mubr.bf16.mxu1 %v9323_v61  ;;  %8319 = vmatprep.mubr.msk.bf16.mxu0 %vm806_vm3, %v9325_v0  ;;  %v10447_v8 = vpop.f32.mrb[60].mxu0  ;;  %v9334_v61 = vld [vmem:[%s12218_s3 + $0x424] ss:$12 sps:$4 sm:$0xff]  }
 0x239   :  { %v7337_v9 = vpop.f32.mrb[29].mxu1  ;;  %v1337_v13 = vpop.f32.mrb[61].mxu0 }
 0x23a   :  { %7757 = vmatpush3.bf16.msra.mxu0 %v9720_v17  ;;  %8330 = vmatpush3.bf16.msra.mxu1 %v9807_v43  ;;  %v7339_v14 = vpop.f32.mrb[30].mxu1  ;;  %v7338_v19 = vadd.f32 %v7337_v9, %v7336_v6  ;;  %v10457_v23 = vpop.f32.mrb[62].mxu0  ;;  %v9336_v6 = vld [vmem:[%s12218_s3 + $0x49c] ss:$12 sps:$4 sm:$0xff]  }
 0x23b   :  { %7758 = vmatprep.subr.bf16.mxu0 %v9774_v60  ;;  %8331 = vmatprep.subr.bf16.mxu1 %v9832_v5  ;;  %v7340_v25 = vpop.f32.mrb[31].mxu1  ;;  %v1340_v26 = vpop.f32.mrb[63].mxu0 }
 0x23c   :  { %v10461_v27 = vadd.f32 %v8181_v40, %v7338_v19  ;;  %v7341_v30 = vadd.f32 %v7340_v25, %v7339_v14 }
 0x23d   :  { %2739 = vmatmul.mubr.bf16.gmra.mrb[136].mxu1 %v9326_v10  ;;  %8320 = vmatmul.mubr.msk.bf16.gmra.mrb[168].mxu0 %vm806_vm3, %v9327_v11 }
 0x23e   :  { %12240 = vst [vmem:[#allocation4_spill] sm:$0xff] %v10461_v27  ;;  %7759 = vmatpush3.bf16.msra.mxu0 %v9730_v39  ;;  %8332 = vmatpush3.bf16.msra.mxu1 %v9832_v5  ;;  %v10472_v44 = vadd.f32 %v8182_v53, %v7341_v30 }
 0x23f   :  { %7760 = vmatprep.subr.bf16.mxu0 %v9771_v55  ;;  %8681 = vmatprep.subr.msk.bf16.mxu1 %vm831_vm5, %v9830_v29 }
 0x240   :  { %12241 = vst [vmem:[#allocation5_spill] sm:$0xff] %v10472_v44  ;;  %v7372_v40 = vpop.f32.mrb[32].mxu1  ;;  %2746 = vmatprep.mubr.bf16.mxu1 %v9328_v38  ;;  %3093 = vmatprep.mubr.bf16.mxu0 %v9332_v41  ;;  %v10477_v42 = vpop.f32.mrb[64].mxu0  ;;  %v9338_v41 = vld [vmem:[%s12218_s3 + $0x420] ss:$12 sps:$4 sm:$0xff]  }
 0x241   :  { %v7373_v46 = vpop.f32.mrb[33].mxu1  ;;  %v10485_v53 = vpop.f32.mrb[65].mxu0 }
 0x242   :  { %v7374_v54 = vadd.f32 %v7373_v46, %v7372_v40  ;;  %7761 = vmatpush3.bf16.msra.mxu0 %v9728_v36  ;;  %8334 = vmatpush3.bf16.msra.mxu1 %v9846_v7  ;;  %v7375_v57 = vpop.f32.mrb[34].mxu1  ;;  %v10492_v0 = vpop.f32.mrb[66].mxu0 }
 0x243   :  { %7824 = vmatprep.subr.bf16.mxu1 %v9738_v59  ;;  %8351 = vmatprep.subr.bf16.mxu0 %v9789_v21  ;;  %v7376_v3 = vpop.f32.mrb[35].mxu1  ;;  %v1356_v9 = vpop.f32.mrb[67].mxu0 }
 0x244   :  { %v7377_v10 = vadd.f32 %v7376_v3, %v7375_v57  ;;  %v1338_v11 = vadd.f32 %v7374_v54, %v1337_v13  ;;  %v9339_v13 = vld [vmem:[%s12218_s3 + $0x498] ss:$12 sps:$4 sm:$0xff]   ;;  %v9342_v57 = vld [vmem:[%s12218_s3 + $0x4b4] ss:$12 sps:$4 sm:$0xff]  }
 0x245   :  { %2747 = vmatmul.mubr.bf16.gmra.mrb[140].mxu1 %v9333_v52  ;;  %3094 = vmatmul.mubr.bf16.vlgmr.msra.gmra.mrb[172].mxu0 %v9330_v50  ;;  %v9340_v50 = vld [vmem:[%s12218_s3 + $0x43c] ss:$12 sps:$4 sm:$0xff]  }
 0x246   :  { %v1341_v14 = vadd.f32 %v7377_v10, %v1340_v26  ;;  %8352 = vmatpush3.bf16.msra.mxu0 %v9789_v21  ;;  %2754 = vmatprep.mubr.bf16.mxu1 %v9334_v61 }
 0x247   :  { %8353 = vmatprep.subr.bf16.mxu0 %v9786_v16  ;;  %3101 = vmatprep.mubr.bf16.mxu0 %v9336_v6 }
 0x248   :  { %v7378_v19 = vpop.f32.mrb[36].mxu1  ;;  %v8701_v25 = vpack.i.bf16 %v1341_v14, %v1338_v11  ;;  %v10501_v30 = vpop.f32.mrb[68].mxu0 }
 0x249   :  { %v7379_v38 = vpop.f32.mrb[37].mxu1  ;;  %v10509_v26 = vpop.f32.mrb[69].mxu0 }
 0x24a   :  { %v7380_v40 = vadd.f32 %v7379_v38, %v7378_v19  ;;  %8354 = vmatpush3.bf16.msra.mxu0 %v9786_v16  ;;  %v7381_v46 = vpop.f32.mrb[38].mxu1  ;;  %8702 = vrot.lane.b32.xlu0 %v8701_v25, %s9496_s20  ;;  %v10516_v52 = vpop.f32.mrb[70].mxu0  ;;  %v9345_v38 = vld [vmem:[%s12218_s3 + $0x4b0] ss:$12 sps:$4 sm:$0xff]  }
 0x24b   :  { %8355 = vmatprep.subr.bf16.mxu0 %v9811_v47  ;;  %v7382_v54 = vpop.f32.mrb[39].mxu1  ;;  %v10522_v61 = vpop.f32.mrb[71].mxu0 }
 0x24c   :  { %v1346_v3 = vadd.f32 %v10447_v8, %v7380_v40  ;;  %v7383_v6 = vadd.f32 %v7382_v54, %v7381_v46  ;;  %v9344_v8 = vld [vmem:[%s12218_s3 + $0x438] ss:$12 sps:$4 sm:$0xff]   ;;  %v9346_v40 = vld [vmem:[%s12218_s3 + $0x454] ss:$12 sps:$4 sm:$0xff]  }
 0x24d   :  { %2755 = vmatmul.mubr.bf16.gmra.mrb[144].mxu1 %v9338_v41  ;;  %3102 = vmatmul.mubr.bf16.gmra.mrb[176].mxu0 %v9339_v13  ;;  %v9348_v54 = vld [vmem:[%s12218_s3 + $0x4cc] ss:$12 sps:$4 sm:$0xff]  }
 0x24e   :  { %v1349_v10 = vadd.f32 %v10457_v23, %v7383_v6  ;;  %8356 = vmatpush3.bf16.msra.mxu0 %v9811_v47  ;;  %2762 = vmatprep.mubr.bf16.mxu1 %v9340_v50 }
 0x24f   :  { %8357 = vmatprep.subr.bf16.mxu0 %v9807_v43  ;;  %3109 = vmatprep.mubr.bf16.mxu0 %v9342_v57 }
 0x250   :  { %v7384_v11 = vpop.f32.mrb[40].mxu1  ;;  %v8706_v14 = vpack.i.bf16 %v1349_v10, %v1346_v3  ;;  %v10528_v19 = vpop.f32.mrb[72].mxu0 }
 0x251   :  { %v7385_v25 = vpop.f32.mrb[41].mxu1  ;;  %v10536_v23 = vpop.f32.mrb[73].mxu0 }
 0x252   :  { %v7386_v41 = vadd.f32 %v7385_v25, %v7384_v11  ;;  %8358 = vmatpush3.bf16.msra.mxu0 %v9807_v43  ;;  %v7387_v13 = vpop.f32.mrb[42].mxu1  ;;  %8707 = vrot.lane.b32.xlu0 %v8706_v14, %s9496_s20  ;;  %v10543_v46 = vpop.f32.mrb[74].mxu0 }
 0x253   :  { %8359 = vmatprep.subr.bf16.mxu0 %v9832_v5  ;;  %v7388_v50 = vpop.f32.mrb[43].mxu1  ;;  %v10549_v57 = vpop.f32.mrb[75].mxu0 }
 0x254   :  { %v7389_v3 = vadd.f32 %v7388_v50, %v7387_v13  ;;  %v1354_v6 = vadd.f32 %v7386_v41, %v10485_v53  ;;  %v9350_v13 = vld [vmem:[%s12218_s3 + $0x450] ss:$12 sps:$4 sm:$0xff]   ;;  %v9351_v53 = vld [vmem:[%s12218_s3 + $0x4c8] ss:$12 sps:$4 sm:$0xff]   ;;  %v9352_v41 = vld [vmem:[%s12218_s3 + $0x46c] ss:$12 sps:$4 sm:$0xff]  }
 0x255   :  { %2763 = vmatmul.mubr.bf16.gmra.mrb[148].mxu1 %v9344_v8  ;;  %3110 = vmatmul.mubr.bf16.gmra.mrb[180].mxu0 %v9345_v38 }
 0x256   :  { %v1357_v10 = vadd.f32 %v7389_v3, %v1356_v9  ;;  %8360 = vmatpush3.bf16.msra.mxu0 %v9832_v5  ;;  %2770 = vmatprep.mubr.bf16.mxu1 %v9346_v40  ;;  %v9354_v40 = vld [vmem:[%s12218_s3 + $0x4e4] ss:$12 sps:$4 sm:$0xff]  }
 0x257   :  { %8682 = vmatprep.subr.msk.bf16.mxu0 %vm831_vm5, %v9830_v29  ;;  %3117 = vmatprep.mubr.bf16.mxu0 %v9348_v54 }
 0x258   :  { %v7390_v11 = vpop.f32.mrb[44].mxu1  ;;  %v8711_v14 = vpack.i.bf16 %v1357_v10, %v1354_v6  ;;  %v7450_v25 = vpop.f32.mrb[76].mxu0 }
 0x259   :  { %v7391_v44 = vpop.f32.mrb[45].mxu1  ;;  %v7451_v9 = vpop.f32.mrb[77].mxu0 }
 0x25a   :  { %v7392_v8 = vadd.f32 %v7391_v44, %v7390_v11  ;;  %8362 = vmatpush3.bf16.msra.mxu0 %v9846_v7  ;;  %v7393_v38 = vpop.f32.mrb[46].mxu1  ;;  %8712 = vrot.lane.b32.xlu1 %v8711_v14, %s9496_s20  ;;  %v10569_v50 = vadd.f32 %v7451_v9, %v7450_v25  ;;  %v7453_v54 = vpop.f32.mrb[78].mxu0 }
 0x25b   :  { %7902 = vmatprep.subr.bf16.mxu0 %v9738_v59  ;;  %v7394_v3 = vpop.f32.mrb[47].mxu1  ;;  %v7454_v44 = vpop.f32.mrb[79].mxu0  ;;  %v9356_v59 = vld [vmem:[%s12218_s3 + $0x468] ss:$12 sps:$4 sm:$0xff]  }
 0x25c   :  { %v1362_v6 = vadd.f32 %v10477_v42, %v7392_v8  ;;  %v7395_v10 = vadd.f32 %v7394_v3, %v7393_v38  ;;  %v10573_v11 = vadd.f32 %v7454_v44, %v7453_v54  ;;  %v9357_v42 = vld [vmem:[%s12218_s3 + $0x4e0] ss:$12 sps:$4 sm:$0xff]  }
 0x25d   :  { %2771 = vmatmul.mubr.bf16.gmra.mrb[152].mxu1 %v9350_v13  ;;  %3118 = vmatmul.mubr.bf16.gmra.mrb[184].mxu0 %v9351_v53  ;;  %v9360_v53 = vld [vmem:[%s12218_s3 + $0x488] ss:$12 sps:$4 sm:$0xff]  }
 0x25e   :  { %v1365_v14 = vadd.f32 %v10492_v0, %v7395_v10  ;;  %2778 = vmatprep.mubr.bf16.mxu1 %v9352_v41  ;;  %3125 = vmatprep.mubr.bf16.mxu0 %v9354_v40  ;;  %v9358_v0 = vld [vmem:[%s12218_s3 + $0x4fc] ss:$12 sps:$4 sm:$0xff]  }
 0x260   :  { %v7396_v27 = vpop.f32.mrb[48].mxu1  ;;  %v8716_v4 = vpack.i.bf16 %v1365_v14, %v1362_v6  ;;  %v7456_v25 = vpop.f32.mrb[80].mxu0 }
 0x261   :  { %v7397_v9 = vpop.f32.mrb[49].mxu1  ;;  %v7457_v8 = vpop.f32.mrb[81].mxu0 }
 0x262   :  { %v7398_v38 = vadd.f32 %v7397_v9, %v7396_v27  ;;  %v7399_v13 = vpop.f32.mrb[50].mxu1  ;;  %8717 = vrot.lane.b32.xlu1 %v8716_v4, %s9496_s20  ;;  %v10589_v41 = vadd.f32 %v7457_v8, %v7456_v25  ;;  %v7459_v40 = vpop.f32.mrb[82].mxu0  ;;  %v9361_v8 = vld [vmem:[%s12218_s3 + $0x4f8] ss:$12 sps:$4 sm:$0xff]  }
 0x263   :  { %v7400_v54 = vpop.f32.mrb[51].mxu1  ;;  %v7460_v3 = vpop.f32.mrb[83].mxu0 }
 0x264   :  { %v7401_v44 = vadd.f32 %v7400_v54, %v7399_v13  ;;  %v1370_v6 = vadd.f32 %v7398_v38, %v10509_v26  ;;  %v10592_v27 = vadd.f32 %v7460_v3, %v7459_v40  ;;  %v9362_v26 = vld [vmem:[%s12218_s3 + $0x4a0] ss:$12 sps:$4 sm:$0xff]   ;;  %v9365_v40 = vld [vmem:[%s12218_s3 + $0x4b8] ss:$12 sps:$4 sm:$0xff]  }
 0x265   :  { %2779 = vmatmul.mubr.bf16.gmra.mrb[156].mxu1 %v9356_v59  ;;  %3126 = vmatmul.mubr.bf16.gmra.mrb[188].mxu0 %v9357_v42 }
 0x266   :  { %v1373_v4 = vadd.f32 %v7401_v44, %v10522_v61  ;;  %3133 = vmatprep.mubr.bf16.mxu0 %v9358_v0  ;;  %8335 = vmatprep.mubr.msk.bf16.mxu1 %vm806_vm3, %v9360_v53  ;;  %v9363_v61 = vld [vmem:[%s12218_s3 + $0x514] ss:$12 sps:$4 sm:$0xff]  }
 0x268   :  { %v8721_v10 = vpack.i.bf16 %v1373_v4, %v1370_v6  ;;  %v7402_v14 = vpop.f32.mrb[52].mxu1  ;;  %v7462_v9 = vpop.f32.mrb[84].mxu0 }
 0x269   :  { %v7403_v25 = vpop.f32.mrb[53].mxu1  ;;  %v7463_v38 = vpop.f32.mrb[85].mxu0 }
 0x26a   :  { %v7404_v59 = vadd.f32 %v7403_v25, %v7402_v14  ;;  %v7405_v42 = vpop.f32.mrb[54].mxu1  ;;  %8722 = vrot.lane.b32.xlu1 %v8721_v10, %s9496_s20  ;;  %v10606_v13 = vadd.f32 %v7463_v38, %v7462_v9  ;;  %v7465_v0 = vpop.f32.mrb[86].mxu0 }
 0x26b   :  { %v7406_v53 = vpop.f32.mrb[55].mxu1  ;;  %v7466_v54 = vpop.f32.mrb[87].mxu0 }
 0x26c   :  { %v1378_v3 = vadd.f32 %v10501_v30, %v7404_v59  ;;  %v7407_v44 = vadd.f32 %v7406_v53, %v7405_v42  ;;  %v10612_v6 = vadd.f32 %v7466_v54, %v7465_v0  ;;  %v9366_v30 = vld [vmem:[%s12218_s3 + $0x510] ss:$12 sps:$4 sm:$0xff]   ;;  %v9368_v59 = vld [vmem:[%s12218_s3 + $0x52c] ss:$12 sps:$4 sm:$0xff]   ;;  %v9370_v53 = vld [vmem:[%s12218_s3 + $0x4e8] ss:$12 sps:$4 sm:$0xff]  }
 0x26d   :  { %3134 = vmatmul.mubr.bf16.gmra.mrb[192].mxu0 %v9361_v8  ;;  %8336 = vmatmul.mubr.msk.bf16.vlgmr.msra.gmra.mrb[160].mxu1 %vm806_vm3, %v9362_v26  ;;  %v9367_v8 = vld [vmem:[%s12218_s3 + $0x4d0] ss:$12 sps:$4 sm:$0xff]  }
 0x26e   :  { %v1381_v4 = vadd.f32 %v10516_v52, %v7407_v44  ;;  %7825 = vmatpush3.bf16.msra.mxu1 %v9706_v48  ;;  %3141 = vmatprep.mubr.bf16.mxu0 %v9363_v61 }
 0x26f   :  { %7826 = vmatprep.subr.bf16.mxu1 %v9736_v56  ;;  %8339 = vmatprep.mubr.msk.bf16.mxu1 %vm806_vm3, %v9365_v40 }
 0x270   :  { %v7408_v10 = vpop.f32.mrb[56].mxu1  ;;  %v8726_v14 = vpack.i.bf16 %v1381_v4, %v1378_v3  ;;  %v7468_v9 = vpop.f32.mrb[88].mxu0 }
 0x271   :  { %v7409_v25 = vpop.f32.mrb[57].mxu1  ;;  %v7469_v52 = vpop.f32.mrb[89].mxu0 }
 0x272   :  { %v7410_v26 = vadd.f32 %v7409_v25, %v7408_v10  ;;  %7827 = vmatpush3.bf16.msra.mxu1 %v9704_v45  ;;  %v7411_v38 = vpop.f32.mrb[58].mxu1  ;;  %8727 = vrot.lane.b32.xlu1 %v8726_v14, %s9496_s20  ;;  %v10630_v42 = vadd.f32 %v7469_v52, %v7468_v9  ;;  %v7471_v61 = vpop.f32.mrb[90].mxu0 }
 0x273   :  { %7828 = vmatprep.subr.bf16.mxu1 %v9750_v15  ;;  %v7412_v0 = vpop.f32.mrb[59].mxu1  ;;  %v7472_v40 = vpop.f32.mrb[91].mxu0 }
 0x274   :  { %v1386_v54 = vadd.f32 %v7410_v26, %v10536_v23  ;;  %v7413_v3 = vadd.f32 %v7412_v0, %v7411_v38  ;;  %v10637_v44 = vadd.f32 %v7472_v40, %v7471_v61  ;;  %v9371_v23 = vld [vmem:[%s12218_s3 + $0x528] ss:$12 sps:$4 sm:$0xff]   ;;  %v9373_v26 = vld [vmem:[%s12218_s3 + $0x518] ss:$12 sps:$4 sm:$0xff]  }
 0x275   :  { %3142 = vmatmul.mubr.bf16.gmra.mrb[196].mxu0 %v9366_v30  ;;  %8340 = vmatmul.mubr.msk.bf16.gmra.mrb[164].mxu1 %vm806_vm3, %v9367_v8  ;;  %v9372_v30 = vld [vmem:[%s12218_s3 + $0x500] ss:$12 sps:$4 sm:$0xff]   ;;  %v9374_v0 = vld [vmem:[%s12218_s3 + $0x548] ss:$12 sps:$4 sm:$0xff]  }
 0x276   :  { %v1389_v4 = vadd.f32 %v7413_v3, %v10549_v57  ;;  %7829 = vmatpush3.bf16.msra.mxu1 %v9714_v2  ;;  %3149 = vmatprep.mubr.bf16.mxu0 %v9368_v59 }
 0x277   :  { %7830 = vmatprep.subr.bf16.mxu1 %v9747_v12  ;;  %8343 = vmatprep.mubr.msk.bf16.mxu1 %vm806_vm3, %v9370_v53 }
 0x278   :  { %v8731_v10 = vpack.i.bf16 %v1389_v4, %v1386_v54  ;;  %v7414_v14 = vpop.f32.mrb[60].mxu1  ;;  %v7474_v9 = vpop.f32.mrb[92].mxu0 }
 0x279   :  { %v7415_v25 = vpop.f32.mrb[61].mxu1  ;;  %v7475_v57 = vpop.f32.mrb[93].mxu0 }
 0x27a   :  { %v7416_v8 = vadd.f32 %v7415_v25, %v7414_v14  ;;  %7831 = vmatpush3.bf16.msra.mxu1 %v9712_v63  ;;  %v7417_v52 = vpop.f32.mrb[62].mxu1  ;;  %8732 = vrot.lane.b32.xlu1 %v8731_v10, %s9496_s20  ;;  %v10655_v38 = vadd.f32 %v7475_v57, %v7474_v9  ;;  %v7477_v59 = vpop.f32.mrb[94].mxu0 }
 0x27b   :  { %7832 = vmatprep.subr.bf16.mxu1 %v9762_v37  ;;  %v7418_v61 = vpop.f32.mrb[63].mxu1  ;;  %v7478_v53 = vpop.f32.mrb[95].mxu0 }
 0x27c   :  { %v1394_v40 = vadd.f32 %v10528_v19, %v7416_v8  ;;  %v7419_v54 = vadd.f32 %v7418_v61, %v7417_v52  ;;  %v10662_v3 = vadd.f32 %v7478_v53, %v7477_v59  ;;  %v9379_v53 = vld [vmem:[%s12218_s3 + $0x544] ss:$12 sps:$4 sm:$0xff]  }
 0x27d   :  { %3150 = vmatmul.mubr.bf16.gmra.mrb[200].mxu0 %v9371_v23  ;;  %8344 = vmatmul.mubr.msk.bf16.gmra.mrb[168].mxu1 %vm806_vm3, %v9372_v30  ;;  %v9375_v23 = vld [vmem:[%s12218_s3 + $0x530] ss:$12 sps:$4 sm:$0xff]  }
 0x27e   :  { %v1397_v4 = vadd.f32 %v10543_v46, %v7419_v54  ;;  %7833 = vmatpush3.bf16.msra.mxu1 %v9722_v20  ;;  %8347 = vmatprep.mubr.msk.bf16.mxu1 %vm806_vm3, %v9373_v26  ;;  %v9376_v46 = vld [vmem:[%s12218_s3 + $0x560] ss:$12 sps:$4 sm:$0xff]  }
 0x27f   :  { %7834 = vmatprep.subr.bf16.mxu1 %v9759_v33  ;;  %8363 = vmatprep.mubr.msk.bf16.mxu0 %vm806_vm3, %v9374_v0 }
 0x280   :  { %v8225_v10 = vpop.f32.mrb[64].mxu1  ;;  %v8736_v14 = vpack.i.bf16 %v1397_v4, %v1394_v40  ;;  %v7480_v9 = vpop.f32.mrb[96].mxu0 }
 0x281   :  { %v1717_v19 = vadd.f32 %v8225_v10, %v10589_v41  ;;  %v1708_v25 = vpop.f32.mrb[65].mxu1  ;;  %v7481_v30 = vpop.f32.mrb[97].mxu0 }
 0x282   :  { %v1709_v57 = vadd.f32 %v10569_v50, %v1708_v25  ;;  %7835 = vmatpush3.bf16.msra.mxu1 %v9720_v17  ;;  %v8226_v8 = vpop.f32.mrb[66].mxu1  ;;  %8737 = vrot.lane.b32.xlu1 %v8736_v14, %s9496_s20  ;;  %v7482_v52 = vadd.f32 %v7481_v30, %v7480_v9  ;;  %v7483_v26 = vpop.f32.mrb[98].mxu0  ;;  %v9377_v9 = vld [vmem:[%s12218_s3 + $0x540] ss:$12 sps:$4 sm:$0xff]   ;;  %s9507_s20 = smov 96  }
 0x283   :  { %v1720_v41 = vadd.f32 %v8226_v8, %v10592_v27  ;;  %7836 = vmatprep.subr.bf16.mxu1 %v9774_v60  ;;  %v1711_v59 = vpop.f32.mrb[67].mxu1  ;;  %v7484_v61 = vpop.f32.mrb[99].mxu0  ;;  %v9380_v27 = vld [vmem:[%s12218_s3 + $0x578] ss:$12 sps:$4 sm:$0xff]  }
 0x284   :  { %v1712_v0 = vadd.f32 %v10573_v11, %v1711_v59  ;;  %v7485_v50 = vadd.f32 %v7484_v61, %v7483_v26 }
 0x285   :  { %v8741_v40 = vpack.i.bf16 %v1720_v41, %v1717_v19  ;;  %8348 = vmatmul.mubr.msk.bf16.gmra.mrb[172].mxu1 %vm806_vm3, %v9375_v23  ;;  %8364 = vmatmul.mubr.msk.bf16.vlgmr.msra.gmra.mrb[204].mxu0 %vm806_vm3, %v9376_v46 }
 0x286   :  { %v8746_v54 = vpack.i.bf16 %v1712_v0, %v1709_v57  ;;  %7837 = vmatpush3.bf16.msra.mxu1 %v9730_v39  ;;  %7903 = vmatpush3.bf16.msra.mxu0 %v9706_v48  ;;  %v9384_v0 = vld [vmem:[%s12218_s3 + $0x558] ss:$12 sps:$4 sm:$0xff]  }
 0x287   :  { %7838 = vmatprep.subr.bf16.mxu1 %v9771_v55  ;;  %7904 = vmatprep.subr.bf16.mxu0 %v9736_v56  ;;  %v9381_v56 = vld [vmem:[%s12218_s3 + $0x590] ss:$12 sps:$4 sm:$0xff]  }
 0x288   :  { %8742 = vrot.lane.b32.xlu1 %v8741_v40, %s9497_s30  ;;  %v8229_v11 = vpop.f32.mrb[68].mxu1  ;;  %3464 = vmatprep.mubr.bf16.mxu1 %v9379_v53  ;;  %v7486_v4 = vpop.f32.mrb[100].mxu0 }
 0x289   :  { %v1733_v10 = vadd.f32 %v8229_v11, %v10630_v42  ;;  %v1724_v14 = vpop.f32.mrb[69].mxu1  ;;  %8367 = vmatprep.mubr.msk.bf16.mxu0 %vm806_vm3, %v9380_v27  ;;  %v7487_v48 = vpop.f32.mrb[101].mxu0 }
 0x28a   :  { %v1725_v19 = vadd.f32 %v10606_v13, %v1724_v14  ;;  %7839 = vmatpush3.bf16.msra.mxu1 %v9728_v36  ;;  %7905 = vmatpush3.bf16.msra.mxu0 %v9704_v45  ;;  %v8230_v25 = vpop.f32.mrb[70].mxu1  ;;  %v10707_v42 = vadd.f32 %v7487_v48, %v7486_v4  ;;  %v7489_v23 = vpop.f32.mrb[102].mxu0  ;;  %v9382_v45 = vld [vmem:[%s12218_s3 + $0x55c] ss:$12 sps:$4 sm:$0xff]  }
 0x28b   :  { %v1736_v46 = vadd.f32 %v8230_v25, %v10637_v44  ;;  %7906 = vmatprep.subr.bf16.mxu0 %v9750_v15  ;;  %8379 = vmatprep.subr.bf16.mxu1 %v9789_v21  ;;  %v1727_v30 = vpop.f32.mrb[71].mxu1  ;;  %v7490_v57 = vpop.f32.mrb[103].mxu0  ;;  %v9385_v15 = vld [vmem:[%s12218_s3 + $0x5a8] ss:$12 sps:$4 sm:$0xff]  }
 0x28c   :  { %v1728_v8 = vadd.f32 %v10612_v6, %v1727_v30  ;;  %8747 = vrot.lane.b32.xlu1 %v8746_v54, %s9497_s30  ;;  %v10714_v13 = vadd.f32 %v7490_v57, %v7489_v23 }
 0x28d   :  { %v8751_v26 = vpack.i.bf16 %v1736_v46, %v1733_v10  ;;  %3465 = vmatmul.mubr.bf16.vlgmr.msra.gmra.mrb[176].mxu1 %v9377_v9  ;;  %8368 = vmatmul.mubr.msk.bf16.gmra.mrb[208].mxu0 %vm806_vm3, %v9381_v56 }
 0x28e   :  { %v8756_v44 = vpack.i.bf16 %v1728_v8, %v1725_v19  ;;  %7907 = vmatpush3.bf16.msra.mxu0 %v9714_v2  ;;  %8380 = vmatpush3.bf16.msra.mxu1 %v9789_v21 }
 0x28f   :  { %7908 = vmatprep.subr.bf16.mxu0 %v9747_v12  ;;  %8381 = vmatprep.subr.bf16.mxu1 %v9786_v16  ;;  %v9386_v12 = vld [vmem:[%s12218_s3 + $0x5c0] ss:$12 sps:$4 sm:$0xff]  }
 0x290   :  { %8752 = vrot.lane.b32.xlu1 %v8751_v26, %s9497_s30  ;;  %v8233_v6 = vpop.f32.mrb[72].mxu1  ;;  %8757 = vrot.lane.b32.xlu0 %v8756_v44, %s9497_s30  ;;  %v7492_v41 = vpop.f32.mrb[104].mxu0 }
 0x291   :  { %v1749_v59 = vadd.f32 %v8233_v6, %v7482_v52  ;;  %v1740_v61 = vpop.f32.mrb[73].mxu1  ;;  %3472 = vmatprep.mubr.bf16.mxu1 %v9382_v45  ;;  %v7493_v2 = vpop.f32.mrb[105].mxu0  ;;  %8371 = vmatprep.mubr.msk.bf16.mxu0 %vm806_vm3, %v9385_v15  ;;  %v9398_v45 = vld [vmem:[%s12218_s3 + $0x5a4] ss:$12 sps:$4 sm:$0xff]   ;;  %v9401_v15 = vld [vmem:[%s12218_s3 + $0x61c] ss:$12 sps:$4 sm:$0xff]  }
 0x292   :  { %v1741_v21 = vadd.f32 %v10655_v38, %v1740_v61  ;;  %7909 = vmatpush3.bf16.msra.mxu0 %v9712_v63  ;;  %8382 = vmatpush3.bf16.msra.mxu1 %v9786_v16  ;;  %v8234_v52 = vpop.f32.mrb[74].mxu1  ;;  %v7494_v53 = vadd.f32 %v7493_v2, %v7492_v41  ;;  %v7495_v40 = vpop.f32.mrb[106].mxu0  ;;  %v9387_v63 = vld [vmem:[%s12218_s3 + $0x574] ss:$12 sps:$4 sm:$0xff]   ;;  %v9390_v16 = vld [vmem:[%s12218_s3 + $0x5d8] ss:$12 sps:$4 sm:$0xff]  }
 0x293   :  { %v1752_v27 = vadd.f32 %v8234_v52, %v7485_v50  ;;  %7910 = vmatprep.subr.bf16.mxu0 %v9762_v37  ;;  %8383 = vmatprep.subr.bf16.mxu1 %v9811_v47  ;;  %v1743_v54 = vpop.f32.mrb[75].mxu1  ;;  %v7496_v11 = vpop.f32.mrb[107].mxu0  ;;  %v9403_v52 = vld [vmem:[%s12218_s3 + $0x618] ss:$12 sps:$4 sm:$0xff]  }
 0x294   :  { %v1744_v4 = vadd.f32 %v10662_v3, %v1743_v54  ;;  %v7497_v10 = vadd.f32 %v7496_v11, %v7495_v40  ;;  %v9404_v54 = vld [vmem:[%s12218_s3 + $0x5bc] ss:$12 sps:$4 sm:$0xff]   ;;  %v9407_v11 = vld [vmem:[%s12218_s3 + $0x634] ss:$12 sps:$4 sm:$0xff]  }
 0x295   :  { %v8761_v14 = vpack.i.bf16 %v1752_v27, %v1749_v59  ;;  %3473 = vmatmul.mubr.bf16.gmra.mrb[180].mxu1 %v9384_v0  ;;  %8372 = vmatmul.mubr.msk.bf16.gmra.mrb[212].mxu0 %vm806_vm3, %v9386_v12 }
 0x296   :  { %v8766_v37 = vpack.i.bf16 %v1744_v4, %v1741_v21  ;;  %7911 = vmatpush3.bf16.msra.mxu0 %v9722_v20  ;;  %8384 = vmatpush3.bf16.msra.mxu1 %v9811_v47  ;;  %v9389_v20 = vld [vmem:[%s12218_s3 + $0x570] ss:$12 sps:$4 sm:$0xff]   ;;  %v9400_v21 = vld [vmem:[%s12218_s3 + $0x5a0] ss:$12 sps:$4 sm:$0xff]  }
 0x297   :  { %7912 = vmatprep.subr.bf16.mxu0 %v9759_v33  ;;  %8385 = vmatprep.subr.bf16.mxu1 %v9807_v43  ;;  %v9391_v33 = vld [vmem:[%s12218_s3 + $0x5f0] ss:$12 sps:$4 sm:$0xff]  }
 0x298   :  { %8762 = vrot.lane.b32.xlu1 %v8761_v14, %s9497_s30  ;;  %v8237_v38 = vpop.f32.mrb[76].mxu1  ;;  %8767 = vrot.lane.b32.xlu0 %v8766_v37, %s9497_s30  ;;  %v10755_v3 = vpop.f32.mrb[108].mxu0 }
 0x299   :  { %v1765_v50 = vadd.f32 %v8237_v38, %v7494_v53  ;;  %v1756_v9 = vpop.f32.mrb[77].mxu1  ;;  %3480 = vmatprep.mubr.bf16.mxu1 %v9387_v63  ;;  %8375 = vmatprep.mubr.msk.bf16.mxu0 %vm806_vm3, %v9390_v16  ;;  %v2079_v47 = vpop.f32.mrb[109].mxu0 }
 0x29a   :  { %v1757_v48 = vadd.f32 %v10707_v42, %v1756_v9  ;;  %7913 = vmatpush3.bf16.msra.mxu0 %v9720_v17  ;;  %8386 = vmatpush3.bf16.msra.mxu1 %v9807_v43  ;;  %v8238_v56 = vpop.f32.mrb[78].mxu1  ;;  %v10767_v19 = vpop.f32.mrb[110].mxu0  ;;  %v9392_v17 = vld [vmem:[%s12218_s3 + $0x58c] ss:$12 sps:$4 sm:$0xff]   ;;  %v9397_v43 = vld [vmem:[%s12218_s3 + $0x604] ss:$12 sps:$4 sm:$0xff]  }
 0x29b   :  { %v1768_v25 = vadd.f32 %v8238_v56, %v7497_v10  ;;  %7914 = vmatprep.subr.bf16.mxu0 %v9774_v60  ;;  %8387 = vmatprep.subr.bf16.mxu1 %v9832_v5  ;;  %v1759_v23 = vpop.f32.mrb[79].mxu1  ;;  %v2082_v46 = vpop.f32.mrb[111].mxu0 }
 0x29c   :  { %v1760_v30 = vadd.f32 %v10714_v13, %v1759_v23 }
 0x29d   :  { %v8771_v57 = vpack.i.bf16 %v1768_v25, %v1765_v50  ;;  %3481 = vmatmul.mubr.bf16.gmra.mrb[184].mxu1 %v9389_v20  ;;  %8376 = vmatmul.mubr.msk.bf16.gmra.mrb[216].mxu0 %vm806_vm3, %v9391_v33  ;;  %v9406_v33 = vld [vmem:[%s12218_s3 + $0x5b8] ss:$12 sps:$4 sm:$0xff]  }
 0x29e   :  { %v8776_v42 = vpack.i.bf16 %v1760_v30, %v1757_v48  ;;  %7915 = vmatpush3.bf16.msra.mxu0 %v9730_v39  ;;  %8388 = vmatpush3.bf16.msra.mxu1 %v9832_v5  ;;  %v9394_v39 = vld [vmem:[%s12218_s3 + $0x588] ss:$12 sps:$4 sm:$0xff]   ;;  %v9413_v25 = vld [vmem:[%s12218_s3 + $0x64c] ss:$12 sps:$4 sm:$0xff]  }
 0x29f   :  { %7916 = vmatprep.subr.bf16.mxu0 %v9771_v55  ;;  %8683 = vmatprep.subr.msk.bf16.mxu1 %vm831_vm5, %v9830_v29  ;;  %v9395_v55 = vld [vmem:[%s12218_s3 + $0x600] ss:$12 sps:$4 sm:$0xff]  }
 0x2a0   :  { %8772 = vrot.lane.b32.xlu1 %v8771_v57, %s9497_s30  ;;  %v7528_v60 = vpop.f32.mrb[80].mxu1  ;;  %8777 = vrot.lane.b32.xlu0 %v8776_v42, %s9497_s30  ;;  %v10786_v8 = vpop.f32.mrb[112].mxu0 }
 0x2a1   :  { %v7529_v13 = vpop.f32.mrb[81].mxu1  ;;  %3488 = vmatprep.mubr.bf16.mxu1 %v9392_v17  ;;  %3835 = vmatprep.mubr.bf16.mxu0 %v9397_v43  ;;  %v2095_v5 = vpop.f32.mrb[113].mxu0 }
 0x2a2   :  { %v7530_v29 = vadd.f32 %v7529_v13, %v7528_v60  ;;  %7917 = vmatpush3.bf16.msra.mxu0 %v9728_v36  ;;  %8390 = vmatpush3.bf16.msra.mxu1 %v9846_v7  ;;  %v7531_v26 = vpop.f32.mrb[82].mxu1  ;;  %v10802_v44 = vpop.f32.mrb[114].mxu0 }
 0x2a3   :  { %v7532_v6 = vpop.f32.mrb[83].mxu1  ;;  %v2098_v41 = vpop.f32.mrb[115].mxu0 }
 0x2a4   :  { %v7533_v59 = vadd.f32 %v7532_v6, %v7531_v26  ;;  %v2080_v61 = vadd.f32 %v7530_v29, %v2079_v47  ;;  %v9415_v29 = vld [vmem:[%s12218_s3 + $0x648] ss:$12 sps:$4 sm:$0xff]   ;;  %v9419_v6 = vld [vmem:[%s12218_s3 + $0x664] ss:$12 sps:$4 sm:$0xff]  }
 0x2a5   :  { %3489 = vmatmul.mubr.bf16.gmra.mrb[188].mxu1 %v9394_v39  ;;  %3836 = vmatmul.mubr.bf16.vlgmr.msra.gmra.mrb[220].mxu0 %v9395_v55  ;;  %v9412_v55 = vld [vmem:[%s12218_s3 + $0x5d0] ss:$12 sps:$4 sm:$0xff]  }
 0x2a6   :  { %v2083_v36 = vadd.f32 %v7533_v59, %v2082_v46  ;;  %3496 = vmatprep.mubr.bf16.mxu1 %v9398_v45  ;;  %3843 = vmatprep.mubr.bf16.mxu0 %v9401_v15  ;;  %v9416_v15 = vld [vmem:[%s12218_s3 + $0x5ec] ss:$12 sps:$4 sm:$0xff]  }
 0x2a8   :  { %v8781_v7 = vpack.i.bf16 %v2083_v36, %v2080_v61  ;;  %v7534_v0 = vpop.f32.mrb[84].mxu1  ;;  %v10804_v2 = vpop.f32.mrb[116].mxu0 }
 0x2a9   :  { %v7535_v12 = vpop.f32.mrb[85].mxu1  ;;  %v10812_v53 = vpop.f32.mrb[117].mxu0 }
 0x2aa   :  { %v7536_v40 = vadd.f32 %v7535_v12, %v7534_v0  ;;  %v7537_v27 = vpop.f32.mrb[86].mxu1  ;;  %8782 = vrot.lane.b32.xlu0 %v8781_v7, %s9498_s21  ;;  %v10821_v4 = vpop.f32.mrb[118].mxu0 }
 0x2ab   :  { %v7538_v10 = vpop.f32.mrb[87].mxu1  ;;  %v10823_v14 = vpop.f32.mrb[119].mxu0 }
 0x2ac   :  { %v2088_v63 = vadd.f32 %v10755_v3, %v7536_v40  ;;  %v7539_v16 = vadd.f32 %v7538_v10, %v7537_v27  ;;  %v9409_v3 = vld [vmem:[%s12218_s3 + $0x630] ss:$12 sps:$4 sm:$0xff]  }
 0x2ad   :  { %3497 = vmatmul.mubr.bf16.gmra.mrb[192].mxu1 %v9400_v21  ;;  %3844 = vmatmul.mubr.bf16.gmra.mrb[224].mxu0 %v9403_v52 }
 0x2ae   :  { %v2091_v37 = vadd.f32 %v10767_v19, %v7539_v16  ;;  %3504 = vmatprep.mubr.bf16.mxu1 %v9404_v54  ;;  %3851 = vmatprep.mubr.bf16.mxu0 %v9407_v11  ;;  %v9410_v19 = vld [vmem:[%s12218_s3 + $0x5d4] ss:$12 sps:$4 sm:$0xff]  }
 0x2b0   :  { %v7540_v38 = vpop.f32.mrb[88].mxu1  ;;  %v8786_v50 = vpack.i.bf16 %v2091_v37, %v2088_v63  ;;  %v10827_v9 = vpop.f32.mrb[120].mxu0  ;;  %v9418_v37 = vld [vmem:[%s12218_s3 + $0x5e8] ss:$12 sps:$4 sm:$0xff]  }
 0x2b1   :  { %v7541_v20 = vpop.f32.mrb[89].mxu1  ;;  %v10835_v47 = vpop.f32.mrb[121].mxu0 }
 0x2b2   :  { %v7542_v48 = vadd.f32 %v7541_v20, %v7540_v38  ;;  %v7543_v56 = vpop.f32.mrb[90].mxu1  ;;  %8787 = vrot.lane.b32.xlu1 %v8786_v50, %s9498_s21  ;;  %v10844_v23 = vpop.f32.mrb[122].mxu0  ;;  %v9424_v20 = vld [vmem:[%s12218_s3 + $0x67c] ss:$12 sps:$4 sm:$0xff]  }
 0x2b3   :  { %v7544_v46 = vpop.f32.mrb[91].mxu1  ;;  %v10846_v30 = vpop.f32.mrb[123].mxu0 }
 0x2b4   :  { %v7545_v57 = vadd.f32 %v7544_v46, %v7543_v56  ;;  %v2096_v17 = vadd.f32 %v7542_v48, %v2095_v5 }
 0x2b5   :  { %3505 = vmatmul.mubr.bf16.gmra.mrb[196].mxu1 %v9406_v33  ;;  %3852 = vmatmul.mubr.bf16.gmra.mrb[228].mxu0 %v9409_v3 }
 0x2b6   :  { %v2099_v43 = vadd.f32 %v7545_v57, %v2098_v41  ;;  %3512 = vmatprep.mubr.bf16.mxu1 %v9410_v19  ;;  %3859 = vmatprep.mubr.bf16.mxu0 %v9413_v25 }
 0x2b8   :  { %v8791_v42 = vpack.i.bf16 %v2099_v43, %v2096_v17  ;;  %v7546_v60 = vpop.f32.mrb[92].mxu1  ;;  %v7606_v13 = vpop.f32.mrb[124].mxu0 }
 0x2b9   :  { %v7547_v39 = vpop.f32.mrb[93].mxu1  ;;  %v7607_v26 = vpop.f32.mrb[125].mxu0 }
 0x2ba   :  { %v7548_v45 = vadd.f32 %v7547_v39, %v7546_v60  ;;  %v7549_v5 = vpop.f32.mrb[94].mxu1  ;;  %8792 = vrot.lane.b32.xlu0 %v8791_v42, %s9498_s21  ;;  %v10861_v41 = vadd.f32 %v7607_v26, %v7606_v13  ;;  %v7609_v59 = vpop.f32.mrb[126].mxu0  ;;  %v9423_v26 = vld [vmem:[%s12218_s3 + $0x620] ss:$12 sps:$4 sm:$0xff]  }
 0x2bb   :  { %v7550_v61 = vpop.f32.mrb[95].mxu1  ;;  %v7610_v36 = vpop.f32.mrb[127].mxu0 }
 0x2bc   :  { %v2104_v7 = vadd.f32 %v10786_v8, %v7548_v45  ;;  %v7551_v0 = vadd.f32 %v7550_v61, %v7549_v5  ;;  %v8703_v12 = vpop.permute.xlu0 %8702  ;;  %v10864_v21 = vadd.f32 %v7610_v36, %v7609_v59 }
 0x2bd   :  { %v8705_v52 = vunpack.i.h.bf16 %v8703_v12  ;;  %v8704_v40 = vunpack.i.l.bf16 %v8703_v12  ;;  %3513 = vmatmul.mubr.bf16.gmra.mrb[200].mxu1 %v9412_v55  ;;  %3860 = vmatmul.mubr.bf16.gmra.mrb[232].mxu0 %v9415_v29 }
 0x2be   :  { %v2107_v27 = vadd.f32 %v10802_v44, %v7551_v0  ;;  %3520 = vmatprep.mubr.bf16.mxu1 %v9416_v15  ;;  %3867 = vmatprep.mubr.bf16.mxu0 %v9419_v6  ;;  %v9421_v44 = vld [vmem:[%s12218_s3 + $0x660] ss:$12 sps:$4 sm:$0xff]  }
 0x2bf   :  { %v10869_v54 = vsel %vm4509_vm6, %v10343_v24, %v8704_v40  ;;  %v10873_v8 = vsel %vm4509_vm6, %v10355_v35, %v8705_v52  ;;  %v9422_v35 = vld [vmem:[%s12218_s3 + $0x608] ss:$12 sps:$4 sm:$0xff]  }
 0x2c0   :  { %v7552_v11 = vpop.f32.mrb[96].mxu1  ;;  %v8796_v10 = vpack.i.bf16 %v2107_v27, %v2104_v7  ;;  %v7612_v63 = vpop.f32.mrb[128].mxu0  ;;  %v9429_v15 = vld [vmem:[%s12218_s3 + $0x694] ss:$12 sps:$4 sm:$0xff]  }
 0x2c1   :  { %v7553_v16 = vpop.f32.mrb[97].mxu1  ;;  %v7613_v38 = vpop.f32.mrb[129].mxu0 }
 0x2c2   :  { %v7554_v50 = vadd.f32 %v7553_v16, %v7552_v11  ;;  %v7555_v24 = vpop.f32.mrb[98].mxu1  ;;  %8797 = vrot.lane.b32.xlu1 %v8796_v10, %s9498_s21  ;;  %v10888_v33 = vadd.f32 %v7613_v38, %v7612_v63  ;;  %v7615_v3 = vpop.f32.mrb[130].mxu0  ;;  %v9428_v38 = vld [vmem:[%s12218_s3 + $0x650] ss:$12 sps:$4 sm:$0xff]  }
 0x2c3   :  { %v7556_v48 = vpop.f32.mrb[99].mxu1  ;;  %v7616_v56 = vpop.f32.mrb[131].mxu0 }
 0x2c4   :  { %v7557_v19 = vadd.f32 %v7556_v48, %v7555_v24  ;;  %v2112_v25 = vadd.f32 %v7554_v50, %v10812_v53  ;;  %v8708_v46 = vpop.permute.xlu0 %8707  ;;  %v10891_v57 = vadd.f32 %v7616_v56, %v7615_v3 }
 0x2c5   :  { %v8710_v17 = vunpack.i.h.bf16 %v8708_v46  ;;  %v8709_v43 = vunpack.i.l.bf16 %v8708_v46  ;;  %3521 = vmatmul.mubr.bf16.gmra.mrb[204].mxu1 %v9418_v37  ;;  %3868 = vmatmul.mubr.bf16.gmra.mrb[236].mxu0 %v9421_v44 }
 0x2c6   :  { %v2115_v42 = vadd.f32 %v7557_v19, %v10823_v14  ;;  %8391 = vmatprep.mubr.msk.bf16.mxu1 %vm806_vm3, %v9422_v35  ;;  %3875 = vmatprep.mubr.bf16.mxu0 %v9424_v20  ;;  %v9426_v14 = vld [vmem:[%s12218_s3 + $0x678] ss:$12 sps:$4 sm:$0xff]  }
 0x2c7   :  { %v10897_v60 = vsel %vm4509_vm6, %v10341_v22, %v8709_v43  ;;  %v10901_v13 = vsel %vm4509_vm6, %v10350_v31, %v8710_v17  ;;  %v9427_v31 = vld [vmem:[%s12218_s3 + $0x638] ss:$12 sps:$4 sm:$0xff]  }
 0x2c8   :  { %v8801_v53 = vpack.i.bf16 %v2115_v42, %v2112_v25  ;;  %v7558_v39 = vpop.f32.mrb[100].mxu1  ;;  %v7618_v55 = vpop.f32.mrb[132].mxu0  ;;  %v9434_v35 = vld [vmem:[%s12218_s3 + $0x6ac] ss:$12 sps:$4 sm:$0xff]  }
 0x2c9   :  { %v7559_v29 = vpop.f32.mrb[101].mxu1  ;;  %v7619_v45 = vpop.f32.mrb[133].mxu0 }
 0x2ca   :  { %v7560_v5 = vadd.f32 %v7559_v29, %v7558_v39  ;;  %v7561_v22 = vpop.f32.mrb[102].mxu1  ;;  %8802 = vrot.lane.b32.xlu0 %v8801_v53, %s9498_s21  ;;  %v10916_v6 = vadd.f32 %v7619_v45, %v7618_v55  ;;  %v7621_v59 = vpop.f32.mrb[134].mxu0  ;;  %v9433_v45 = vld [vmem:[%s12218_s3 + $0x680] ss:$12 sps:$4 sm:$0xff]  }
 0x2cb   :  { %v7562_v61 = vpop.f32.mrb[103].mxu1  ;;  %v7622_v36 = vpop.f32.mrb[135].mxu0 }
 0x2cc   :  { %v2120_v7 = vadd.f32 %v10804_v2, %v7560_v5  ;;  %v7563_v0 = vadd.f32 %v7562_v61, %v7561_v22  ;;  %v8713_v12 = vpop.permute.xlu1 %8712  ;;  %v10919_v52 = vadd.f32 %v7622_v36, %v7621_v59 }
 0x2cd   :  { %v8715_v40 = vunpack.i.h.bf16 %v8713_v12  ;;  %v8714_v27 = vunpack.i.l.bf16 %v8713_v12  ;;  %8392 = vmatmul.mubr.msk.bf16.vlgmr.msra.gmra.mrb[208].mxu1 %vm806_vm3, %v9423_v26  ;;  %3876 = vmatmul.mubr.bf16.gmra.mrb[240].mxu0 %v9426_v14 }
 0x2ce   :  { %v2123_v11 = vadd.f32 %v10821_v4, %v7563_v0  ;;  %8395 = vmatprep.mubr.msk.bf16.mxu1 %vm806_vm3, %v9427_v31  ;;  %3883 = vmatprep.mubr.bf16.mxu0 %v9429_v15  ;;  %v9431_v4 = vld [vmem:[%s12218_s3 + $0x690] ss:$12 sps:$4 sm:$0xff]  }
 0x2cf   :  { %v10926_v10 = vsel %vm4509_vm6, %v10371_v51, %v8714_v27  ;;  %v10930_v2 = vsel %vm4509_vm6, %v10376_v62, %v8715_v40  ;;  %v9432_v62 = vld [vmem:[%s12218_s3 + $0x668] ss:$12 sps:$4 sm:$0xff]  }
 0x2d0   :  { %v7564_v63 = vpop.f32.mrb[104].mxu1  ;;  %v8806_v16 = vpack.i.bf16 %v2123_v11, %v2120_v7  ;;  %v7624_v37 = vpop.f32.mrb[136].mxu0 }
 0x2d1   :  { %v7565_v44 = vpop.f32.mrb[105].mxu1  ;;  %v7625_v50 = vpop.f32.mrb[137].mxu0 }
 0x2d2   :  { %v7566_v24 = vadd.f32 %v7565_v44, %v7564_v63  ;;  %v7567_v51 = vpop.f32.mrb[106].mxu1  ;;  %8807 = vrot.lane.b32.xlu1 %v8806_v16, %s9498_s21  ;;  %v10945_v20 = vadd.f32 %v7625_v50, %v7624_v37  ;;  %v7627_v3 = vpop.f32.mrb[138].mxu0 }
 0x2d3   :  { %v7568_v48 = vpop.f32.mrb[107].mxu1  ;;  %v7628_v56 = vpop.f32.mrb[139].mxu0 }
 0x2d4   :  { %v2128_v19 = vadd.f32 %v7566_v24, %v10835_v47  ;;  %v7569_v25 = vadd.f32 %v7568_v48, %v7567_v51  ;;  %v8718_v46 = vpop.permute.xlu1 %8717  ;;  %v10948_v17 = vadd.f32 %v7628_v56, %v7627_v3 }
 0x2d5   :  { %v8720_v43 = vunpack.i.h.bf16 %v8718_v46  ;;  %v8719_v42 = vunpack.i.l.bf16 %v8718_v46  ;;  %8396 = vmatmul.mubr.msk.bf16.gmra.mrb[212].mxu1 %vm806_vm3, %v9428_v38  ;;  %3884 = vmatmul.mubr.bf16.gmra.mrb[244].mxu0 %v9431_v4 }
 0x2d6   :  { %v2131_v53 = vadd.f32 %v7569_v25, %v10846_v30  ;;  %8399 = vmatprep.mubr.msk.bf16.mxu1 %vm806_vm3, %v9432_v62  ;;  %3891 = vmatprep.mubr.bf16.mxu0 %v9434_v35  ;;  %v9436_v30 = vld [vmem:[%s12218_s3 + $0x6a8] ss:$12 sps:$4 sm:$0xff]  }
 0x2d7   :  { %v10955_v39 = vsel %vm4509_vm6, %v10368_v49, %v8719_v42  ;;  %v10959_v47 = vsel %vm4509_vm6, %v10374_v58, %v8720_v43  ;;  %v9437_v58 = vld [vmem:[%s12218_s3 + $0x698] ss:$12 sps:$4 sm:$0xff]  }
 0x2d8   :  { %v8811_v55 = vpack.i.bf16 %v2131_v53, %v2128_v19  ;;  %v7570_v29 = vpop.f32.mrb[108].mxu1  ;;  %v7630_v26 = vpop.f32.mrb[140].mxu0 }
 0x2d9   :  { %v7571_v14 = vpop.f32.mrb[109].mxu1  ;;  %v7631_v5 = vpop.f32.mrb[141].mxu0 }
 0x2da   :  { %v7572_v22 = vadd.f32 %v7571_v14, %v7570_v29  ;;  %v7573_v49 = vpop.f32.mrb[110].mxu1  ;;  %8812 = vrot.lane.b32.xlu0 %v8811_v55, %s9498_s21  ;;  %v10971_v31 = vadd.f32 %v7631_v5, %v7630_v26  ;;  %v7633_v15 = vpop.f32.mrb[142].mxu0 }
 0x2db   :  { %v7574_v59 = vpop.f32.mrb[111].mxu1  ;;  %v7634_v61 = vpop.f32.mrb[143].mxu0 }
 0x2dc   :  { %v2136_v36 = vadd.f32 %v10827_v9, %v7572_v22  ;;  %v7575_v7 = vadd.f32 %v7574_v59, %v7573_v49  ;;  %v8723_v0 = vpop.permute.xlu1 %8722  ;;  %v10974_v12 = vadd.f32 %v7634_v61, %v7633_v15 }
 0x2dd   :  { %v8725_v40 = vunpack.i.h.bf16 %v8723_v0  ;;  %v8724_v27 = vunpack.i.l.bf16 %v8723_v0  ;;  %8400 = vmatmul.mubr.msk.bf16.gmra.mrb[216].mxu1 %vm806_vm3, %v9433_v45  ;;  %3892 = vmatmul.mubr.bf16.gmra.mrb[248].mxu0 %v9436_v30 }
 0x2de   :  { %v2139_v11 = vadd.f32 %v10844_v23, %v7575_v7  ;;  %8403 = vmatprep.mubr.msk.bf16.mxu1 %vm806_vm3, %v9437_v58  ;;  %v9438_v23 = vld [vmem:[%s12218_s3 + $0x6b0] ss:$12 sps:$4 sm:$0xff]   ;;  %s9499_s3 = smov 32  }
 0x2df   :  { %v10981_v63 = vsel %vm4509_vm6, %v10399_v18, %v8724_v27  ;;  %v10985_v9 = vsel %vm4509_vm6, %v10411_v32, %v8725_v40 }
 0x2e0   :  { %v8281_v16 = vpop.f32.mrb[112].mxu1  ;;  %v8816_v37 = vpack.i.bf16 %v2139_v11, %v2136_v36  ;;  %v7636_v44 = vpop.f32.mrb[144].mxu0 }
 0x2e1   :  { %v2459_v38 = vadd.f32 %v8281_v16, %v10888_v33  ;;  %v2450_v4 = vpop.f32.mrb[113].mxu1  ;;  %v7637_v50 = vpop.f32.mrb[145].mxu0 }
 0x2e2   :  { %v2451_v24 = vadd.f32 %v10861_v41, %v2450_v4  ;;  %v8282_v51 = vpop.f32.mrb[114].mxu1  ;;  %8817 = vrot.lane.b32.xlu1 %v8816_v37, %s9498_s21  ;;  %v7638_v18 = vadd.f32 %v7637_v50, %v7636_v44  ;;  %v7639_v62 = vpop.f32.mrb[146].mxu0  ;;  %s9500_s21 = smov 40  }
 0x2e3   :  { %v2462_v32 = vadd.f32 %v8282_v51, %v10891_v57  ;;  %v2453_v35 = vpop.f32.mrb[115].mxu1  ;;  %v7640_v3 = vpop.f32.mrb[147].mxu0 }
 0x2e4   :  { %v2454_v48 = vadd.f32 %v10864_v21, %v2453_v35  ;;  %v8728_v33 = vpop.permute.xlu1 %8727  ;;  %v7641_v56 = vadd.f32 %v7640_v3, %v7639_v62  ;;  %v12243_v3 = vld [vmem:[#allocation4_spill] sm:$0xff] }
 0x2e5   :  { %v8821_v19 = vpack.i.bf16 %v2462_v32, %v2459_v38  ;;  %v8730_v25 = vunpack.i.h.bf16 %v8728_v33  ;;  %v8729_v46 = vunpack.i.l.bf16 %v8728_v33  ;;  %8404 = vmatmul.mubr.msk.bf16.gmra.mrb[220].mxu1 %vm806_vm3, %v9438_v23  ;;  %vm12236_vm3 = vcmask 130048  }
 0x2e6   :  { %v8826_v43 = vpack.i.bf16 %v2454_v48, %v2451_v24  ;;  %v12244_v48 = vld [vmem:[#allocation5_spill] sm:$0xff] }
 0x2e7   :  { %v10998_v41 = vsel %vm4509_vm6, %v10409_v28, %v8729_v46  ;;  %v11002_v42 = vsel %vm4509_vm6, %v10416_v34, %v8730_v25  ;;  %8822 = vrot.lane.b32.xlu1 %v8821_v19, %s9499_s3 }
 0x2e8   :  { %v8285_v21 = vpop.f32.mrb[116].mxu1  ;;  %8827 = vrot.lane.b32.xlu0 %v8826_v43, %s9499_s3  ;;  %v7642_v57 = vpop.f32.mrb[148].mxu0 }
 0x2e9   :  { %v2475_v53 = vadd.f32 %v8285_v21, %v10945_v20  ;;  %v2466_v55 = vpop.f32.mrb[117].mxu1  ;;  %v7643_v29 = vpop.f32.mrb[149].mxu0 }
 0x2ea   :  { %v2467_v26 = vadd.f32 %v10916_v6, %v2466_v55  ;;  %v8286_v14 = vpop.f32.mrb[118].mxu1  ;;  %v7644_v28 = vadd.f32 %v7643_v29, %v7642_v57  ;;  %v7645_v45 = vpop.f32.mrb[150].mxu0  ;;  %v12242_v6 = vld [vmem:[#allocation3_spill] sm:$0xff] }
 0x2eb   :  { %v2478_v30 = vadd.f32 %v8286_v14, %v10948_v17  ;;  %v2469_v34 = vpop.f32.mrb[119].mxu1  ;;  %v7646_v5 = vpop.f32.mrb[151].mxu0 }
 0x2ec   :  { %v2470_v22 = vadd.f32 %v10919_v52, %v2469_v34  ;;  %v8733_v49 = vpop.permute.xlu1 %8732  ;;  %v7647_v58 = vadd.f32 %v7646_v5, %v7645_v45 }
 0x2ed   :  { %v8831_v15 = vpack.i.bf16 %v2478_v30, %v2475_v53  ;;  %v8735_v59 = vunpack.i.h.bf16 %v8733_v49  ;;  %v8734_v61 = vunpack.i.l.bf16 %v8733_v49 }
 0x2ee   :  { %v8836_v36 = vpack.i.bf16 %v2470_v22, %v2467_v26 }
 0x2ef   :  { %v11012_v20 = vsel %vm4509_vm6, %v10437_v1, %v8734_v61  ;;  %v11016_v7 = vsel %vm4509_vm6, %v12242_v6, %v8735_v59  ;;  %8832 = vrot.lane.b32.xlu1 %v8831_v15, %s9499_s3 }
 0x2f0   :  { %v8289_v17 = vpop.f32.mrb[120].mxu1  ;;  %8837 = vrot.lane.b32.xlu0 %v8836_v36, %s9499_s3  ;;  %v7648_v52 = vpop.f32.mrb[152].mxu0 }
 0x2f1   :  { %v2491_v0 = vadd.f32 %v8289_v17, %v7638_v18  ;;  %v2482_v40 = vpop.f32.mrb[121].mxu1  ;;  %v7649_v27 = vpop.f32.mrb[153].mxu0 }
 0x2f2   :  { %v2483_v11 = vadd.f32 %v10971_v31, %v2482_v40  ;;  %v8290_v16 = vpop.f32.mrb[122].mxu1  ;;  %v7650_v37 = vadd.f32 %v7649_v27, %v7648_v52  ;;  %v7651_v44 = vpop.f32.mrb[154].mxu0 }
 0x2f3   :  { %v2494_v1 = vadd.f32 %v8290_v16, %v7641_v56  ;;  %v2485_v38 = vpop.f32.mrb[123].mxu1  ;;  %v7652_v4 = vpop.f32.mrb[155].mxu0 }
 0x2f4   :  { %v2486_v23 = vadd.f32 %v10974_v12, %v2485_v38  ;;  %v8738_v50 = vpop.permute.xlu1 %8737  ;;  %v7653_v24 = vadd.f32 %v7652_v4, %v7651_v44 }
 0x2f5   :  { %v8841_v51 = vpack.i.bf16 %v2494_v1, %v2491_v0  ;;  %v8740_v62 = vunpack.i.h.bf16 %v8738_v50  ;;  %v8739_v32 = vunpack.i.l.bf16 %v8738_v50 }
 0x2f6   :  { %v8846_v35 = vpack.i.bf16 %v2486_v23, %v2483_v11 }
 0x2f7   :  { %v11024_v18 = vsel %vm4509_vm6, %v12243_v3, %v8739_v32  ;;  %v11028_v31 = vsel %vm4509_vm6, %v12244_v48, %v8740_v62  ;;  %8842 = vrot.lane.b32.xlu1 %v8841_v51, %s9499_s3 }
 0x2f8   :  { %v8293_v33 = vpop.f32.mrb[124].mxu1  ;;  %8847 = vrot.lane.b32.xlu0 %v8846_v35, %s9499_s3  ;;  %v8309_v12 = vpop.f32.mrb[156].mxu0 }
 0x2f9   :  { %v2498_v56 = vpop.f32.mrb[125].mxu1  ;;  %v11032_v19 = vadd.f32 %v8293_v33, %v7650_v37  ;;  %v2821_v25 = vpop.f32.mrb[157].mxu0 }
 0x2fa   :  { %v2499_v46 = vadd.f32 %v7644_v28, %v2498_v56  ;;  %v8743_v43 = vpop.permute.xlu1 %8742  ;;  %v8294_v21 = vpop.f32.mrb[126].mxu1 }
 0x2fb   :  { %v8745_v57 = vunpack.i.h.bf16 %v8743_v43  ;;  %v8744_v53 = vunpack.i.l.bf16 %v8743_v43  ;;  %v2501_v55 = vpop.f32.mrb[127].mxu1  ;;  %v11034_v29 = vadd.f32 %v8294_v21, %v7653_v24  ;;  %v8310_v26 = vpop.f32.mrb[158].mxu0 }
 0x2fc   :  { %v2502_v14 = vadd.f32 %v7647_v58, %v2501_v55  ;;  %v2824_v45 = vpop.f32.mrb[159].mxu0 }
 0x2fd   :  { %v11038_v30 = vsel %vm12236_vm3, %v10897_v60, %v8744_v53  ;;  %v11042_v34 = vsel %vm12236_vm3, %v10901_v13, %v8745_v57  ;;  %v8926_v28 = vpack.i.bf16 %v11034_v29, %v11032_v19 }
 0x2fe   :  { %v8851_v5 = vpack.i.bf16 %v2502_v14, %v2499_v46  ;;  %v8748_v22 = vpop.permute.xlu1 %8747 }
 0x2ff   :  { %v8750_v49 = vunpack.i.h.bf16 %v8748_v22  ;;  %v8749_v15 = vunpack.i.l.bf16 %v8748_v22 }
 0x300   :  { %v7684_v59 = vpop.f32.mrb[128].mxu1  ;;  %8852 = vrot.lane.b32.xlu0 %v8851_v5, %s9499_s3  ;;  %v11047_v58 = vpop.f32.mrb[160].mxu0 }
 0x301   :  { %v11051_v60 = vsel %vm12236_vm3, %v10869_v54, %v8749_v15  ;;  %v11055_v13 = vsel %vm12236_vm3, %v10873_v8, %v8750_v49  ;;  %v7685_v61 = vpop.f32.mrb[129].mxu1  ;;  %v2837_v36 = vpop.f32.mrb[161].mxu0 }
 0x302   :  { %v7686_v6 = vadd.f32 %v7685_v61, %v7684_v59  ;;  %v8753_v17 = vpop.permute.xlu1 %8752  ;;  %v7687_v52 = vpop.f32.mrb[130].mxu1 }
 0x303   :  { %v8755_v0 = vunpack.i.h.bf16 %v8753_v17  ;;  %v8754_v40 = vunpack.i.l.bf16 %v8753_v17  ;;  %v8758_v27 = vpop.permute.xlu0 %8757  ;;  %v7688_v11 = vpop.f32.mrb[131].mxu1 }
 0x304   :  { %v8760_v16 = vunpack.i.h.bf16 %v8758_v27  ;;  %v8759_v37 = vunpack.i.l.bf16 %v8758_v27  ;;  %v7689_v44 = vadd.f32 %v7688_v11, %v7687_v52  ;;  %v2822_v1 = vadd.f32 %v7686_v6, %v2821_v25  ;;  %v11057_v38 = vpop.f32.mrb[162].mxu0 }
 0x305   :  { %v11061_v54 = vsel %vm12236_vm3, %v10955_v39, %v8754_v40  ;;  %v11065_v8 = vsel %vm12236_vm3, %v10959_v47, %v8755_v0  ;;  %v2840_v4 = vpop.f32.mrb[163].mxu0 }
 0x306   :  { %v11069_v23 = vsel %vm12236_vm3, %v10926_v10, %v8759_v37  ;;  %v11073_v50 = vsel %vm12236_vm3, %v10930_v2, %v8760_v16  ;;  %v2825_v24 = vadd.f32 %v7689_v44, %v2824_v45 }
 0x308   :  { %v8856_v51 = vpack.i.bf16 %v2825_v24, %v2822_v1  ;;  %v7690_v62 = vpop.f32.mrb[132].mxu1  ;;  %v11075_v32 = vpop.f32.mrb[164].mxu0 }
 0x309   :  { %v7691_v39 = vpop.f32.mrb[133].mxu1  ;;  %v11077_v35 = vpop.f32.mrb[165].mxu0 }
 0x30a   :  { %v7692_v3 = vadd.f32 %v7691_v39, %v7690_v62  ;;  %v8763_v47 = vpop.permute.xlu1 %8762  ;;  %v7693_v48 = vpop.f32.mrb[134].mxu1  ;;  %8857 = vrot.lane.b32.xlu0 %v8856_v51, %s9500_s21 }
 0x30b   :  { %v8765_v10 = vunpack.i.h.bf16 %v8763_v47  ;;  %v8764_v33 = vunpack.i.l.bf16 %v8763_v47  ;;  %v8768_v56 = vpop.permute.xlu0 %8767  ;;  %v7694_v25 = vpop.f32.mrb[135].mxu1 }
 0x30c   :  { %v2830_v2 = vadd.f32 %v8309_v12, %v7692_v3  ;;  %v8770_v46 = vunpack.i.h.bf16 %v8768_v56  ;;  %v8769_v43 = vunpack.i.l.bf16 %v8768_v56  ;;  %v7695_v21 = vadd.f32 %v7694_v25, %v7693_v48  ;;  %v11080_v57 = vpop.f32.mrb[166].mxu0 }
 0x30d   :  { %v11084_v53 = vsel %vm12236_vm3, %v10998_v41, %v8764_v33  ;;  %v11088_v55 = vsel %vm12236_vm3, %v11002_v42, %v8765_v10  ;;  %v11090_v14 = vpop.f32.mrb[167].mxu0 }
 0x30e   :  { %v11094_v45 = vsel %vm12236_vm3, %v10981_v63, %v8769_v43  ;;  %v11098_v12 = vsel %vm12236_vm3, %v10985_v9, %v8770_v46  ;;  %v2833_v5 = vadd.f32 %v8310_v26, %v7695_v21 }
 0x310   :  { %v7696_v22 = vpop.f32.mrb[136].mxu1  ;;  %v8861_v49 = vpack.i.bf16 %v2833_v5, %v2830_v2  ;;  %v11100_v15 = vpop.f32.mrb[168].mxu0 }
 0x311   :  { %v7697_v41 = vpop.f32.mrb[137].mxu1  ;;  %v11102_v59 = vpop.f32.mrb[169].mxu0 }
 0x312   :  { %v7698_v42 = vadd.f32 %v7697_v41, %v7696_v22  ;;  %v8773_v61 = vpop.permute.xlu1 %8772  ;;  %v7699_v6 = vpop.f32.mrb[138].mxu1  ;;  %8862 = vrot.lane.b32.xlu1 %v8861_v49, %s9500_s21 }
 0x313   :  { %v8775_v17 = vunpack.i.h.bf16 %v8773_v61  ;;  %v8774_v63 = vunpack.i.l.bf16 %v8773_v61  ;;  %v8778_v52 = vpop.permute.xlu0 %8777  ;;  %v7700_v0 = vpop.f32.mrb[139].mxu1 }
 0x314   :  { %v8780_v40 = vunpack.i.h.bf16 %v8778_v52  ;;  %v8779_v9 = vunpack.i.l.bf16 %v8778_v52  ;;  %v7701_v27 = vadd.f32 %v7700_v0, %v7699_v6  ;;  %v2838_v26 = vadd.f32 %v7698_v42, %v2837_v36  ;;  %v11105_v11 = vpop.f32.mrb[170].mxu0 }
 0x315   :  { %v11109_v16 = vsel %vm12236_vm3, %v11024_v18, %v8774_v63  ;;  %v11113_v37 = vsel %vm12236_vm3, %v11028_v31, %v8775_v17  ;;  %v11115_v44 = vpop.f32.mrb[171].mxu0 }
 0x316   :  { %v11119_v1 = vsel %vm12236_vm3, %v11012_v20, %v8779_v9  ;;  %v11123_v24 = vsel %vm12236_vm3, %v11016_v7, %v8780_v40  ;;  %v2841_v36 = vadd.f32 %v7701_v27, %v2840_v4 }
 0x318   :  { %v8866_v51 = vpack.i.bf16 %v2841_v36, %v2838_v26  ;;  %v7702_v62 = vpop.f32.mrb[140].mxu1  ;;  %v7762_v39 = vpop.f32.mrb[172].mxu0 }
 0x319   :  { %v7703_v18 = vpop.f32.mrb[141].mxu1  ;;  %v7763_v3 = vpop.f32.mrb[173].mxu0 }
 0x31a   :  { %v7704_v47 = vadd.f32 %v7703_v18, %v7702_v62  ;;  %v7705_v48 = vpop.f32.mrb[142].mxu1  ;;  %8867 = vrot.lane.b32.xlu0 %v8866_v51, %s9500_s21  ;;  %v11126_v31 = vadd.f32 %v7763_v3, %v7762_v39  ;;  %v7765_v10 = vpop.f32.mrb[174].mxu0 }
 0x31b   :  { %v7706_v33 = vpop.f32.mrb[143].mxu1  ;;  %v7766_v20 = vpop.f32.mrb[175].mxu0 }
 0x31c   :  { %v2846_v56 = vadd.f32 %v11047_v58, %v7704_v47  ;;  %v7707_v25 = vadd.f32 %v7706_v33, %v7705_v48  ;;  %v8783_v7 = vpop.permute.xlu0 %8782  ;;  %v11129_v4 = vadd.f32 %v7766_v20, %v7765_v10 }
 0x31d   :  { %v8785_v2 = vunpack.i.h.bf16 %v8783_v7  ;;  %v8784_v46 = vunpack.i.l.bf16 %v8783_v7 }
 0x31e   :  { %v2849_v43 = vadd.f32 %v11057_v38, %v7707_v25 }
 0x31f   :  { %v11134_v21 = vsel %vm4543_vm7, %v11051_v60, %v8784_v46  ;;  %v11138_v5 = vsel %vm4543_vm7, %v11055_v13, %v8785_v2 }
 0x320   :  { %v7708_v22 = vpop.f32.mrb[144].mxu1  ;;  %v8871_v49 = vpack.i.bf16 %v2849_v43, %v2846_v56  ;;  %v7768_v58 = vpop.f32.mrb[176].mxu0 }
 0x321   :  { %v7709_v41 = vpop.f32.mrb[145].mxu1  ;;  %v7769_v42 = vpop.f32.mrb[177].mxu0 }
 0x322   :  { %v7710_v61 = vadd.f32 %v7709_v41, %v7708_v22  ;;  %v7711_v6 = vpop.f32.mrb[146].mxu1  ;;  %8872 = vrot.lane.b32.xlu1 %v8871_v49, %s9500_s21  ;;  %v11141_v17 = vadd.f32 %v7769_v42, %v7768_v58  ;;  %v7771_v38 = vpop.f32.mrb[178].mxu0 }
 0x323   :  { %v7712_v63 = vpop.f32.mrb[147].mxu1  ;;  %v7772_v52 = vpop.f32.mrb[179].mxu0 }
 0x324   :  { %v7713_v60 = vadd.f32 %v7712_v63, %v7711_v6  ;;  %v2854_v0 = vadd.f32 %v7710_v61, %v11077_v35  ;;  %v11144_v40 = vadd.f32 %v7772_v52, %v7771_v38 }
 0x326   :  { %v2857_v13 = vadd.f32 %v7713_v60, %v11090_v14 }
 0x328   :  { %v8876_v9 = vpack.i.bf16 %v2857_v13, %v2854_v0  ;;  %v7714_v27 = vpop.f32.mrb[148].mxu1  ;;  %v7774_v26 = vpop.f32.mrb[180].mxu0 }
 0x329   :  { %v7715_v36 = vpop.f32.mrb[149].mxu1  ;;  %v7775_v51 = vpop.f32.mrb[181].mxu0 }
 0x32a   :  { %v7716_v62 = vadd.f32 %v7715_v36, %v7714_v27  ;;  %v7717_v39 = vpop.f32.mrb[150].mxu1  ;;  %8877 = vrot.lane.b32.xlu0 %v8876_v9, %s9500_s21  ;;  %v11148_v18 = vadd.f32 %v7775_v51, %v7774_v26  ;;  %v7777_v3 = vpop.f32.mrb[182].mxu0 }
 0x32b   :  { %v7718_v47 = vpop.f32.mrb[151].mxu1  ;;  %v7778_v48 = vpop.f32.mrb[183].mxu0 }
 0x32c   :  { %v2862_v35 = vadd.f32 %v11075_v32, %v7716_v62  ;;  %v7719_v10 = vadd.f32 %v7718_v47, %v7717_v39  ;;  %v8793_v33 = vpop.permute.xlu0 %8792  ;;  %v11151_v20 = vadd.f32 %v7778_v48, %v7777_v3 }
 0x32d   :  { %v8795_v14 = vunpack.i.h.bf16 %v8793_v33  ;;  %v8794_v56 = vunpack.i.l.bf16 %v8793_v33 }
 0x32e   :  { %v2865_v25 = vadd.f32 %v11080_v57, %v7719_v10 }
 0x32f   :  { %v11156_v7 = vsel %vm4543_vm7, %v11069_v23, %v8794_v56  ;;  %v11160_v2 = vsel %vm4543_vm7, %v11073_v50, %v8795_v14 }
 0x330   :  { %v7720_v46 = vpop.f32.mrb[152].mxu1  ;;  %v8881_v43 = vpack.i.bf16 %v2865_v25, %v2862_v35  ;;  %v7780_v22 = vpop.f32.mrb[184].mxu0 }
 0x331   :  { %v7721_v32 = vpop.f32.mrb[153].mxu1  ;;  %v7781_v49 = vpop.f32.mrb[185].mxu0 }
 0x332   :  { %v7722_v58 = vadd.f32 %v7721_v32, %v7720_v46  ;;  %v7723_v41 = vpop.f32.mrb[154].mxu1  ;;  %8882 = vrot.lane.b32.xlu1 %v8881_v43, %s9500_s21  ;;  %v7782_v42 = vadd.f32 %v7781_v49, %v7780_v22  ;;  %v7783_v61 = vpop.f32.mrb[186].mxu0 }
 0x333   :  { %v7724_v57 = vpop.f32.mrb[155].mxu1  ;;  %v7784_v6 = vpop.f32.mrb[187].mxu0 }
 0x334   :  { %v11164_v23 = vadd.f32 %v7722_v58, %v11102_v59  ;;  %v7725_v38 = vadd.f32 %v7724_v57, %v7723_v41  ;;  %v7785_v63 = vadd.f32 %v7784_v6, %v7783_v61 }
 0x336   :  { %v11167_v50 = vadd.f32 %v7725_v38, %v11115_v44 }
 0x338   :  { %v8931_v52 = vpack.i.bf16 %v11167_v50, %v11164_v23  ;;  %v7726_v60 = vpop.f32.mrb[156].mxu1  ;;  %v7786_v0 = vpop.f32.mrb[188].mxu0 }
 0x339   :  { %v7727_v13 = vpop.f32.mrb[157].mxu1  ;;  %v7787_v9 = vpop.f32.mrb[189].mxu0 }
 0x33a   :  { %v7728_v27 = vadd.f32 %v7727_v13, %v7726_v60  ;;  %v7729_v26 = vpop.f32.mrb[158].mxu1  ;;  %v7788_v36 = vadd.f32 %v7787_v9, %v7786_v0  ;;  %v7789_v51 = vpop.f32.mrb[190].mxu0 }
 0x33b   :  { %v7730_v62 = vpop.f32.mrb[159].mxu1  ;;  %v7790_v39 = vpop.f32.mrb[191].mxu0 }
 0x33c   :  { %v11172_v59 = vadd.f32 %v11100_v15, %v7728_v27  ;;  %v7731_v3 = vadd.f32 %v7730_v62, %v7729_v26  ;;  %v8803_v47 = vpop.permute.xlu0 %8802  ;;  %v7791_v44 = vadd.f32 %v7790_v39, %v7789_v51 }
 0x33d   :  { %v8805_v48 = vunpack.i.h.bf16 %v8803_v47  ;;  %v8804_v35 = vunpack.i.l.bf16 %v8803_v47 }
 0x33e   :  { %v11175_v10 = vadd.f32 %v11105_v11, %v7731_v3 }
 0x33f   :  { %v11179_v33 = vsel %vm4543_vm7, %v11094_v45, %v8804_v35  ;;  %v11183_v14 = vsel %vm4543_vm7, %v11098_v12, %v8805_v48 }
 0x340   :  { %v8337_v56 = vpop.f32.mrb[160].mxu1  ;;  %v7792_v25 = vpop.f32.mrb[192].mxu0  ;;  %v8946_v15 = vpack.i.bf16 %v11175_v10, %v11172_v59  ;;  %v9439_v59 = vld [vmem:[%s12220_s4] sm:$0xff]   ;;  %v9440_v10 = vld [vmem:[%s12220_s4 + $0x8] sm:$0xff]  }
 0x341   :  { %v3201_v46 = vadd.f32 %v8337_v56, %v11141_v17  ;;  %v3192_v43 = vpop.f32.mrb[161].mxu1  ;;  %v7793_v22 = vpop.f32.mrb[193].mxu0  ;;  %8407 = vmatprep.subr.bf16.mxu1 %v9439_v59 }
 0x342   :  { %v3193_v11 = vadd.f32 %v11126_v31, %v3192_v43  ;;  %v8338_v32 = vpop.f32.mrb[162].mxu1  ;;  %v7794_v49 = vadd.f32 %v7793_v22, %v7792_v25  ;;  %v7795_v58 = vpop.f32.mrb[194].mxu0  ;;  %8408 = vmatpush3.bf16.msra.mxu1 %v9439_v59 }
 0x343   :  { %v3204_v45 = vadd.f32 %v8338_v32, %v11144_v40  ;;  %v3195_v41 = vpop.f32.mrb[163].mxu1  ;;  %v7796_v61 = vpop.f32.mrb[195].mxu0  ;;  %8409 = vmatprep.subr.bf16.mxu1 %v9440_v10 }
 0x344   :  { %v3196_v12 = vadd.f32 %v11129_v4, %v3195_v41  ;;  %v7797_v57 = vadd.f32 %v7796_v61, %v7795_v58 }
 0x345   :  { %v8886_v6 = vpack.i.bf16 %v3204_v45, %v3201_v46 }
 0x346   :  { %v8891_v38 = vpack.i.bf16 %v3196_v12, %v3193_v11  ;;  %8410 = vmatpush3.bf16.msra.mxu1 %v9440_v10 }
 0x347   :  { %8887 = vrot.lane.b32.xlu1 %v8886_v6, %s9501_s0 }
 0x348   :  { %v8341_v17 = vpop.f32.mrb[164].mxu1  ;;  %8892 = vrot.lane.b32.xlu0 %v8891_v38, %s9501_s0  ;;  %v7798_v60 = vpop.f32.mrb[196].mxu0 }
 0x349   :  { %v3217_v31 = vadd.f32 %v8341_v17, %v7782_v42  ;;  %v3208_v0 = vpop.f32.mrb[165].mxu1  ;;  %v7799_v13 = vpop.f32.mrb[197].mxu0 }
 0x34a   :  { %v3209_v9 = vadd.f32 %v11148_v18, %v3208_v0  ;;  %v8342_v40 = vpop.f32.mrb[166].mxu1  ;;  %v7800_v27 = vadd.f32 %v7799_v13, %v7798_v60  ;;  %v7801_v26 = vpop.f32.mrb[198].mxu0 }
 0x34b   :  { %v3220_v51 = vadd.f32 %v8342_v40, %v7785_v63  ;;  %v3211_v4 = vpop.f32.mrb[167].mxu1  ;;  %v7802_v62 = vpop.f32.mrb[199].mxu0 }
 0x34c   :  { %v3212_v39 = vadd.f32 %v11151_v20, %v3211_v4  ;;  %v8813_v3 = vpop.permute.xlu0 %8812  ;;  %v7803_v47 = vadd.f32 %v7802_v62, %v7801_v26 }
 0x34d   :  { %v8896_v48 = vpack.i.bf16 %v3220_v51, %v3217_v31  ;;  %v8815_v35 = vunpack.i.h.bf16 %v8813_v3  ;;  %v8814_v56 = vunpack.i.l.bf16 %v8813_v3 }
 0x34e   :  { %v8901_v25 = vpack.i.bf16 %v3212_v39, %v3209_v9 }
 0x34f   :  { %v11197_v42 = vsel %vm4543_vm7, %v11119_v1, %v8814_v56  ;;  %v11201_v18 = vsel %vm4543_vm7, %v11123_v24, %v8815_v35  ;;  %8897 = vrot.lane.b32.xlu1 %v8896_v48, %s9501_s0 }
 0x350   :  { %v8345_v63 = vpop.f32.mrb[168].mxu1  ;;  %8902 = vrot.lane.b32.xlu0 %v8901_v25, %s9501_s0  ;;  %v7804_v20 = vpop.f32.mrb[200].mxu0 }
 0x351   :  { %v3233_v46 = vadd.f32 %v8345_v63, %v7794_v49  ;;  %v3224_v43 = vpop.f32.mrb[169].mxu1  ;;  %v7805_v22 = vpop.f32.mrb[201].mxu0 }
 0x352   :  { %v3225_v11 = vadd.f32 %v7788_v36, %v3224_v43  ;;  %v8346_v32 = vpop.f32.mrb[170].mxu1  ;;  %v7806_v58 = vadd.f32 %v7805_v22, %v7804_v20  ;;  %v7807_v45 = vpop.f32.mrb[202].mxu0 }
 0x353   :  { %v3236_v41 = vadd.f32 %v8346_v32, %v7797_v57  ;;  %v3227_v1 = vpop.f32.mrb[171].mxu1  ;;  %v7808_v61 = vpop.f32.mrb[203].mxu0 }
 0x354   :  { %v3228_v12 = vadd.f32 %v7791_v44, %v3227_v1  ;;  %v7809_v6 = vadd.f32 %v7808_v61, %v7807_v45 }
 0x355   :  { %v8906_v24 = vpack.i.bf16 %v3236_v41, %v3233_v46 }
 0x356   :  { %v8911_v38 = vpack.i.bf16 %v3228_v12, %v3225_v11 }
 0x357   :  { %8907 = vrot.lane.b32.xlu1 %v8906_v24, %s9501_s0 }
 0x358   :  { %8912 = vrot.lane.b32.xlu0 %v8911_v38, %s9501_s0  ;;  %v8349_v17 = vpop.f32.mrb[172].mxu1  ;;  %v8365_v60 = vpop.f32.mrb[204].mxu0 }
 0x359   :  { %v3240_v49 = vpop.f32.mrb[173].mxu1  ;;  %v11207_v31 = vadd.f32 %v8349_v17, %v7806_v58  ;;  %v3563_v9 = vpop.f32.mrb[205].mxu0 }
 0x35a   :  { %v11209_v36 = vadd.f32 %v7800_v27, %v3240_v49  ;;  %v8350_v0 = vpop.f32.mrb[174].mxu1  ;;  %v8366_v40 = vpop.f32.mrb[206].mxu0 }
 0x35b   :  { %v3243_v13 = vpop.f32.mrb[175].mxu1  ;;  %v11211_v57 = vadd.f32 %v8350_v0, %v7809_v6  ;;  %v3566_v26 = vpop.f32.mrb[207].mxu0 }
 0x35c   :  { %v11213_v44 = vadd.f32 %v7803_v47, %v3243_v13  ;;  %v11217_v4 = vpop.permute.xlu0 %8827 }
 0x35d   :  { %v8966_v51 = vpack.i.bf16 %v11211_v57, %v11207_v31  ;;  %v9442_v57 = vld [vmem:[%s12220_s4 + $0x18] sm:$0xff]  }
 0x35e   :  { %v8951_v62 = vpack.i.bf16 %v11213_v44, %v11209_v36 }
 0x360   :  { %v7840_v39 = vpop.f32.mrb[176].mxu1  ;;  %v11221_v27 = vpop.f32.mrb[208].mxu0 }
 0x361   :  { %v7841_v3 = vpop.f32.mrb[177].mxu1  ;;  %v3579_v20 = vpop.f32.mrb[209].mxu0 }
 0x362   :  { %v7842_v48 = vadd.f32 %v7841_v3, %v7840_v39  ;;  %v7843_v35 = vpop.f32.mrb[178].mxu1  ;;  %v8838_v56 = vpop.permute.xlu0 %8837 }
 0x363   :  { %v8840_v25 = vunpack.i.h.bf16 %v8838_v56  ;;  %v8839_v47 = vunpack.i.l.bf16 %v8838_v56  ;;  %v7844_v63 = vpop.f32.mrb[179].mxu1  ;;  %v8370_v22 = vpop.f32.mrb[210].mxu0 }
 0x364   :  { %v7845_v46 = vadd.f32 %v7844_v63, %v7843_v35  ;;  %v3564_v43 = vadd.f32 %v7842_v48, %v3563_v9  ;;  %v3582_v58 = vpop.f32.mrb[211].mxu0 }
 0x365   :  { %v11225_v11 = vsel %vm12235_vm8, %v11156_v7, %v8839_v47  ;;  %v11229_v32 = vsel %vm12235_vm8, %v11160_v2, %v8840_v25 }
 0x366   :  { %v3567_v45 = vadd.f32 %v7845_v46, %v3566_v26 }
 0x368   :  { %v8916_v41 = vpack.i.bf16 %v3567_v45, %v3564_v43  ;;  %v7846_v1 = vpop.f32.mrb[180].mxu1  ;;  %v11231_v61 = vpop.f32.mrb[212].mxu0 }
 0x369   :  { %v7847_v12 = vpop.f32.mrb[181].mxu1  ;;  %v3595_v0 = vpop.f32.mrb[213].mxu0 }
 0x36a   :  { %v7848_v6 = vadd.f32 %v7847_v12, %v7846_v1  ;;  %v7849_v24 = vpop.f32.mrb[182].mxu1  ;;  %8917 = vrot.lane.b32.xlu0 %v8916_v41, %s9502_s2  ;;  %v8848_v38 = vpop.permute.xlu0 %8847 }
 0x36b   :  { %v8850_v17 = vunpack.i.h.bf16 %v8848_v38  ;;  %v8849_v7 = vunpack.i.l.bf16 %v8848_v38  ;;  %v7850_v49 = vpop.f32.mrb[183].mxu1  ;;  %v11234_v9 = vpop.f32.mrb[214].mxu0 }
 0x36c   :  { %v3572_v13 = vadd.f32 %v8365_v60, %v7848_v6  ;;  %v7851_v2 = vadd.f32 %v7850_v49, %v7849_v24  ;;  %v3598_v3 = vpop.f32.mrb[215].mxu0 }
 0x36d   :  { %v11238_v26 = vsel %vm12235_vm8, %v11179_v33, %v8849_v7  ;;  %v11242_v39 = vsel %vm12235_vm8, %v11183_v14, %v8850_v17 }
 0x36e   :  { %v3575_v48 = vadd.f32 %v8366_v40, %v7851_v2  ;;  %8932 = vrot.lane.b32.xlu0 %v8931_v52, %s9500_s21 }
 0x370   :  { %v7852_v35 = vpop.f32.mrb[184].mxu1  ;;  %v8921_v60 = vpack.i.bf16 %v3575_v48, %v3572_v13  ;;  %v11248_v56 = vpop.f32.mrb[216].mxu0 }
 0x371   :  { %v7853_v25 = vpop.f32.mrb[185].mxu1  ;;  %v11250_v47 = vpop.f32.mrb[217].mxu0 }
 0x372   :  { %v7854_v33 = vadd.f32 %v7853_v25, %v7852_v35  ;;  %v7855_v63 = vpop.f32.mrb[186].mxu1  ;;  %8922 = vrot.lane.b32.xlu1 %v8921_v60, %s9502_s2  ;;  %v8853_v14 = vpop.permute.xlu0 %8852 }
 0x373   :  { %v8855_v46 = vunpack.i.h.bf16 %v8853_v14  ;;  %v8854_v43 = vunpack.i.l.bf16 %v8853_v14  ;;  %v7856_v40 = vpop.f32.mrb[187].mxu1  ;;  %v11253_v45 = vpop.f32.mrb[218].mxu0 }
 0x374   :  { %v7857_v41 = vadd.f32 %v7856_v40, %v7855_v63  ;;  %v3580_v23 = vadd.f32 %v7854_v33, %v3579_v20  ;;  %v11255_v50 = vpop.f32.mrb[219].mxu0 }
 0x375   :  { %v11259_v52 = vsel %vm12235_vm8, %v11197_v42, %v8854_v43  ;;  %v11263_v1 = vsel %vm12235_vm8, %v11201_v18, %v8855_v46 }
 0x376   :  { %v3583_v12 = vadd.f32 %v7857_v41, %v3582_v58  ;;  %8927 = vrot.lane.b32.xlu1 %v8926_v28, %s9499_s3 }
 0x378   :  { %v8936_v6 = vpack.i.bf16 %v3583_v12, %v3580_v23  ;;  %v7858_v24 = vpop.f32.mrb[188].mxu1  ;;  %v7918_v38 = vpop.f32.mrb[220].mxu0 }
 0x379   :  { %v7859_v20 = vpop.f32.mrb[189].mxu1  ;;  %v7919_v17 = vpop.f32.mrb[221].mxu0 }
 0x37a   :  { %v7860_v7 = vadd.f32 %v7859_v20, %v7858_v24  ;;  %v7861_v49 = vpop.f32.mrb[190].mxu1  ;;  %8937 = vrot.lane.b32.xlu0 %v8936_v6, %s9502_s2  ;;  %v11270_v42 = vadd.f32 %v7919_v17, %v7918_v38  ;;  %v7921_v13 = vpop.f32.mrb[222].mxu0 }
 0x37b   :  { %v7862_v18 = vpop.f32.mrb[191].mxu1  ;;  %v7922_v2 = vpop.f32.mrb[223].mxu0 }
 0x37c   :  { %v3588_v58 = vadd.f32 %v11221_v27, %v7860_v7  ;;  %v7863_v48 = vadd.f32 %v7862_v18, %v7861_v49  ;;  %v11273_v35 = vadd.f32 %v7922_v2, %v7921_v13 }
 0x37e   :  { %v3591_v19 = vadd.f32 %v8370_v22, %v7863_v48  ;;  %8952 = vrot.lane.b32.xlu0 %v8951_v62, %s9501_s0 }
 0x380   :  { %v7864_v29 = vpop.f32.mrb[192].mxu1  ;;  %v8941_v28 = vpack.i.bf16 %v3591_v19, %v3588_v58  ;;  %v7924_v60 = vpop.f32.mrb[224].mxu0 }
 0x381   :  { %v7865_v25 = vpop.f32.mrb[193].mxu1  ;;  %v7925_v33 = vpop.f32.mrb[225].mxu0 }
 0x382   :  { %v7866_v63 = vadd.f32 %v7865_v25, %v7864_v29  ;;  %v7867_v14 = vpop.f32.mrb[194].mxu1  ;;  %8942 = vrot.lane.b32.xlu1 %v8941_v28, %s9502_s2  ;;  %v11280_v46 = vadd.f32 %v7925_v33, %v7924_v60  ;;  %v7927_v27 = vpop.f32.mrb[226].mxu0 }
 0x383   :  { %v7868_v43 = vpop.f32.mrb[195].mxu1  ;;  %v7928_v40 = vpop.f32.mrb[227].mxu0 }
 0x384   :  { %v7869_v22 = vadd.f32 %v7868_v43, %v7867_v14  ;;  %v3596_v41 = vadd.f32 %v7866_v63, %v3595_v0  ;;  %v11282_v23 = vadd.f32 %v7928_v40, %v7927_v27  ;;  %v9441_v40 = vld [vmem:[%s12220_s4 + $0x10] sm:$0xff]  }
 0x385   :  { %8411 = vmatprep.subr.bf16.mxu1 %v9441_v40 }
 0x386   :  { %v3599_v36 = vadd.f32 %v7869_v22, %v3598_v3  ;;  %8947 = vrot.lane.b32.xlu1 %v8946_v15, %s9500_s21  ;;  %8412 = vmatpush3.bf16.msra.mxu1 %v9441_v40 }
 0x387   :  { %8413 = vmatprep.subr.bf16.mxu1 %v9442_v57 }
 0x388   :  { %v8956_v44 = vpack.i.bf16 %v3599_v36, %v3596_v41  ;;  %v7870_v62 = vpop.f32.mrb[196].mxu1  ;;  %v7930_v12 = vpop.f32.mrb[228].mxu0 }
 0x389   :  { %v7871_v6 = vpop.f32.mrb[197].mxu1  ;;  %v7931_v24 = vpop.f32.mrb[229].mxu0 }
 0x38a   :  { %v7872_v38 = vadd.f32 %v7871_v6, %v7870_v62  ;;  %v7873_v20 = vpop.f32.mrb[198].mxu1  ;;  %8957 = vrot.lane.b32.xlu0 %v8956_v44, %s9502_s2  ;;  %v11289_v17 = vadd.f32 %v7931_v24, %v7930_v12  ;;  %v7933_v0 = vpop.f32.mrb[230].mxu0  ;;  %8414 = vmatpush3.bf16.msra.mxu1 %v9442_v57 }
 0x38b   :  { %v7874_v7 = vpop.f32.mrb[199].mxu1  ;;  %v7934_v49 = vpop.f32.mrb[231].mxu0 }
 0x38c   :  { %v3604_v3 = vadd.f32 %v11231_v61, %v7872_v38  ;;  %v7875_v13 = vadd.f32 %v7874_v7, %v7873_v20  ;;  %v11292_v18 = vadd.f32 %v7934_v49, %v7933_v0  ;;  %v9443_v7 = vld [vmem:[%s12220_s4 + $0x20] ss:$0 sps:$4 sm:$0xff]   ;;  %s9503_s4 = smov 64  }
 0x38d   :  { %8684 = vmatprep.subr.msk.bf16.mxu1 %vm288_vm0, %v9443_v7 }
 0x38e   :  { %v3607_v15 = vadd.f32 %v11234_v9, %v7875_v13 }
 0x390   :  { %v7876_v2 = vpop.f32.mrb[200].mxu1  ;;  %v8961_v58 = vpack.i.bf16 %v3607_v15, %v3604_v3  ;;  %v7936_v48 = vpop.f32.mrb[232].mxu0 }
 0x391   :  { %v7877_v61 = vpop.f32.mrb[201].mxu1  ;;  %v7937_v19 = vpop.f32.mrb[233].mxu0 }
 0x392   :  { %v7878_v29 = vadd.f32 %v7877_v61, %v7876_v2  ;;  %v7879_v28 = vpop.f32.mrb[202].mxu1  ;;  %8962 = vrot.lane.b32.xlu1 %v8961_v58, %s9502_s2  ;;  %v7938_v60 = vadd.f32 %v7937_v19, %v7936_v48  ;;  %v7939_v25 = vpop.f32.mrb[234].mxu0 }
 0x393   :  { %v7880_v33 = vpop.f32.mrb[203].mxu1  ;;  %v7940_v63 = vpop.f32.mrb[235].mxu0 }
 0x394   :  { %v11303_v14 = vadd.f32 %v7878_v29, %v11250_v47  ;;  %v7881_v9 = vadd.f32 %v7880_v33, %v7879_v28  ;;  %v7941_v27 = vadd.f32 %v7940_v63, %v7939_v25 }
 0x396   :  { %v11306_v43 = vadd.f32 %v7881_v9, %v11255_v50  ;;  %8967 = vrot.lane.b32.xlu1 %v8966_v51, %s9501_s0 }
 0x398   :  { %v9001_v22 = vpack.i.bf16 %v11306_v43, %v11303_v14  ;;  %v7882_v41 = vpop.f32.mrb[204].mxu1  ;;  %v7942_v47 = vpop.f32.mrb[236].mxu0 }
 0x399   :  { %v7883_v36 = vpop.f32.mrb[205].mxu1  ;;  %v7943_v44 = vpop.f32.mrb[237].mxu0 }
 0x39a   :  { %v7884_v62 = vadd.f32 %v7883_v36, %v7882_v41  ;;  %v7885_v50 = vpop.f32.mrb[206].mxu1  ;;  %v7944_v12 = vadd.f32 %v7943_v44, %v7942_v47  ;;  %v7945_v6 = vpop.f32.mrb[238].mxu0 }
 0x39b   :  { %v7886_v24 = vpop.f32.mrb[207].mxu1  ;;  %v7946_v31 = vpop.f32.mrb[239].mxu0 }
 0x39c   :  { %v3620_v51 = vadd.f32 %v11248_v56, %v7884_v62  ;;  %v7887_v38 = vadd.f32 %v7886_v24, %v7885_v50  ;;  %v7947_v20 = vadd.f32 %v7946_v31, %v7945_v6  ;;  %v4722_v56 = vsel %vm288_vm0, %v9443_v7, 0 }
 0x39d   :  { %8416 = vmatpush3.bf16.msra.mxu1 %v4722_v56  ;;  %vm4577_vm0 = vcmask 326656  }
 0x39e   :  { %v3623_v0 = vadd.f32 %v11253_v45, %v7887_v38 }
 0x3a0   :  { %v8393_v49 = vpop.f32.mrb[208].mxu1  ;;  %v9006_v3 = vpack.i.bf16 %v3623_v0, %v3620_v51  ;;  %v7948_v13 = vpop.f32.mrb[240].mxu0 }
 0x3a1   :  { %v3943_v59 = vadd.f32 %v8393_v49, %v11280_v46  ;;  %v3934_v10 = vpop.f32.mrb[209].mxu1  ;;  %v7949_v15 = vpop.f32.mrb[241].mxu0 }
 0x3a2   :  { %v3935_v2 = vadd.f32 %v11270_v42, %v3934_v10  ;;  %v8394_v58 = vpop.f32.mrb[210].mxu1  ;;  %9007 = vrot.lane.b32.xlu1 %v9006_v3, %s9502_s2  ;;  %v7950_v45 = vadd.f32 %v7949_v15, %v7948_v13  ;;  %v7951_v48 = vpop.f32.mrb[242].mxu0 }
 0x3a3   :  { %v3946_v61 = vadd.f32 %v8394_v58, %v11282_v23  ;;  %v3937_v19 = vpop.f32.mrb[211].mxu1  ;;  %v7952_v29 = vpop.f32.mrb[243].mxu0 }
 0x3a4   :  { %v3938_v46 = vadd.f32 %v11273_v35, %v3937_v19  ;;  %v7953_v28 = vadd.f32 %v7952_v29, %v7951_v48 }
 0x3a5   :  { %v8971_v25 = vpack.i.bf16 %v3946_v61, %v3943_v59 }
 0x3a6   :  { %v8976_v33 = vpack.i.bf16 %v3938_v46, %v3935_v2 }
 0x3a7   :  { %8972 = vrot.lane.b32.xlu0 %v8971_v25, %s9503_s4 }
 0x3a8   :  { %v8397_v63 = vpop.f32.mrb[212].mxu1  ;;  %v7954_v42 = vpop.f32.mrb[244].mxu0 }
 0x3a9   :  { %v3959_v9 = vadd.f32 %v8397_v63, %v7938_v60  ;;  %v3950_v40 = vpop.f32.mrb[213].mxu1  ;;  %v7955_v41 = vpop.f32.mrb[245].mxu0 }
 0x3aa   :  { %v3951_v47 = vadd.f32 %v11289_v17, %v3950_v40  ;;  %v8398_v36 = vpop.f32.mrb[214].mxu1  ;;  %v7956_v44 = vadd.f32 %v7955_v41, %v7954_v42  ;;  %v7957_v23 = vpop.f32.mrb[246].mxu0 }
 0x3ab   :  { %v3962_v62 = vadd.f32 %v8398_v36, %v7941_v27  ;;  %8977 = vrot.lane.b32.xlu0 %v8976_v33, %s9503_s4  ;;  %v3953_v35 = vpop.f32.mrb[215].mxu1  ;;  %v7958_v50 = vpop.f32.mrb[247].mxu0 }
 0x3ac   :  { %v3954_v6 = vadd.f32 %v11292_v18, %v3953_v35  ;;  %v7959_v24 = vadd.f32 %v7958_v50, %v7957_v23 }
 0x3ad   :  { %v8981_v31 = vpack.i.bf16 %v3962_v62, %v3959_v9  ;;  %v11346_v9 = vpop.permute.xlu0 %8857 }
 0x3ae   :  { %v8986_v57 = vpack.i.bf16 %v3954_v6, %v3951_v47 }
 0x3af   :  { %8982 = vrot.lane.b32.xlu0 %v8981_v31, %s9503_s4 }
 0x3b0   :  { %v8401_v60 = vpop.f32.mrb[216].mxu1  ;;  %v7960_v51 = vpop.f32.mrb[248].mxu0 }
 0x3b1   :  { %v3975_v38 = vadd.f32 %v8401_v60, %v7950_v45  ;;  %v3966_v0 = vpop.f32.mrb[217].mxu1  ;;  %v7961_v17 = vpop.f32.mrb[249].mxu0 }
 0x3b2   :  { %v3967_v7 = vadd.f32 %v7944_v12, %v3966_v0  ;;  %v8402_v49 = vpop.f32.mrb[218].mxu1  ;;  %v7962_v3 = vadd.f32 %v7961_v17, %v7960_v51  ;;  %v7963_v27 = vpop.f32.mrb[250].mxu0 }
 0x3b3   :  { %v3978_v13 = vadd.f32 %v8402_v49, %v7953_v28  ;;  %8987 = vrot.lane.b32.xlu0 %v8986_v57, %s9503_s4  ;;  %v3969_v59 = vpop.f32.mrb[219].mxu1  ;;  %v7964_v10 = vpop.f32.mrb[251].mxu0 }
 0x3b4   :  { %v3970_v18 = vadd.f32 %v7947_v20, %v3969_v59  ;;  %v7965_v15 = vadd.f32 %v7964_v10, %v7963_v27  ;;  %v8788_v20 = vpop.permute.xlu1 %8787  ;;  %v11348_v41 = vpop.permute.xlu0 %8867 }
 0x3b5   :  { %v8991_v56 = vpack.i.bf16 %v3978_v13, %v3975_v38  ;;  %v8790_v57 = vunpack.i.h.bf16 %v8788_v20  ;;  %v8789_v60 = vunpack.i.l.bf16 %v8788_v20  ;;  %v8869_v20 = vunpack.i.l.bf16 %v11348_v41 }
 0x3b6   :  { %v8996_v2 = vpack.i.bf16 %v3970_v18, %v3967_v7 }
 0x3b7   :  { %8992 = vrot.lane.b32.xlu0 %v8991_v56, %s9503_s4  ;;  %v4546_v27 = vsel %vm4543_vm7, %v11038_v30, %v8789_v60  ;;  %v4547_v13 = vsel %vm4543_vm7, %v11042_v34, %v8790_v57 }
 0x3b8   :  { %v8405_v58 = vpop.f32.mrb[220].mxu1  ;;  %v8798_v33 = vpop.permute.xlu1 %8797 }
 0x3b9   :  { %v3991_v48 = vadd.f32 %v8405_v58, %v7962_v3  ;;  %v3982_v45 = vpop.f32.mrb[221].mxu1  ;;  %v11350_v36 = vpop.permute.xlu0 %8877  ;;  %v8800_v51 = vunpack.i.h.bf16 %v8798_v33  ;;  %v8799_v38 = vunpack.i.l.bf16 %v8798_v33 }
 0x3ba   :  { %v3983_v61 = vadd.f32 %v7956_v44, %v3982_v45  ;;  %v8406_v19 = vpop.f32.mrb[222].mxu1 }
 0x3bb   :  { %v3994_v12 = vadd.f32 %v8406_v19, %v7965_v15  ;;  %8997 = vrot.lane.b32.xlu0 %v8996_v2, %s9503_s4  ;;  %v3985_v29 = vpop.f32.mrb[223].mxu1  ;;  %v4550_v59 = vsel %vm4543_vm7, %v11061_v54, %v8799_v38  ;;  %v4551_v10 = vsel %vm4543_vm7, %v11065_v8, %v8800_v51  ;;  %v8830_v54 = vunpack.i.h.bf16 %v11217_v4 }
 0x3bc   :  { %v3986_v46 = vadd.f32 %v7959_v24, %v3985_v29  ;;  %v8808_v63 = vpop.permute.xlu1 %8807  ;;  %v11433_v38 = vsel %vm4577_vm0, %v11225_v11, %v8869_v20 }
 0x3bd   :  { %v9016_v28 = vpack.i.bf16 %v3994_v12, %v3991_v48  ;;  %v11352_v23 = vpop.permute.xlu0 %8892  ;;  %v8809_v17 = vunpack.i.l.bf16 %v8808_v63  ;;  %v8810_v49 = vunpack.i.h.bf16 %v8808_v63  ;;  %v8829_v48 = vunpack.i.l.bf16 %v11217_v4 }
 0x3be   :  { %v9011_v25 = vpack.i.bf16 %v3986_v46, %v3983_v61  ;;  %v8859_v12 = vunpack.i.l.bf16 %v11346_v9  ;;  %v8860_v46 = vunpack.i.h.bf16 %v11346_v9  ;;  %v8870_v63 = vunpack.i.h.bf16 %v11348_v41 }
 0x3bf   :  { %9017 = vrot.lane.b32.xlu1 %v9016_v28, %s9503_s4  ;;  %9002 = vrot.lane.b32.xlu0 %v9001_v22, %s9502_s2  ;;  %v4554_v2 = vsel %vm4543_vm7, %v11084_v53, %v8809_v17  ;;  %v4555_v30 = vsel %vm4543_vm7, %v11088_v55, %v8810_v49  ;;  %v4561_v28 = vsel %vm12235_vm8, %v11134_v21, %v8829_v48  ;;  %v8894_v11 = vunpack.i.l.bf16 %v11352_v23 }
 0x3c0   :  { %v8818_v42 = vpop.permute.xlu1 %8817 }
 0x3c1   :  { %v8819_v3 = vunpack.i.l.bf16 %v8818_v42  ;;  %v8820_v18 = vunpack.i.h.bf16 %v8818_v42 }
 0x3c2   :  { %v11356_v14 = vpop.permute.xlu0 %8902 }
 0x3c3   :  { %9012 = vrot.lane.b32.xlu0 %v9011_v25, %s9503_s4  ;;  %v11391_v34 = vsel %vm4543_vm7, %v11109_v16, %v8819_v3  ;;  %v11399_v29 = vsel %vm4543_vm7, %v11113_v37, %v8820_v18  ;;  %v4562_v37 = vsel %vm12235_vm8, %v11138_v5, %v8830_v54  ;;  %v11437_v3 = vsel %vm4577_vm0, %v11229_v32, %v8870_v63 }
 0x3c4   :  { %v8823_v40 = vpop.permute.xlu1 %8822  ;;  %v4579_v5 = vsel %vm4577_vm0, %v4562_v37, %v8860_v46  ;;  %v8895_v18 = vunpack.i.h.bf16 %v11352_v23 }
 0x3c5   :  { %v8824_v15 = vunpack.i.l.bf16 %v8823_v40  ;;  %v8825_v58 = vunpack.i.h.bf16 %v8823_v40 }
 0x3c7   :  { %v4563_v55 = vsel %vm12235_vm8, %v4546_v27, %v8824_v15  ;;  %v4564_v4 = vsel %vm12235_vm8, %v4547_v13, %v8825_v58 }
 0x3c8   :  { %v8833_v47 = vpop.permute.xlu1 %8832 }
 0x3c9   :  { %v8834_v8 = vunpack.i.l.bf16 %v8833_v47  ;;  %v8835_v45 = vunpack.i.h.bf16 %v8833_v47 }
 0x3ca   :  { %v11360_v22 = vpop.permute.xlu0 %8912 }
 0x3cb   :  { %v4567_v33 = vsel %vm12235_vm8, %v4550_v59, %v8834_v8  ;;  %v4568_v40 = vsel %vm12235_vm8, %v4551_v10, %v8835_v45  ;;  %v8879_v59 = vunpack.i.l.bf16 %v11350_v36 }
 0x3cc   :  { %v8843_v44 = vpop.permute.xlu1 %8842 }
 0x3cd   :  { %v8845_v61 = vunpack.i.h.bf16 %v8843_v44  ;;  %v8844_v19 = vunpack.i.l.bf16 %v8843_v44  ;;  %v4578_v44 = vsel %vm4577_vm0, %v4561_v28, %v8859_v12  ;;  %v4586_v23 = vsel %vm4577_vm0, %v11238_v26, %v8879_v59 }
 0x3cf   :  { %v11418_v47 = vsel %vm12235_vm8, %v4554_v2, %v8844_v19  ;;  %v11421_v21 = vsel %vm12235_vm8, %v4555_v30, %v8845_v61  ;;  %v4595_v19 = vsel %vm12234_vm9, %v4578_v44, %v8894_v11  ;;  %v8904_v44 = vunpack.i.l.bf16 %v11356_v14 }
 0x3d0   :  { %v11354_v62 = vpop.permute.xlu1 %8862 }
 0x3d1   :  { %v8864_v16 = vunpack.i.l.bf16 %v11354_v62  ;;  %v8865_v25 = vunpack.i.h.bf16 %v11354_v62 }
 0x3d3   :  { %v4580_v41 = vsel %vm4577_vm0, %v4563_v55, %v8864_v16  ;;  %v4581_v51 = vsel %vm4577_vm0, %v4564_v4, %v8865_v25 }
 0x3d4   :  { %v11358_v43 = vpop.permute.xlu1 %8872 }
 0x3d5   :  { %v8874_v42 = vunpack.i.l.bf16 %v11358_v43  ;;  %v8875_v27 = vunpack.i.h.bf16 %v11358_v43 }
 0x3d7   :  { %v4584_v13 = vsel %vm4577_vm0, %v4567_v33, %v8874_v42  ;;  %v4585_v54 = vsel %vm4577_vm0, %v4568_v40, %v8875_v27 }
 0x3d8   :  { %v11362_v35 = vpop.permute.xlu1 %8882 }
 0x3d9   :  { %v8884_v33 = vunpack.i.l.bf16 %v11362_v35  ;;  %v8885_v40 = vunpack.i.h.bf16 %v11362_v35 }
 0x3dc   :  { %v11364_v50 = vpop.permute.xlu0 %8917  ;;  %v11366_v6 = vpop.permute.xlu1 %8887 }
 0x3dd   :  { %v8890_v57 = vunpack.i.h.bf16 %v11366_v6  ;;  %v8889_v60 = vunpack.i.l.bf16 %v11366_v6  ;;  %v8880_v6 = vunpack.i.h.bf16 %v11350_v36  ;;  %v8920_v43 = vunpack.i.h.bf16 %v11364_v50 }
 0x3de   :  { %v8919_v48 = vunpack.i.l.bf16 %v11364_v50  ;;  %v4596_v50 = vsel %vm12234_vm9, %v4579_v5, %v8895_v18 }
 0x3df   :  { %v4598_v32 = vsel %vm12234_vm9, %v4581_v51, %v8890_v57  ;;  %v4587_v61 = vsel %vm4577_vm0, %v11242_v39, %v8880_v6  ;;  %v4613_v20 = vsel %vm4611_vm10, %v4596_v50, %v8920_v43 }
 0x3e0   :  { %v11368_v24 = vpop.permute.xlu1 %8897  ;;  %v11370_v31 = vpop.permute.xlu0 %8932  ;;  %v4612_v25 = vsel %vm4611_vm10, %v4595_v19, %v8919_v48 }
 0x3e1   :  { %v8900_v46 = vunpack.i.h.bf16 %v11368_v24  ;;  %v8899_v16 = vunpack.i.l.bf16 %v11368_v24  ;;  %v8905_v24 = vunpack.i.h.bf16 %v11356_v14  ;;  %v4588_v14 = vsel %vm4577_vm0, %v11418_v47, %v8884_v33 }
 0x3e3   :  { %v4601_v57 = vsel %vm12234_vm9, %v4584_v13, %v8899_v16  ;;  %v4600_v47 = vsel %vm12234_vm9, %v11437_v3, %v8905_v24  ;;  %v8935_v16 = vunpack.i.h.bf16 %v11370_v31 }
 0x3e4   :  { %v11372_v0 = vpop.permute.xlu1 %8907 }
 0x3e5   :  { %v8909_v13 = vunpack.i.l.bf16 %v11372_v0  ;;  %v8910_v11 = vunpack.i.h.bf16 %v11372_v0  ;;  %v4589_v0 = vsel %vm4577_vm0, %v11421_v21, %v8885_v40 }
 0x3e8   :  { %v8923_v56 = vpop.permute.xlu1 %8922 }
 0x3e9   :  { %v8925_v17 = vunpack.i.h.bf16 %v8923_v56  ;;  %v8924_v49 = vunpack.i.l.bf16 %v8923_v56  ;;  %v4597_v56 = vsel %vm12234_vm9, %v4580_v41, %v8889_v60  ;;  %v4602_v60 = vsel %vm12234_vm9, %v4585_v54, %v8900_v46 }
 0x3eb   :  { %v4614_v30 = vsel %vm4611_vm10, %v4597_v56, %v8924_v49  ;;  %v4615_v36 = vsel %vm4611_vm10, %v4598_v32, %v8925_v17 }
 0x3ec   :  { %v11374_v7 = vpop.permute.xlu0 %8937  ;;  %v11414_v9 = vpop.permute.xlu1 %8927 }
 0x3ed   :  { %v8940_v27 = vunpack.i.h.bf16 %v11374_v7  ;;  %v8939_v59 = vunpack.i.l.bf16 %v11374_v7  ;;  %v4599_v7 = vsel %vm12234_vm9, %v11433_v38, %v8904_v44  ;;  %v4605_v38 = vsel %vm12234_vm9, %v4588_v14, %v8909_v13 }
 0x3ee   :  { %v8929_v50 = vunpack.i.l.bf16 %v11414_v9 }
 0x3ef   :  { %v4616_v48 = vsel %vm4611_vm10, %v4599_v7, %v8939_v59 }
 0x3f0   :  { %v11395_v53 = vpop.permute.xlu0 %8952 }
 0x3f1   :  { %v8954_v59 = vunpack.i.l.bf16 %v11395_v53 }
 0x3f4   :  { %v8943_v10 = vpop.permute.xlu1 %8942 }
 0x3f5   :  { %v8945_v37 = vunpack.i.h.bf16 %v8943_v10  ;;  %v8944_v39 = vunpack.i.l.bf16 %v8943_v10 }
 0x3f7   :  { %v4618_v10 = vsel %vm4611_vm10, %v4601_v57, %v8944_v39  ;;  %v4619_v35 = vsel %vm4611_vm10, %v4602_v60, %v8945_v37  ;;  %v8930_v39 = vunpack.i.h.bf16 %v11414_v9 }
 0x3f8   :  { %v11462_v4 = vpop.permute.xlu1 %8947 }
 0x3f9   :  { %v8949_v40 = vunpack.i.l.bf16 %v11462_v4 }
 0x3fc   :  { %v11424_v62 = vpop.permute.xlu0 %8957 }
 0x404   :  { %v8963_v51 = vpop.permute.xlu1 %8962 }
 0x405   :  { %v8964_v54 = vunpack.i.l.bf16 %v8963_v51 }
 0x419   :  { %v8973_v15 = vpop.permute.xlu0 %8972 }
 0x41a   :  { %v8975_v2 = vunpack.i.h.bf16 %v8973_v15  ;;  %v8974_v58 = vunpack.i.l.bf16 %v8973_v15  ;;  %v8914_v15 = vunpack.i.l.bf16 %v11360_v22 }
 0x41c   :  { %v4631_v8 = vsel %vm12233_vm11, %v4614_v30, %v8974_v58  ;;  %v4632_v45 = vsel %vm12233_vm11, %v4615_v36, %v8975_v2  ;;  %v8915_v2 = vunpack.i.h.bf16 %v11360_v22  ;;  %v4617_v30 = vsel %vm4611_vm10, %v4600_v47, %v8940_v27 }
 0x41d   :  { %v4646_v12 = vpack.c.bf16 %v4632_v45, %v4631_v8  ;;  %v8978_v55 = vpop.permute.xlu0 %8977  ;;  %v8965_v36 = vunpack.i.h.bf16 %v8963_v51  ;;  %v8968_v8 = vpop.permute.xlu1 %8967  ;;  %v4606_v22 = vsel %vm12234_vm9, %v4589_v0, %v8910_v11  ;;  %v4603_v19 = vsel %vm12234_vm9, %v4586_v23, %v8914_v15 }
 0x41e   :  { %v8980_v26 = vunpack.i.h.bf16 %v8978_v55  ;;  %v8979_v28 = vunpack.i.l.bf16 %v8978_v55  ;;  %v4604_v46 = vsel %vm12234_vm9, %v4587_v61, %v8915_v2  ;;  %v8934_v23 = vunpack.i.l.bf16 %v11370_v31 }
 0x41f   :  { %v4623_v37 = vsel %vm4611_vm10, %v4606_v22, %v8965_v36  ;;  %v8969_v31 = vunpack.i.l.bf16 %v8968_v8 }
 0x420   :  { %v4629_v63 = vsel %vm12233_vm11, %v4612_v25, %v8979_v28  ;;  %v4630_v42 = vsel %vm12233_vm11, %v4613_v20, %v8980_v26  ;;  %v8960_v28 = vunpack.i.h.bf16 %v11424_v62  ;;  %v8959_v25 = vunpack.i.l.bf16 %v11424_v62 }
 0x421   :  { %v4645_v5 = vpack.c.bf16 %v4630_v42, %v4629_v63  ;;  %v8983_v41 = vpop.permute.xlu0 %8982  ;;  %v4622_v20 = vsel %vm4611_vm10, %v4605_v38, %v8964_v54  ;;  %v9008_v33 = vpop.permute.xlu1 %9007  ;;  %v4575_v62 = vsel %vm12235_vm8, %v11391_v34, %v8929_v50  ;;  %v8950_v42 = vunpack.i.h.bf16 %v11462_v4 }
 0x422   :  { %v8985_v17 = vunpack.i.h.bf16 %v8983_v41  ;;  %v8984_v49 = vunpack.i.l.bf16 %v8983_v41  ;;  %v4620_v57 = vsel %vm4611_vm10, %v4603_v19, %v8959_v25  ;;  %v4621_v60 = vsel %vm4611_vm10, %v4604_v46, %v8960_v28 }
 0x423   :  { %8417 = vmatprep.mubr.msk.bf16.mxu1 %vm4696_vm12, %v4645_v5  ;;  %v8970_v5 = vunpack.i.h.bf16 %v8968_v8  ;;  %v9010_v51 = vunpack.i.h.bf16 %v9008_v33  ;;  %v8955_v34 = vunpack.i.h.bf16 %v11395_v53 }
 0x424   :  { %v4635_v6 = vsel %vm12233_vm11, %v4618_v10, %v8984_v49  ;;  %v4636_v18 = vsel %vm12233_vm11, %v4619_v35, %v8985_v17  ;;  %8418 = vmatmul.mubr.msk.bf16.vlgmr.msra.gmra.mrb[224].mxu1 %vm4696_vm12, %v4646_v12  ;;  %v9009_v17 = vunpack.i.l.bf16 %v9008_v33  ;;  %v4576_v49 = vsel %vm12235_vm8, %v11399_v29, %v8930_v39 }
 0x425   :  { %v4648_v56 = vpack.c.bf16 %v4636_v18, %v4635_v6  ;;  %v8988_v32 = vpop.permute.xlu0 %8987  ;;  %v4592_v10 = vsel %vm4577_vm0, %v4575_v62, %v8949_v40  ;;  %v4593_v35 = vsel %vm4577_vm0, %v4576_v49, %v8950_v42 }
 0x426   :  { %v8990_v58 = vunpack.i.h.bf16 %v8988_v32  ;;  %v8989_v43 = vunpack.i.l.bf16 %v8988_v32  ;;  %v4609_v18 = vsel %vm12234_vm9, %v4592_v10, %v8969_v31  ;;  %v4610_v7 = vsel %vm12234_vm9, %v4593_v35, %v8970_v5 }
 0x427   :  { %v4626_v15 = vsel %vm4611_vm10, %v4609_v18, %v9009_v17 }
 0x428   :  { %v4633_v45 = vsel %vm12233_vm11, %v4616_v48, %v8989_v43  ;;  %v4634_v3 = vsel %vm12233_vm11, %v4617_v30, %v8990_v58  ;;  %v4590_v58 = vsel %vm4577_vm0, %v11259_v52, %v8934_v23  ;;  %v4591_v43 = vsel %vm4577_vm0, %v11263_v1, %v8935_v16  ;;  %v7128_v1 = vld [vmem:[%s12221_s5] ss:$0 sm:$0xff] }
 0x429   :  { %v4647_v12 = vpack.c.bf16 %v4634_v3, %v4633_v45  ;;  %v8993_v55 = vpop.permute.xlu0 %8992  ;;  %v4607_v36 = vsel %vm12234_vm9, %v4590_v58, %v8954_v59  ;;  %v4608_v54 = vsel %vm12234_vm9, %v4591_v43, %v8955_v34 }
 0x42a   :  { %v8995_v21 = vunpack.i.h.bf16 %v8993_v55  ;;  %v8994_v26 = vunpack.i.l.bf16 %v8993_v55 }
 0x42b   :  { %8421 = vmatprep.mubr.msk.bf16.mxu1 %vm4696_vm12, %v4647_v12 }
 0x42c   :  { %v4639_v61 = vsel %vm12233_vm11, %v4622_v20, %v8994_v26  ;;  %v4640_v63 = vsel %vm12233_vm11, %v4623_v37, %v8995_v21  ;;  %8422 = vmatmul.mubr.msk.bf16.gmra.mrb[228].mxu1 %vm4696_vm12, %v4648_v56  ;;  %v4627_v56 = vsel %vm4611_vm10, %v4610_v7, %v9010_v51 }
 0x42d   :  { %v4650_v24 = vpack.c.bf16 %v4640_v63, %v4639_v61  ;;  %v8998_v44 = vpop.permute.xlu0 %8997 }
 0x42e   :  { %v9000_v41 = vunpack.i.h.bf16 %v8998_v44  ;;  %v8999_v9 = vunpack.i.l.bf16 %v8998_v44 }
 0x430   :  { %v4637_v27 = vsel %vm12233_vm11, %v4620_v57, %v8999_v9  ;;  %v4638_v4 = vsel %vm12233_vm11, %v4621_v60, %v9000_v41 }
 0x431   :  { %v4649_v14 = vpack.c.bf16 %v4638_v4, %v4637_v27  ;;  %v9018_v13 = vpop.permute.xlu1 %9017  ;;  %v9003_v6 = vpop.permute.xlu0 %9002 }
 0x432   :  { %v9020_v29 = vunpack.i.h.bf16 %v9018_v13  ;;  %v9019_v11 = vunpack.i.l.bf16 %v9018_v13  ;;  %v9005_v32 = vunpack.i.h.bf16 %v9003_v6  ;;  %v9004_v47 = vunpack.i.l.bf16 %v9003_v6 }
 0x433   :  { %8425 = vmatprep.mubr.msk.bf16.mxu1 %vm4696_vm12, %v4649_v14 }
 0x434   :  { %v4643_v53 = vsel %vm12233_vm11, %v4626_v15, %v9019_v11  ;;  %v4644_v2 = vsel %vm12233_vm11, %v4627_v56, %v9020_v29  ;;  %8426 = vmatmul.mubr.msk.bf16.gmra.mrb[232].mxu1 %vm4696_vm12, %v4650_v24  ;;  %v4624_v8 = vsel %vm4611_vm10, %v4607_v36, %v9004_v47  ;;  %v4625_v45 = vsel %vm4611_vm10, %v4608_v54, %v9005_v32 }
 0x435   :  { %v4652_v48 = vpack.c.bf16 %v4644_v2, %v4643_v53  ;;  %v9013_v30 = vpop.permute.xlu0 %9012 }
 0x436   :  { %v9015_v0 = vunpack.i.h.bf16 %v9013_v30  ;;  %v9014_v38 = vunpack.i.l.bf16 %v9013_v30 }
 0x438   :  { %v4641_v3 = vsel %vm12233_vm11, %v4624_v8, %v9014_v38  ;;  %v4642_v22 = vsel %vm12233_vm11, %v4625_v45, %v9015_v0 }
 0x439   :  { %v4651_v52 = vpack.c.bf16 %v4642_v22, %v4641_v3 }
 0x43b   :  { %8429 = vmatprep.mubr.msk.bf16.mxu1 %vm4696_vm12, %v4651_v52 }
 0x43c   :  { %8430 = vmatmul.mubr.msk.bf16.gmra.mrb[236].mxu1 %vm4696_vm12, %v4652_v48 }
 0x4f7   :  { %v8419_v19 = vpop.f32.mrb[224].mxu1 }
 0x4f8   :  { %v4758_v50 = vpop.f32.mrb[225].mxu1  ;;  %v11553_v16 = vadd.f32 %v8419_v19, %v7128_v1 }
 0x4f9   :  { %v11551_v12 = vadd.f32 %v7128_v1, %v4758_v50  ;;  %v8420_v55 = vpop.f32.mrb[226].mxu1 }
 0x4fa   :  { %v4761_v46 = vpop.f32.mrb[227].mxu1  ;;  %v11559_v28 = vadd.f32 %v8420_v55, %v7128_v1  ;;  %v4824_v37 = vsel %vm12236_vm3, %v11553_v16, 0.0 }
 0x4fb   :  { %v11555_v21 = vadd.f32 %v7128_v1, %v4761_v46  ;;  %v4821_v26 = vsel %vm12236_vm3, %v11551_v12, 0.0 }
 0x4fc   :  { %v4826_v61 = vsel %vm12236_vm3, %v11559_v28, 0.0 }
 0x4fd   :  { %v4822_v25 = vsel %vm12236_vm3, %v11555_v21, 0.0 }
 0x4fe   :  { %v4823_v20 = vadd.f32 %v4822_v25, %v4821_v26  ;;  %v9444_v25 = vld [vmem:[%s12222_s8 + $0x1c] sm:$0xff]  }
 0x4ff   :  { %v8423_v23 = vpop.f32.mrb[228].mxu1  ;;  %8473 = vmatprep.mubr.bf16.mxu1 %v9444_v25 }
 0x500   :  { %v4825_v39 = vadd.f32 %v4824_v37, %v4823_v20  ;;  %v4774_v33 = vpop.f32.mrb[229].mxu1  ;;  %v4783_v24 = vadd.f32 %v8423_v23, %v7128_v1 }
 0x501   :  { %v11567_v63 = vadd.f32 %v7128_v1, %v4774_v33  ;;  %v8424_v62 = vpop.f32.mrb[230].mxu1 }
 0x502   :  { %v4827_v42 = vadd.f32 %v4826_v61, %v4825_v39  ;;  %v4777_v40 = vpop.f32.mrb[231].mxu1  ;;  %v4786_v41 = vadd.f32 %v8424_v62, %v7128_v1  ;;  %v4832_v60 = vsel %vm12236_vm3, %v4783_v24, 0.0 }
 0x503   :  { %v4828_v44 = vsel %vm12236_vm3, %v11567_v63, 0.0  ;;  %v4778_v5 = vadd.f32 %v7128_v1, %v4777_v40 }
 0x504   :  { %v4829_v31 = vadd.f32 %v4828_v44, %v4827_v42  ;;  %v4834_v34 = vsel %vm12236_vm3, %v4786_v41, 0.0 }
 0x505   :  { %v4830_v9 = vsel %vm12236_vm3, %v4778_v5, 0.0 }
 0x506   :  { %v4831_v57 = vadd.f32 %v4830_v9, %v4829_v31 }
 0x507   :  { %v8427_v51 = vpop.f32.mrb[232].mxu1 }
 0x508   :  { %v4833_v17 = vadd.f32 %v4832_v60, %v4831_v57  ;;  %v4790_v49 = vpop.f32.mrb[233].mxu1  ;;  %v4799_v35 = vadd.f32 %v8427_v51, %v7128_v1 }
 0x509   :  { %v4791_v27 = vadd.f32 %v7128_v1, %v4790_v49  ;;  %v8428_v4 = vpop.f32.mrb[234].mxu1 }
 0x50a   :  { %v4835_v59 = vadd.f32 %v4834_v34, %v4833_v17  ;;  %v4793_v10 = vpop.f32.mrb[235].mxu1  ;;  %v4802_v18 = vadd.f32 %v8428_v4, %v7128_v1  ;;  %v4840_v11 = vsel %vm12236_vm3, %v4799_v35, 0.0 }
 0x50b   :  { %v4836_v14 = vsel %vm12236_vm3, %v4791_v27, 0.0  ;;  %v4794_v13 = vadd.f32 %v7128_v1, %v4793_v10 }
 0x50c   :  { %v4837_v6 = vadd.f32 %v4836_v14, %v4835_v59  ;;  %v4842_v47 = vsel %vm12236_vm3, %v4802_v18, 0.0 }
 0x50d   :  { %v4838_v7 = vsel %vm12236_vm3, %v4794_v13, 0.0 }
 0x50e   :  { %v4839_v29 = vadd.f32 %v4838_v7, %v4837_v6 }
 0x50f   :  { %v8431_v15 = vpop.f32.mrb[236].mxu1 }
 0x510   :  { %v4841_v56 = vadd.f32 %v4840_v11, %v4839_v29  ;;  %v4806_v32 = vpop.f32.mrb[237].mxu1  ;;  %v4815_v48 = vadd.f32 %v8431_v15, %v7128_v1 }
 0x511   :  { %v4807_v53 = vadd.f32 %v7128_v1, %v4806_v32  ;;  %v8432_v2 = vpop.f32.mrb[238].mxu1 }
 0x512   :  { %v4843_v58 = vadd.f32 %v4842_v47, %v4841_v56  ;;  %v4809_v43 = vpop.f32.mrb[239].mxu1  ;;  %v4818_v0 = vadd.f32 %v8432_v2, %v7128_v1  ;;  %v4848_v45 = vsel %vm12236_vm3, %v4815_v48, 0.0 }
 0x513   :  { %v4844_v30 = vsel %vm12236_vm3, %v4807_v53, 0.0  ;;  %v4810_v36 = vadd.f32 %v7128_v1, %v4809_v43  ;;  %v9445_v1 = vld [vmem:[%s12222_s8] sm:$0xff]  }
 0x514   :  { %v4845_v54 = vadd.f32 %v4844_v30, %v4843_v58  ;;  %v4850_v22 = vsel %vm12236_vm3, %v4818_v0, 0.0  ;;  %8449 = vmatprep.mubr.bf16.mxu0 %v9445_v1 }
 0x515   :  { %v4846_v38 = vsel %vm12236_vm3, %v4810_v36, 0.0 }
 0x516   :  { %v4847_v8 = vadd.f32 %v4846_v38, %v4845_v54 }
 0x518   :  { %v4849_v3 = vadd.f32 %v4848_v45, %v4847_v8 }
 0x51a   :  { %v4851_v52 = vadd.f32 %v4850_v22, %v4849_v3 }
 0x51c   :  { %v4852_v19 = vrot.slane %v4851_v52, 4 }
 0x51e   :  { %v4853_v50 = vadd.f32 %v4852_v19, %v4851_v52 }
 0x520   :  { %v4854_v55 = vrot.slane %v4853_v50, 2 }
 0x522   :  { %v4855_v46 = vadd.f32 %v4854_v55, %v4853_v50 }
 0x524   :  { %v4856_v26 = vrot.slane %v4855_v46, 1 }
 0x526   :  { %v4857_v20 = vadd.f32 %v4856_v26, %v4855_v46 }
 0x528   :  { %v4859_v37 = vmul.f32 0.0078125, %v4857_v20 }
 0x52a   :  { %v11589_v23 = vsub.f32 %v11551_v12, %v4859_v37  ;;  %v11592_v39 = vsub.f32 %v11555_v21, %v4859_v37  ;;  %v11595_v33 = vsub.f32 %v11553_v16, %v4859_v37  ;;  %v11598_v61 = vsub.f32 %v11559_v28, %v4859_v37 }
 0x52b   :  { %v11601_v62 = vsub.f32 %v11567_v63, %v4859_v37  ;;  %v11603_v42 = vsub.f32 %v4778_v5, %v4859_v37  ;;  %v11605_v40 = vsub.f32 %v4783_v24, %v4859_v37  ;;  %v11607_v44 = vsub.f32 %v4786_v41, %v4859_v37 }
 0x52c   :  { %v11609_v12 = vsub.f32 %v4791_v27, %v4859_v37  ;;  %v11611_v31 = vsub.f32 %v4794_v13, %v4859_v37  ;;  %v11613_v21 = vsub.f32 %v4799_v35, %v4859_v37  ;;  %v11615_v16 = vsub.f32 %v4802_v18, %v4859_v37 }
 0x52d   :  { %v11617_v9 = vsub.f32 %v4807_v53, %v4859_v37  ;;  %v11619_v28 = vsub.f32 %v4810_v36, %v4859_v37  ;;  %v11621_v63 = vsub.f32 %v4815_v48, %v4859_v37  ;;  %v11623_v5 = vsub.f32 %v4818_v0, %v4859_v37 }
 0x52e   :  { %v4876_v24 = vmul.f32 %v11589_v23, %v11589_v23  ;;  %v4877_v41 = vmul.f32 %v11592_v39, %v11592_v39  ;;  %v4878_v57 = vmul.f32 %v11595_v33, %v11595_v33  ;;  %v4879_v60 = vmul.f32 %v11598_v61, %v11598_v61 }
 0x52f   :  { %v4880_v51 = vmul.f32 %v11601_v62, %v11601_v62  ;;  %v4881_v17 = vmul.f32 %v11603_v42, %v11603_v42  ;;  %v4882_v6 = vmul.f32 %v11605_v40, %v11605_v40  ;;  %v4883_v18 = vmul.f32 %v11607_v44, %v11607_v44 }
 0x530   :  { %v4892_v49 = vsel %vm12236_vm3, %v4876_v24, 0.0  ;;  %v4893_v34 = vsel %vm12236_vm3, %v4877_v41, 0.0  ;;  %v4895_v4 = vsel %vm12236_vm3, %v4878_v57, 0.0  ;;  %v4897_v10 = vsel %vm12236_vm3, %v4879_v60, 0.0 }
 0x531   :  { %v4894_v27 = vadd.f32 %v4893_v34, %v4892_v49  ;;  %v4899_v35 = vsel %vm12236_vm3, %v4880_v51, 0.0  ;;  %v4901_v14 = vsel %vm12236_vm3, %v4881_v17, 0.0  ;;  %v4884_v11 = vmul.f32 %v11609_v12, %v11609_v12 }
 0x532   :  { %v4903_v15 = vsel %vm12236_vm3, %v4882_v6, 0.0  ;;  %v4905_v56 = vsel %vm12236_vm3, %v4883_v18, 0.0  ;;  %v4885_v47 = vmul.f32 %v11611_v31, %v11611_v31  ;;  %v4886_v2 = vmul.f32 %v11613_v21, %v11613_v21  ;;  %v7142_v18 = vld [vmem:[%s12223_s6] ss:$0 sm:$0xff] }
 0x533   :  { %v4896_v59 = vadd.f32 %v4895_v4, %v4894_v27  ;;  %v4907_v58 = vsel %vm12236_vm3, %v4884_v11, 0.0  ;;  %v4887_v48 = vmul.f32 %v11615_v16, %v11615_v16  ;;  %v4888_v54 = vmul.f32 %v11617_v9, %v11617_v9 }
 0x534   :  { %v4909_v30 = vsel %vm12236_vm3, %v4885_v47, 0.0  ;;  %v4911_v0 = vsel %vm12236_vm3, %v4886_v2, 0.0  ;;  %v4889_v8 = vmul.f32 %v11619_v28, %v11619_v28  ;;  %v4890_v22 = vmul.f32 %v11621_v63, %v11621_v63 }
 0x535   :  { %v4898_v13 = vadd.f32 %v4897_v10, %v4896_v59  ;;  %v4913_v45 = vsel %vm12236_vm3, %v4887_v48, 0.0  ;;  %v4915_v52 = vsel %vm12236_vm3, %v4888_v54, 0.0  ;;  %v4891_v50 = vmul.f32 %v11623_v5, %v11623_v5 }
 0x536   :  { %v4917_v55 = vsel %vm12236_vm3, %v4889_v8, 0.0  ;;  %v4919_v26 = vsel %vm12236_vm3, %v4890_v22, 0.0 }
 0x537   :  { %v4900_v7 = vadd.f32 %v4899_v35, %v4898_v13  ;;  %v4921_v20 = vsel %vm12236_vm3, %v4891_v50, 0.0 }
 0x539   :  { %v4902_v29 = vadd.f32 %v4901_v14, %v4900_v7 }
 0x53b   :  { %v4904_v32 = vadd.f32 %v4903_v15, %v4902_v29 }
 0x53d   :  { %v4906_v53 = vadd.f32 %v4905_v56, %v4904_v32 }
 0x53f   :  { %v4908_v43 = vadd.f32 %v4907_v58, %v4906_v53 }
 0x541   :  { %v4910_v36 = vadd.f32 %v4909_v30, %v4908_v43 }
 0x543   :  { %v4912_v38 = vadd.f32 %v4911_v0, %v4910_v36 }
 0x545   :  { %v4914_v3 = vadd.f32 %v4913_v45, %v4912_v38 }
 0x547   :  { %v4916_v19 = vadd.f32 %v4915_v52, %v4914_v3 }
 0x549   :  { %v4918_v46 = vadd.f32 %v4917_v55, %v4916_v19 }
 0x54b   :  { %v4920_v25 = vadd.f32 %v4919_v26, %v4918_v46 }
 0x54d   :  { %v4922_v1 = vadd.f32 %v4921_v20, %v4920_v25 }
 0x54f   :  { %v4923_v37 = vrot.slane %v4922_v1, 4 }
 0x551   :  { %v4924_v24 = vadd.f32 %v4923_v37, %v4922_v1 }
 0x553   :  { %v4925_v41 = vrot.slane %v4924_v24, 2 }
 0x555   :  { %v4926_v57 = vadd.f32 %v4925_v41, %v4924_v24 }
 0x557   :  { %v4927_v60 = vrot.slane %v4926_v57, 1 }
 0x559   :  { %v4928_v51 = vadd.f32 %v4927_v60, %v4926_v57 }
 0x55b   :  { %v4929_v17 = vmul.f32 0.0078125, %v4928_v51 }
 0x55d   :  { %v4930_v49 = vadd.f32 1e-05, %v4929_v17 }
 0x55f   :  { %9489 = vrsqrt.f32 %v4930_v49 }
 0x569   :  { %v9490_v34 = vpop.eup %9489 }
 0x56a   :  { %v4932_v27 = vmul.f32 %v9490_v34, %v11589_v23  ;;  %v4933_v4 = vmul.f32 %v9490_v34, %v11592_v39  ;;  %v4934_v59 = vmul.f32 %v9490_v34, %v11595_v33  ;;  %v4935_v10 = vmul.f32 %v9490_v34, %v11598_v61 }
 0x56b   :  { %v4936_v35 = vmul.f32 %v9490_v34, %v11601_v62  ;;  %v4937_v14 = vmul.f32 %v9490_v34, %v11603_v42  ;;  %v4938_v13 = vmul.f32 %v9490_v34, %v11605_v40  ;;  %v4939_v6 = vmul.f32 %v9490_v34, %v11607_v44 }
 0x56c   :  { %v4940_v23 = vmul.f32 %v9490_v34, %v11609_v12  ;;  %v4941_v39 = vmul.f32 %v9490_v34, %v11611_v31  ;;  %v4942_v33 = vmul.f32 %v9490_v34, %v11613_v21  ;;  %v4943_v61 = vmul.f32 %v9490_v34, %v11615_v16  ;;  %v7143_v21 = vld [vmem:[%s12224_s7] ss:$0 sm:$0xff] }
 0x56d   :  { %v4944_v62 = vmul.f32 %v9490_v34, %v11617_v9  ;;  %v4945_v42 = vmul.f32 %v9490_v34, %v11619_v28  ;;  %v4946_v40 = vmul.f32 %v9490_v34, %v11621_v63  ;;  %v4947_v44 = vmul.f32 %v9490_v34, %v11623_v5 }
 0x56e   :  { %v4955_v7 = vmul.f32 %v7142_v18, %v4932_v27  ;;  %v4956_v29 = vmul.f32 %v7142_v18, %v4933_v4  ;;  %v4957_v11 = vmul.f32 %v7142_v18, %v4934_v59  ;;  %v4958_v15 = vmul.f32 %v7142_v18, %v4935_v10 }
 0x56f   :  { %v4959_v56 = vmul.f32 %v7142_v18, %v4936_v35  ;;  %v4960_v12 = vmul.f32 %v7142_v18, %v4937_v14  ;;  %v4961_v32 = vmul.f32 %v7142_v18, %v4938_v13  ;;  %v4962_v31 = vmul.f32 %v7142_v18, %v4939_v6 }
 0x570   :  { %v4963_v16 = vmul.f32 %v7142_v18, %v4940_v23  ;;  %v4964_v9 = vmul.f32 %v7142_v18, %v4941_v39  ;;  %v4965_v47 = vmul.f32 %v7142_v18, %v4942_v33  ;;  %v4966_v28 = vmul.f32 %v7142_v18, %v4943_v61 }
 0x571   :  { %v4967_v53 = vmul.f32 %v7142_v18, %v4944_v62  ;;  %v4968_v63 = vmul.f32 %v7142_v18, %v4945_v42  ;;  %v4969_v2 = vmul.f32 %v7142_v18, %v4946_v40  ;;  %v4970_v5 = vmul.f32 %v7142_v18, %v4947_v44 }
 0x572   :  { %v4978_v58 = vadd.f32 %v7143_v21, %v4955_v7  ;;  %v4979_v43 = vadd.f32 %v7143_v21, %v4956_v29  ;;  %v4980_v48 = vadd.f32 %v7143_v21, %v4957_v11  ;;  %v4981_v30 = vadd.f32 %v7143_v21, %v4958_v15 }
 0x573   :  { %v4982_v36 = vadd.f32 %v7143_v21, %v4959_v56  ;;  %v4983_v54 = vadd.f32 %v7143_v21, %v4960_v12  ;;  %v4984_v0 = vadd.f32 %v7143_v21, %v4961_v32  ;;  %v4985_v38 = vadd.f32 %v7143_v21, %v4962_v31 }
 0x574   :  { %v4986_v8 = vadd.f32 %v7143_v21, %v4963_v16  ;;  %v4987_v45 = vadd.f32 %v7143_v21, %v4964_v9  ;;  %v4988_v3 = vadd.f32 %v7143_v21, %v4965_v47  ;;  %v4989_v22 = vadd.f32 %v7143_v21, %v4966_v28  ;;  %v9446_v16 = vld [vmem:[%s12222_s8 + $0x24] sm:$0xff]   ;;  %v9448_v47 = vld [vmem:[%s12222_s8 + $0x2c] sm:$0xff]  }
 0x575   :  { %v4990_v52 = vadd.f32 %v7143_v21, %v4967_v53  ;;  %v4991_v19 = vadd.f32 %v7143_v21, %v4968_v63  ;;  %v4992_v50 = vadd.f32 %v7143_v21, %v4969_v2  ;;  %v4993_v55 = vadd.f32 %v7143_v21, %v4970_v5  ;;  %v9447_v9 = vld [vmem:[%s12222_s8 + $0x8] sm:$0xff]   ;;  %v9450_v28 = vld [vmem:[%s12222_s8 + $0x10] sm:$0xff]   ;;  %v9451_v63 = vld [vmem:[%s12222_s8 + $0x18] ss:$0 sps:$4 sm:$0x11]  }
 0x576   :  { %vm4994_vm13 = vcmp.ge.f32.partialorder %v4978_v58, 0.0  ;;  %vm4995_vm14 = vcmp.ge.f32.partialorder %v4979_v43, 0.0  ;;  %vm4996_vm15 = vcmp.ge.f32.partialorder %v4980_v48, 0.0  ;;  %vm4997_vm1 = vcmp.ge.f32.partialorder %v4981_v30, 0.0  ;;  %v9452_v2 = vld [vmem:[%s12222_s8 + $0x38] sm:$0xff]  }
 0x577   :  { %vm4998_vm2 = vcmp.ge.f32.partialorder %v4982_v36, 0.0  ;;  %vm4999_vm4 = vcmp.ge.f32.partialorder %v4983_v54, 0.0  ;;  %vm5000_vm5 = vcmp.ge.f32.partialorder %v4984_v0, 0.0  ;;  %vm5001_vm6 = vcmp.ge.f32.partialorder %v4985_v38, 0.0  ;;  %v9453_v5 = vld [vmem:[%s12222_s8 + $0x54] sm:$0xff]  }
 0x578   :  { %vm5002_vm7 = vcmp.ge.f32.partialorder %v4986_v8, 0.0  ;;  %vm5003_vm0 = vcmp.ge.f32.partialorder %v4987_v45, 0.0  ;;  %vm5004_vm10 = vcmp.ge.f32.partialorder %v4988_v3, 0.0  ;;  %vm5005_vm12 = vcmp.ge.f32.partialorder %v4989_v22, 0.0 }
 0x579   :  { %vm5006_vm11 = vcmp.ge.f32.partialorder %v4990_v52, 0.0  ;;  %vm5007_vm9 = vcmp.ge.f32.partialorder %v4991_v19, 0.0  ;;  %vm5008_vm8 = vcmp.ge.f32.partialorder %v4992_v50, 0.0  ;;  %vm5009_vm3 = vcmp.ge.f32.partialorder %v4993_v55, 0.0 }
 0x57a   :  { %v5010_v46 = vmul.f32 0.2, %v4978_v58  ;;  %v5011_v26 = vmul.f32 0.2, %v4979_v43  ;;  %v5012_v25 = vmul.f32 0.2, %v4980_v48 }
 0x57b   :  { %v5013_v20 = vmul.f32 0.2, %v4981_v30  ;;  %v5014_v1 = vmul.f32 0.2, %v4982_v36  ;;  %v5015_v37 = vmul.f32 0.2, %v4983_v54 }
 0x57c   :  { %v5016_v24 = vmul.f32 0.2, %v4984_v0  ;;  %v5017_v41 = vmul.f32 0.2, %v4985_v38  ;;  %v5018_v57 = vmul.f32 0.2, %v4986_v8  ;;  %v5026_v60 = vsel %vm4994_vm13, %v4978_v58, %v5010_v46 }
 0x57d   :  { %v5019_v51 = vmul.f32 0.2, %v4987_v45  ;;  %v5020_v17 = vmul.f32 0.2, %v4988_v3  ;;  %v5021_v49 = vmul.f32 0.2, %v4989_v22  ;;  %v5027_v34 = vsel %vm4995_vm14, %v4979_v43, %v5011_v26 }
 0x57e   :  { %v5022_v27 = vmul.f32 0.2, %v4990_v52  ;;  %v5023_v4 = vmul.f32 0.2, %v4991_v19  ;;  %v5024_v59 = vmul.f32 0.2, %v4992_v50  ;;  %v5028_v10 = vsel %vm4996_vm15, %v4980_v48, %v5012_v25 }
 0x57f   :  { %v5025_v35 = vmul.f32 0.2, %v4993_v55  ;;  %v5029_v14 = vsel %vm4997_vm1, %v4981_v30, %v5013_v20  ;;  %v5030_v13 = vsel %vm4998_vm2, %v4982_v36, %v5014_v1  ;;  %v5031_v6 = vsel %vm4999_vm4, %v4983_v54, %v5015_v37  ;;  %v9449_v53 = vld [vmem:[%s12222_s8 + $0x34] ss:$0 sps:$4 sm:$0x11]   ;;  %v9454_v58 = vld [vmem:[%s12222_s8 + $0x40] sm:$0xff]  }
 0x580   :  { %v5032_v18 = vsel %vm5000_vm5, %v4984_v0, %v5016_v24  ;;  %v5033_v23 = vsel %vm5001_vm6, %v4985_v38, %v5017_v41  ;;  %v5034_v39 = vsel %vm5002_vm7, %v4986_v8, %v5018_v57  ;;  %v5035_v33 = vsel %vm5003_vm0, %v4987_v45, %v5019_v51  ;;  %v9455_v43 = vld [vmem:[%s12222_s8 + $0x5c] sm:$0xff]   ;;  %v9456_v48 = vld [vmem:[%s12222_s8 + $0x48] sm:$0xff]   ;;  %v9458_v36 = vld [vmem:[%s12222_s8 + $0x50] ss:$0 sps:$4 sm:$0x11]  }
 0x581   :  { %v5036_v61 = vsel %vm5004_vm10, %v4988_v3, %v5020_v17  ;;  %v5037_v62 = vsel %vm5005_vm12, %v4989_v22, %v5021_v49  ;;  %v5038_v42 = vsel %vm5006_vm11, %v4990_v52, %v5022_v27  ;;  %v5039_v40 = vsel %vm5007_vm9, %v4991_v19, %v5023_v4  ;;  %v9457_v30 = vld [vmem:[%s12222_s8 + $0x64] sm:$0xff]   ;;  %v9459_v54 = vld [vmem:[%s12222_s8 + $0x6c] ss:$0 sps:$4 sm:$0x11]   ;;  %v9460_v0 = vld [vmem:[%s12222_s8 + $0x70] sm:$0xff]  }
 0x582   :  { %v5040_v44 = vsel %vm5008_vm8, %v4992_v50, %v5024_v59  ;;  %v5041_v7 = vsel %vm5009_vm3, %v4993_v55, %v5025_v35  ;;  %v11711_v29 = vpack.c.bf16 %v5027_v34, %v5026_v60  ;;  %v11713_v11 = vpack.c.bf16 %v5029_v14, %v5028_v10  ;;  %v9461_v38 = vld [vmem:[%s12222_s8 + $0x8c] sm:$0xff]   ;;  %v9462_v8 = vld [vmem:[%s12222_s8 + $0x78] sm:$0xff]   ;;  %v9464_v3 = vld [vmem:[%s12222_s8 + $0x80] sm:$0xff]  }
 0x583   :  { %v11715_v15 = vpack.c.bf16 %v5031_v6, %v5030_v13  ;;  %v11717_v56 = vpack.c.bf16 %v5033_v23, %v5032_v18  ;;  %v11719_v12 = vpack.c.bf16 %v5035_v33, %v5034_v39  ;;  %v11721_v32 = vpack.c.bf16 %v5037_v62, %v5036_v61  ;;  %v9463_v45 = vld [vmem:[%s12222_s8 + $0x94] sm:$0xff]   ;;  %v9465_v22 = vld [vmem:[%s12222_s8 + $0x9c] sm:$0xff]   ;;  %v9466_v52 = vld [vmem:[%s12222_s8 + $0x88] ss:$0 sps:$4 sm:$0x11]  }
 0x584   :  { %v11723_v31 = vpack.c.bf16 %v5039_v40, %v5038_v42  ;;  %v11725_v21 = vpack.c.bf16 %v5041_v7, %v5040_v44  ;;  %8433 = vmatprep.subr.bf16.mxu0 %v11711_v29  ;;  %8457 = vmatprep.subr.bf16.mxu1 %v11711_v29  ;;  %v9467_v19 = vld [vmem:[%s12222_s8 + $0xa4] ss:$0 sps:$4 sm:$0x11]   ;;  %v9468_v50 = vld [vmem:[%s12222_s8 + $0xa8] sm:$0xff]   ;;  %v9470_v46 = vld [vmem:[%s12222_s8 + $0xb0] sm:$0xff]   ;;  %vm12245_vm3 = vcmask 130048  }
 0x585   :  { %8434 = vmatpush3.bf16.msra.mxu0 %v11711_v29  ;;  %8458 = vmatpush3.bf16.msra.mxu1 %v11711_v29  ;;  %v9469_v55 = vld [vmem:[%s12222_s8 + $0xc4] sm:$0xff]   ;;  %v9471_v26 = vld [vmem:[%s12222_s8 + $0xcc] sm:$0xff]   ;;  %v9472_v25 = vld [vmem:[%s12222_s8 + $0xb8] sm:$0xff]   ;;  %vm12248_vm11 = vcmask 261120   ;;  %vm12253_vm2 = vcmask 392192   ;;  %vm6119_vm4 = vcmask 654336  }
 0x586   :  { %8435 = vmatprep.subr.bf16.mxu0 %v11713_v11  ;;  %8459 = vmatprep.subr.bf16.mxu1 %v11713_v11  ;;  %v9474_v20 = vld [vmem:[%s12222_s8 + $0xd4] sm:$0xff]   ;;  %v9473_v1 = vld [vmem:[%s12222_s8 + $0xc0] ss:$0 sps:$4 sm:$0x11]   ;;  %v9477_v41 = vld [vmem:[%s12222_s8 + $0xe8] sm:$0xff]   ;;  %vm12256_vm7 = vcmask 523264  }
 0x587   :  { %v9475_v37 = vld [vmem:[%s12222_s8 + $0xdc] ss:$0 sps:$4 sm:$0x11]   ;;  %v9476_v24 = vld [vmem:[%s12222_s8 + $0xe0] sm:$0xff]   ;;  %v9478_v57 = vld [vmem:[%s12222_s8 + $0xf0] sm:$0xff]   ;;  %vm6127_vm12 = vcmask 785408  }
 0x588   :  { %v9479_v60 = vld [vmem:[%s12222_s8 + $0xf8] ss:$0 sps:$4 sm:$0x11]   ;;  %s9506_s8 = smov 112   ;;  %vm12246_vm8 = vmmov %vm12245_vm3 }
 0x589   :  { %8436 = vmatpush3.bf16.msra.mxu0 %v11713_v11  ;;  %8460 = vmatpush3.bf16.msra.mxu1 %v11713_v11  ;;  %vm12247_vm9 = vmmov %vm12245_vm3 }
 0x58a   :  { %8437 = vmatprep.subr.bf16.mxu0 %v11715_v15  ;;  %8461 = vmatprep.subr.bf16.mxu1 %v11715_v15  ;;  %vm12249_vm13 = vmmov %vm12248_vm11 }
 0x58b   :  { %vm12250_vm14 = vmmov %vm12245_vm3 }
 0x58c   :  { %vm12251_vm15 = vmmov %vm12245_vm3 }
 0x58d   :  { %8438 = vmatpush3.bf16.msra.mxu0 %v11715_v15  ;;  %8462 = vmatpush3.bf16.msra.mxu1 %v11715_v15  ;;  %vm12252_vm1 = vmmov %vm12248_vm11 }
 0x58e   :  { %8439 = vmatprep.subr.bf16.mxu0 %v11717_v56  ;;  %8463 = vmatprep.subr.bf16.mxu1 %v11717_v56  ;;  %vm12254_vm5 = vmmov %vm12253_vm2 }
 0x58f   :  { %vm12255_vm6 = vmmov %vm12252_vm1 }
 0x590   :  { %vm12257_vm0 = vmmov %vm12256_vm7 }
 0x591   :  { %8440 = vmatpush3.bf16.msra.mxu0 %v11717_v56  ;;  %8464 = vmatpush3.bf16.msra.mxu1 %v11717_v56  ;;  %vm12258_vm10 = vmmov %vm12253_vm2 }
 0x592   :  { %8441 = vmatprep.subr.bf16.mxu0 %v11719_v12  ;;  %8465 = vmatprep.subr.bf16.mxu1 %v11719_v12 }
 0x595   :  { %8442 = vmatpush3.bf16.msra.mxu0 %v11719_v12  ;;  %8466 = vmatpush3.bf16.msra.mxu1 %v11719_v12 }
 0x596   :  { %8443 = vmatprep.subr.bf16.mxu0 %v11721_v32  ;;  %8467 = vmatprep.subr.bf16.mxu1 %v11721_v32 }
 0x599   :  { %8444 = vmatpush3.bf16.msra.mxu0 %v11721_v32  ;;  %8468 = vmatpush3.bf16.msra.mxu1 %v11721_v32 }
 0x59a   :  { %8445 = vmatprep.subr.bf16.mxu0 %v11723_v31  ;;  %8469 = vmatprep.subr.bf16.mxu1 %v11723_v31 }
 0x59d   :  { %8446 = vmatpush3.bf16.msra.mxu0 %v11723_v31  ;;  %8470 = vmatpush3.bf16.msra.mxu1 %v11723_v31 }
 0x59e   :  { %8447 = vmatprep.subr.bf16.mxu0 %v11725_v21  ;;  %8471 = vmatprep.subr.bf16.mxu1 %v11725_v21 }
 0x5a1   :  { %8448 = vmatpush3.bf16.msra.mxu0 %v11725_v21  ;;  %8472 = vmatpush3.bf16.msra.mxu1 %v11725_v21 }
 0x5a2   :  { %8481 = vmatprep.subr.bf16.mxu0 %v11711_v29  ;;  %8505 = vmatprep.subr.bf16.mxu1 %v11711_v29 }
 0x5a4   :  { %8474 = vmatmul.mubr.bf16.vlgmr.msra.gmra.mrb[240].mxu1 %v9446_v16  ;;  %8450 = vmatmul.mubr.bf16.vlgmr.msra.gmra.mrb[252].mxu0 %v9447_v9 }
 0x5a5   :  { %8482 = vmatpush3.bf16.msra.mxu0 %v11711_v29  ;;  %8506 = vmatpush3.bf16.msra.mxu1 %v11711_v29 }
 0x5a6   :  { %8483 = vmatprep.subr.bf16.mxu0 %v11713_v11  ;;  %8507 = vmatprep.subr.bf16.mxu1 %v11713_v11 }
 0x5a7   :  { %8477 = vmatprep.mubr.bf16.mxu1 %v9448_v47  ;;  %8453 = vmatprep.mubr.bf16.mxu0 %v9450_v28 }
 0x5a9   :  { %8484 = vmatpush3.bf16.msra.mxu0 %v11713_v11  ;;  %8508 = vmatpush3.bf16.msra.mxu1 %v11713_v11 }
 0x5aa   :  { %8485 = vmatprep.subr.bf16.mxu0 %v11715_v15  ;;  %8509 = vmatprep.subr.bf16.mxu1 %v11715_v15 }
 0x5ac   :  { %8478 = vmatmul.mubr.bf16.gmra.mrb[244].mxu1 %v9449_v53  ;;  %8454 = vmatmul.mubr.bf16.gmra.mrb[0].mxu0 %v9451_v63 }
 0x5ad   :  { %8486 = vmatpush3.bf16.msra.mxu0 %v11715_v15  ;;  %8510 = vmatpush3.bf16.msra.mxu1 %v11715_v15 }
 0x5ae   :  { %8487 = vmatprep.subr.bf16.mxu0 %v11717_v56  ;;  %8511 = vmatprep.subr.bf16.mxu1 %v11717_v56 }
 0x5af   :  { %8497 = vmatprep.mubr.bf16.mxu0 %v9452_v2  ;;  %8521 = vmatprep.mubr.bf16.mxu1 %v9453_v5 }
 0x5b1   :  { %8488 = vmatpush3.bf16.msra.mxu0 %v11717_v56  ;;  %8512 = vmatpush3.bf16.msra.mxu1 %v11717_v56 }
 0x5b2   :  { %8489 = vmatprep.subr.bf16.mxu0 %v11719_v12  ;;  %8513 = vmatprep.subr.bf16.mxu1 %v11719_v12 }
 0x5b5   :  { %8490 = vmatpush3.bf16.msra.mxu0 %v11719_v12  ;;  %8514 = vmatpush3.bf16.msra.mxu1 %v11719_v12 }
 0x5b6   :  { %8491 = vmatprep.subr.bf16.mxu0 %v11721_v32  ;;  %8515 = vmatprep.subr.bf16.mxu1 %v11721_v32 }
 0x5b9   :  { %8492 = vmatpush3.bf16.msra.mxu0 %v11721_v32  ;;  %8516 = vmatpush3.bf16.msra.mxu1 %v11721_v32 }
 0x5ba   :  { %8493 = vmatprep.subr.bf16.mxu0 %v11723_v31  ;;  %8517 = vmatprep.subr.bf16.mxu1 %v11723_v31 }
 0x5bd   :  { %8494 = vmatpush3.bf16.msra.mxu0 %v11723_v31  ;;  %8518 = vmatpush3.bf16.msra.mxu1 %v11723_v31 }
 0x5be   :  { %8495 = vmatprep.subr.bf16.mxu0 %v11725_v21  ;;  %8519 = vmatprep.subr.bf16.mxu1 %v11725_v21 }
 0x5c1   :  { %8496 = vmatpush3.bf16.msra.mxu0 %v11725_v21  ;;  %8520 = vmatpush3.bf16.msra.mxu1 %v11725_v21 }
 0x5c2   :  { %8529 = vmatprep.subr.bf16.mxu0 %v11711_v29  ;;  %8553 = vmatprep.subr.bf16.mxu1 %v11711_v29 }
 0x5c4   :  { %8498 = vmatmul.mubr.bf16.vlgmr.msra.gmra.mrb[4].mxu0 %v9454_v58  ;;  %8522 = vmatmul.mubr.bf16.vlgmr.msra.gmra.mrb[248].mxu1 %v9455_v43 }
 0x5c5   :  { %8530 = vmatpush3.bf16.msra.mxu0 %v11711_v29  ;;  %8554 = vmatpush3.bf16.msra.mxu1 %v11711_v29 }
 0x5c6   :  { %8531 = vmatprep.subr.bf16.mxu0 %v11713_v11  ;;  %8555 = vmatprep.subr.bf16.mxu1 %v11713_v11 }
 0x5c7   :  { %8501 = vmatprep.mubr.bf16.mxu0 %v9456_v48  ;;  %8525 = vmatprep.mubr.bf16.mxu1 %v9457_v30  ;;  %v9480_v30 = vld [vmem:[%s12225_s9] sm:$0xff]  }
 0x5c9   :  { %8532 = vmatpush3.bf16.msra.mxu0 %v11713_v11  ;;  %8556 = vmatpush3.bf16.msra.mxu1 %v11713_v11 }
 0x5ca   :  { %8533 = vmatprep.subr.bf16.mxu0 %v11715_v15  ;;  %8557 = vmatprep.subr.bf16.mxu1 %v11715_v15 }
 0x5cc   :  { %8502 = vmatmul.mubr.bf16.gmra.mrb[8].mxu0 %v9458_v36  ;;  %8526 = vmatmul.mubr.bf16.gmra.mrb[252].mxu1 %v9459_v54 }
 0x5cd   :  { %8534 = vmatpush3.bf16.msra.mxu0 %v11715_v15  ;;  %8558 = vmatpush3.bf16.msra.mxu1 %v11715_v15 }
 0x5ce   :  { %8535 = vmatprep.subr.bf16.mxu0 %v11717_v56  ;;  %8559 = vmatprep.subr.bf16.mxu1 %v11717_v56 }
 0x5cf   :  { %8545 = vmatprep.mubr.bf16.mxu0 %v9460_v0  ;;  %8569 = vmatprep.mubr.bf16.mxu1 %v9461_v38  ;;  %v9504_v0 = vmov 0  }
 0x5d0   :  { %9126 = vset.pattern.permute.xlu1 %v9504_v0  ;;  %9127 = vset.pattern.permute.xlu0 %v9504_v0 }
 0x5d1   :  { %8536 = vmatpush3.bf16.msra.mxu0 %v11717_v56  ;;  %8560 = vmatpush3.bf16.msra.mxu1 %v11717_v56 }
 0x5d2   :  { %8537 = vmatprep.subr.bf16.mxu0 %v11719_v12  ;;  %8561 = vmatprep.subr.bf16.mxu1 %v11719_v12 }
 0x5d5   :  { %8538 = vmatpush3.bf16.msra.mxu0 %v11719_v12  ;;  %8562 = vmatpush3.bf16.msra.mxu1 %v11719_v12 }
 0x5d6   :  { %8539 = vmatprep.subr.bf16.mxu0 %v11721_v32  ;;  %8563 = vmatprep.subr.bf16.mxu1 %v11721_v32 }
 0x5d9   :  { %8540 = vmatpush3.bf16.msra.mxu0 %v11721_v32  ;;  %8564 = vmatpush3.bf16.msra.mxu1 %v11721_v32 }
 0x5da   :  { %8541 = vmatprep.subr.bf16.mxu0 %v11723_v31  ;;  %8565 = vmatprep.subr.bf16.mxu1 %v11723_v31 }
 0x5dd   :  { %8542 = vmatpush3.bf16.msra.mxu0 %v11723_v31  ;;  %8566 = vmatpush3.bf16.msra.mxu1 %v11723_v31 }
 0x5de   :  { %8543 = vmatprep.subr.bf16.mxu0 %v11725_v21  ;;  %8567 = vmatprep.subr.bf16.mxu1 %v11725_v21 }
 0x5e1   :  { %8544 = vmatpush3.bf16.msra.mxu0 %v11725_v21  ;;  %8568 = vmatpush3.bf16.msra.mxu1 %v11725_v21 }
 0x5e2   :  { %8577 = vmatprep.subr.bf16.mxu0 %v11711_v29  ;;  %8601 = vmatprep.subr.bf16.mxu1 %v11711_v29 }
 0x5e4   :  { %8546 = vmatmul.mubr.bf16.vlgmr.msra.gmra.mrb[12].mxu0 %v9462_v8  ;;  %8570 = vmatmul.mubr.bf16.vlgmr.msra.gmra.mrb[0].mxu1 %v9463_v45  ;;  %v9481_v45 = vld [vmem:[%s12225_s9 + $0x8] sm:$0xff]  }
 0x5e5   :  { %8578 = vmatpush3.bf16.msra.mxu0 %v11711_v29  ;;  %8602 = vmatpush3.bf16.msra.mxu1 %v11711_v29 }
 0x5e6   :  { %8579 = vmatprep.subr.bf16.mxu0 %v11713_v11  ;;  %8603 = vmatprep.subr.bf16.mxu1 %v11713_v11 }
 0x5e7   :  { %8549 = vmatprep.mubr.bf16.mxu0 %v9464_v3  ;;  %8573 = vmatprep.mubr.bf16.mxu1 %v9465_v22 }
 0x5e9   :  { %8580 = vmatpush3.bf16.msra.mxu0 %v11713_v11  ;;  %8604 = vmatpush3.bf16.msra.mxu1 %v11713_v11 }
 0x5ea   :  { %8581 = vmatprep.subr.bf16.mxu0 %v11715_v15  ;;  %8605 = vmatprep.subr.bf16.mxu1 %v11715_v15 }
 0x5ec   :  { %8550 = vmatmul.mubr.bf16.gmra.mrb[16].mxu0 %v9466_v52  ;;  %8574 = vmatmul.mubr.bf16.gmra.mrb[4].mxu1 %v9467_v19 }
 0x5ed   :  { %8582 = vmatpush3.bf16.msra.mxu0 %v11715_v15  ;;  %8606 = vmatpush3.bf16.msra.mxu1 %v11715_v15 }
 0x5ee   :  { %8583 = vmatprep.subr.bf16.mxu0 %v11717_v56  ;;  %8607 = vmatprep.subr.bf16.mxu1 %v11717_v56 }
 0x5ef   :  { %8593 = vmatprep.mubr.bf16.mxu0 %v9468_v50  ;;  %8617 = vmatprep.mubr.bf16.mxu1 %v9469_v55 }
 0x5f1   :  { %8584 = vmatpush3.bf16.msra.mxu0 %v11717_v56  ;;  %8608 = vmatpush3.bf16.msra.mxu1 %v11717_v56 }
 0x5f2   :  { %8585 = vmatprep.subr.bf16.mxu0 %v11719_v12  ;;  %8609 = vmatprep.subr.bf16.mxu1 %v11719_v12 }
 0x5f5   :  { %8586 = vmatpush3.bf16.msra.mxu0 %v11719_v12  ;;  %8610 = vmatpush3.bf16.msra.mxu1 %v11719_v12 }
 0x5f6   :  { %8587 = vmatprep.subr.bf16.mxu0 %v11721_v32  ;;  %8611 = vmatprep.subr.bf16.mxu1 %v11721_v32 }
 0x5f9   :  { %8588 = vmatpush3.bf16.msra.mxu0 %v11721_v32  ;;  %8612 = vmatpush3.bf16.msra.mxu1 %v11721_v32 }
 0x5fa   :  { %8589 = vmatprep.subr.bf16.mxu0 %v11723_v31  ;;  %8613 = vmatprep.subr.bf16.mxu1 %v11723_v31 }
 0x5fd   :  { %8590 = vmatpush3.bf16.msra.mxu0 %v11723_v31  ;;  %8614 = vmatpush3.bf16.msra.mxu1 %v11723_v31 }
 0x5fe   :  { %8591 = vmatprep.subr.bf16.mxu0 %v11725_v21  ;;  %8615 = vmatprep.subr.bf16.mxu1 %v11725_v21 }
 0x601   :  { %8592 = vmatpush3.bf16.msra.mxu0 %v11725_v21  ;;  %8616 = vmatpush3.bf16.msra.mxu1 %v11725_v21 }
 0x602   :  { %8625 = vmatprep.subr.bf16.mxu0 %v11711_v29  ;;  %6242 = vmatprep.subr.bf16.mxu1 %v9504_v0 }
 0x604   :  { %8594 = vmatmul.mubr.bf16.vlgmr.msra.gmra.mrb[20].mxu0 %v9470_v46  ;;  %8618 = vmatmul.mubr.bf16.vlgmr.msra.gmra.mrb[8].mxu1 %v9471_v26 }
 0x605   :  { %8626 = vmatpush3.bf16.msra.mxu0 %v11711_v29  ;;  %8597 = vmatprep.mubr.bf16.mxu0 %v9472_v25  ;;  %v9482_v25 = vld [vmem:[%s12225_s9 + $0x10] sm:$0xff]  }
 0x606   :  { %8627 = vmatprep.subr.bf16.mxu0 %v11713_v11  ;;  %8621 = vmatprep.mubr.bf16.mxu1 %v9474_v20 }
 0x607   :  { %6243 = vmatpush1.bf16.msra.mxu1 %v9480_v30 }
 0x608   :  { %6244 = vmatprep.subr.bf16.mxu1 %v9504_v0 }
 0x609   :  { %8628 = vmatpush3.bf16.msra.mxu0 %v11713_v11 }
 0x60a   :  { %8629 = vmatprep.subr.bf16.mxu0 %v11715_v15 }
 0x60b   :  { %6245 = vmatpush1.bf16.msra.mxu1 %v9481_v45 }
 0x60c   :  { %8598 = vmatmul.mubr.bf16.gmra.mrb[24].mxu0 %v9473_v1  ;;  %8622 = vmatmul.mubr.bf16.gmra.mrb[12].mxu1 %v9475_v37 }
 0x60d   :  { %8630 = vmatpush3.bf16.msra.mxu0 %v11715_v15  ;;  %8641 = vmatprep.mubr.bf16.mxu0 %v9476_v24 }
 0x60e   :  { %8631 = vmatprep.subr.bf16.mxu0 %v11717_v56  ;;  %6246 = vmatprep.subr.bf16.mxu1 %v9504_v0 }
 0x60f   :  { %6247 = vmatpush1.bf16.msra.mxu1 %v9482_v25 }
 0x610   :  { %6248 = vmatprep.subr.bf16.mxu1 %v9504_v0 }
 0x611   :  { %8632 = vmatpush3.bf16.msra.mxu0 %v11717_v56 }
 0x612   :  { %8633 = vmatprep.subr.bf16.mxu0 %v11719_v12 }
 0x615   :  { %8634 = vmatpush3.bf16.msra.mxu0 %v11719_v12 }
 0x616   :  { %8635 = vmatprep.subr.bf16.mxu0 %v11721_v32 }
 0x619   :  { %8636 = vmatpush3.bf16.msra.mxu0 %v11721_v32 }
 0x61a   :  { %8637 = vmatprep.subr.bf16.mxu0 %v11723_v31 }
 0x61d   :  { %8638 = vmatpush3.bf16.msra.mxu0 %v11723_v31 }
 0x61e   :  { %8639 = vmatprep.subr.bf16.mxu0 %v11725_v21 }
 0x621   :  { %8640 = vmatpush3.bf16.msra.mxu0 %v11725_v21 }
 0x624   :  { %8642 = vmatmul.mubr.bf16.vlgmr.msra.gmra.mrb[28].mxu0 %v9477_v41 }
 0x625   :  { %8645 = vmatprep.mubr.bf16.mxu0 %v9478_v57 }
 0x62c   :  { %8646 = vmatmul.mubr.bf16.gmra.mrb[32].mxu0 %v9479_v60  ;;  %v9483_v60 = vld [vmem:[%s12225_s9 + $0x18] sm:$0xff]  }
 0x62d   :  { %6249 = vmatpush1.bf16.msra.mxu1 %v9483_v60 }
 0x62e   :  { %6250 = vmatprep.subr.bf16.mxu1 %v9504_v0 }
 0x677   :  { %v8475_v51 = vpop.f32.mrb[240].mxu1  ;;  %v11973_v17 = vpop.f32.mrb[252].mxu0 }
 0x678   :  { %v5207_v49 = vpop.f32.mrb[241].mxu1  ;;  %v11975_v34 = vpop.f32.mrb[253].mxu0 }
 0x679   :  { %v8476_v27 = vpop.f32.mrb[242].mxu1  ;;  %v11977_v4 = vpop.f32.mrb[254].mxu0 }
 0x67a   :  { %v9021_v59 = vpack.i.bf16 %v8476_v27, %v8475_v51  ;;  %v5210_v10 = vpop.f32.mrb[243].mxu1  ;;  %v11979_v35 = vpop.f32.mrb[255].mxu0 }
 0x67b   :  { %v9026_v14 = vpack.i.bf16 %v5210_v10, %v5207_v49  ;;  %v9484_v10 = vld [vmem:[%s12225_s9 + $0x20] sm:$0xff]  }
 0x67c   :  { %9022 = vrot.lane.b32.xlu1 %v9021_v59, %s9497_s30  ;;  %6251 = vmatpush1.bf16.msra.mxu1 %v9484_v10 }
 0x67d   :  { %9027 = vrot.lane.b32.xlu0 %v9026_v14, %s9497_s30  ;;  %v9485_v14 = vld [vmem:[%s12225_s9 + $0x28] sm:$0xff]   ;;  %6252 = vmatprep.subr.bf16.mxu1 %v9504_v0 }
 0x67f   :  { %v11983_v13 = vpop.f32.mrb[244].mxu1  ;;  %v11985_v6 = vpop.f32.mrb[0].mxu0 }
 0x680   :  { %v5223_v18 = vpop.f32.mrb[245].mxu1  ;;  %v11987_v23 = vpop.f32.mrb[1].mxu0  ;;  %6253 = vmatpush1.bf16.msra.mxu1 %v9485_v14 }
 0x681   :  { %v8480_v39 = vpop.f32.mrb[246].mxu1  ;;  %v8456_v33 = vpop.f32.mrb[2].mxu0  ;;  %6254 = vmatprep.subr.bf16.mxu1 %v9504_v0 }
 0x682   :  { %v5226_v61 = vpop.f32.mrb[247].mxu1  ;;  %v11989_v62 = vpop.f32.mrb[3].mxu0  ;;  %v9487_v39 = vld [vmem:[%s12225_s9 + $0x38] sm:$0xff]   ;;  %v9488_v33 = vld [vmem:[%s12225_s9 + $0x40] sm:$0xff]  }
 0x683   :  { %v9031_v42 = vpack.i.bf16 %v5226_v61, %v5223_v18  ;;  %v9486_v18 = vld [vmem:[%s12225_s9 + $0x30] sm:$0xff]  }
 0x684   :  { %6255 = vmatpush1.bf16.msra.mxu1 %v9486_v18 }
 0x685   :  { %9032 = vrot.lane.b32.xlu0 %v9031_v42, %s9497_s30  ;;  %6256 = vmatprep.subr.bf16.mxu1 %v9504_v0 }
 0x688   :  { %6257 = vmatpush1.bf16.msra.mxu1 %v9487_v39 }
 0x689   :  { %6258 = vmatprep.subr.bf16.mxu1 %v9504_v0 }
 0x68c   :  { %6259 = vmatpush1.bf16.msra.mxu1 %v9488_v33 }
 0x697   :  { %v8499_v40 = vpop.f32.mrb[4].mxu0  ;;  %v8523_v44 = vpop.f32.mrb[248].mxu1 }
 0x698   :  { %v5301_v7 = vpop.f32.mrb[5].mxu0  ;;  %v5395_v29 = vpop.f32.mrb[249].mxu1 }
 0x699   :  { %v8500_v11 = vpop.f32.mrb[6].mxu0  ;;  %v8524_v15 = vpop.f32.mrb[250].mxu1 }
 0x69a   :  { %v9036_v56 = vpack.i.bf16 %v8500_v11, %v8499_v40  ;;  %v9041_v12 = vpack.i.bf16 %v8524_v15, %v8523_v44  ;;  %v5304_v32 = vpop.f32.mrb[7].mxu0  ;;  %v5398_v31 = vpop.f32.mrb[251].mxu1 }
 0x69b   :  { %v9046_v21 = vpack.i.bf16 %v5304_v32, %v5301_v7  ;;  %v9051_v16 = vpack.i.bf16 %v5398_v31, %v5395_v29 }
 0x69c   :  { %9042 = vrot.lane.b32.xlu1 %v9041_v12, %s9501_s0  ;;  %9037 = vrot.lane.b32.xlu0 %v9036_v56, %s9499_s3 }
 0x69f   :  { %v11994_v9 = vpop.f32.mrb[8].mxu0  ;;  %v11996_v47 = vpop.f32.mrb[252].mxu1 }
 0x6a0   :  { %9047 = vrot.lane.b32.xlu1 %v9046_v21, %s9499_s3  ;;  %9052 = vrot.lane.b32.xlu0 %v9051_v16, %s9501_s0  ;;  %v12000_v28 = vpop.f32.mrb[9].mxu0  ;;  %v12002_v53 = vpop.f32.mrb[253].mxu1 }
 0x6a1   :  { %v8504_v63 = vpop.f32.mrb[10].mxu0  ;;  %v8528_v2 = vpop.f32.mrb[254].mxu1 }
 0x6a2   :  { %v12004_v5 = vpop.f32.mrb[11].mxu0  ;;  %v12006_v58 = vpop.f32.mrb[255].mxu1 }
 0x6a3   :  { %v9091_v43 = vpack.i.bf16 %v12004_v5, %v12000_v28  ;;  %v9101_v48 = vpack.i.bf16 %v12006_v58, %v12002_v53 }
 0x6b7   :  { %v8547_v36 = vpop.f32.mrb[12].mxu0  ;;  %v8571_v54 = vpop.f32.mrb[0].mxu1 }
 0x6b8   :  { %v5489_v38 = vpop.f32.mrb[13].mxu0  ;;  %v5583_v8 = vpop.f32.mrb[1].mxu1 }
 0x6b9   :  { %v8548_v3 = vpop.f32.mrb[14].mxu0  ;;  %v8572_v22 = vpop.f32.mrb[2].mxu1 }
 0x6ba   :  { %v9056_v52 = vpack.i.bf16 %v8548_v3, %v8547_v36  ;;  %v9061_v19 = vpack.i.bf16 %v8572_v22, %v8571_v54  ;;  %v5492_v50 = vpop.f32.mrb[15].mxu0  ;;  %v5586_v55 = vpop.f32.mrb[3].mxu1 }
 0x6bb   :  { %v9066_v46 = vpack.i.bf16 %v5492_v50, %v5489_v38  ;;  %v9071_v26 = vpack.i.bf16 %v5586_v55, %v5583_v8 }
 0x6bc   :  { %9062 = vrot.lane.b32.xlu1 %v9061_v19, %s9505_s1  ;;  %9057 = vrot.lane.b32.xlu0 %v9056_v52, %s9503_s4 }
 0x6bf   :  { %v12023_v20 = vpop.f32.mrb[16].mxu0  ;;  %v12025_v1 = vpop.f32.mrb[4].mxu1 }
 0x6c0   :  { %9067 = vrot.lane.b32.xlu1 %v9066_v46, %s9503_s4  ;;  %9072 = vrot.lane.b32.xlu0 %v9071_v26, %s9505_s1  ;;  %v5505_v37 = vpop.f32.mrb[17].mxu0  ;;  %v5599_v24 = vpop.f32.mrb[5].mxu1 }
 0x6c1   :  { %v8552_v41 = vpop.f32.mrb[18].mxu0  ;;  %v8576_v57 = vpop.f32.mrb[6].mxu1 }
 0x6c2   :  { %v5508_v51 = vpop.f32.mrb[19].mxu0  ;;  %v5602_v49 = vpop.f32.mrb[7].mxu1 }
 0x6c3   :  { %v9106_v27 = vpack.i.bf16 %v5508_v51, %v5505_v37  ;;  %v9111_v59 = vpack.i.bf16 %v5602_v49, %v5599_v24 }
 0x6d7   :  { %v8595_v61 = vpop.f32.mrb[20].mxu0  ;;  %v8619_v42 = vpop.f32.mrb[8].mxu1 }
 0x6d8   :  { %v5677_v40 = vpop.f32.mrb[21].mxu0  ;;  %v5771_v44 = vpop.f32.mrb[9].mxu1 }
 0x6d9   :  { %v8596_v7 = vpop.f32.mrb[22].mxu0  ;;  %v8620_v29 = vpop.f32.mrb[10].mxu1 }
 0x6da   :  { %v9076_v11 = vpack.i.bf16 %v8596_v7, %v8595_v61  ;;  %v9081_v15 = vpack.i.bf16 %v8620_v29, %v8619_v42  ;;  %v5680_v56 = vpop.f32.mrb[23].mxu0  ;;  %v5774_v12 = vpop.f32.mrb[11].mxu1 }
 0x6db   :  { %v9086_v32 = vpack.i.bf16 %v5680_v56, %v5677_v40  ;;  %v9096_v31 = vpack.i.bf16 %v5774_v12, %v5771_v44 }
 0x6dc   :  { %9082 = vrot.lane.b32.xlu1 %v9081_v15, %s9506_s8  ;;  %9077 = vrot.lane.b32.xlu0 %v9076_v11, %s9507_s20 }
 0x6df   :  { %v8599_v21 = vpop.f32.mrb[24].mxu0  ;;  %v8623_v16 = vpop.f32.mrb[12].mxu1 }
 0x6e0   :  { %9097 = vrot.lane.b32.xlu0 %v9096_v31, %s9506_s8  ;;  %9087 = vrot.lane.b32.xlu1 %v9086_v32, %s9507_s20  ;;  %v5693_v63 = vpop.f32.mrb[25].mxu0  ;;  %v5787_v2 = vpop.f32.mrb[13].mxu1 }
 0x6e1   :  { %v8600_v30 = vpop.f32.mrb[26].mxu0  ;;  %v8624_v36 = vpop.f32.mrb[14].mxu1 }
 0x6e2   :  { %v5696_v54 = vpop.f32.mrb[27].mxu0  ;;  %v5790_v0 = vpop.f32.mrb[15].mxu1 }
 0x6e3   :  { %v9116_v38 = vpack.i.bf16 %v5696_v54, %v5693_v63  ;;  %v9121_v8 = vpack.i.bf16 %v5790_v0, %v5787_v2 }
 0x6e4   :  { %9102 = vrot.lane.b32.xlu0 %v9101_v48, %s9501_s0  ;;  %9092 = vrot.lane.b32.xlu1 %v9091_v43, %s9499_s3 }
 0x6e8   :  { %9112 = vrot.lane.b32.xlu0 %v9111_v59, %s9505_s1  ;;  %9107 = vrot.lane.b32.xlu1 %v9106_v27, %s9503_s4 }
 0x6ec   :  { %5942 = vrot.lane.b32.xlu0 %v11994_v9, %s9499_s3  ;;  %5914 = vrot.lane.b32.xlu1 %v11983_v13, %s9497_s30 }
 0x6ee   :  { %v9023_v52 = vpop.permute.xlu1 %9022 }
 0x6ef   :  { %v9028_v22 = vpop.permute.xlu0 %9027  ;;  %v9024_v25 = vunpack.i.l.bf16 %v9023_v52 }
 0x6f0   :  { %9117 = vrot.lane.b32.xlu1 %v9116_v38, %s9507_s20  ;;  %9122 = vrot.lane.b32.xlu0 %v9121_v8, %s9506_s8  ;;  %v9029_v57 = vunpack.i.l.bf16 %v9028_v22  ;;  %v9030_v51 = vunpack.i.h.bf16 %v9028_v22 }
 0x6f1   :  { %v6093_v60 = vsel %vm12246_vm8, %v11973_v17, %v9024_v25  ;;  %vm12259_vm8 = vmmov %vm12253_vm2 }
 0x6f2   :  { %v6091_v42 = vsel %vm12250_vm14, %v11975_v34, %v9029_v57  ;;  %v6092_v7 = vsel %vm12251_vm15, %v11979_v35, %v9030_v51 }
 0x6f4   :  { %5970 = vrot.lane.b32.xlu1 %v11996_v47, %s9501_s0  ;;  %5998 = vrot.lane.b32.xlu0 %v12023_v20, %s9503_s4  ;;  %v9025_v20 = vunpack.i.h.bf16 %v9023_v52 }
 0x6f6   :  { %v6094_v59 = vsel %vm12247_vm9, %v11977_v4, %v9025_v20  ;;  %vm12260_vm9 = vmmov %vm12257_vm0 }
 0x6f7   :  { %v12068_v28 = vpop.f32.mrb[28].mxu0  ;;  %v12086_v19 = vpop.permute.xlu0 %9032 }
 0x6f8   :  { %6026 = vrot.lane.b32.xlu1 %v12025_v1, %s9505_s1  ;;  %6054 = vrot.lane.b32.xlu0 %v8599_v21, %s9507_s20  ;;  %v5865_v53 = vpop.f32.mrb[29].mxu0 }
 0x6f9   :  { %v12072_v9 = vpop.f32.mrb[30].mxu0 }
 0x6fa   :  { %v6146_v13 = vpack.c.bf16 %v12072_v9, %v12068_v28  ;;  %v5868_v5 = vpop.f32.mrb[31].mxu0 }
 0x6fb   :  { %v6144_v58 = vpack.c.bf16 %v5868_v5, %v5865_v53 }
 0x6fc   :  { %6082 = vrot.lane.b32.xlu1 %v8623_v16, %s9506_s8 }
 0x6fd   :  { %7246 = vmatprep.mubr.msk.bf16.mxu1 %vm12245_vm3, %v6144_v58  ;;  %vm6135_vm3 = vcmask 916480  }
 0x6ff   :  { %v12078_v47 = vpop.f32.mrb[32].mxu0 }
 0x700   :  { %v12080_v43 = vpop.f32.mrb[33].mxu0 }
 0x701   :  { %v8648_v48 = vpop.f32.mrb[34].mxu0 }
 0x702   :  { %v12082_v45 = vpop.f32.mrb[35].mxu0 }
 0x703   :  { %v6148_v3 = vpack.c.bf16 %v12082_v45, %v12080_v43  ;;  %v6150_v45 = vpack.c.bf16 %v12078_v47, %v12078_v47  ;;  %v9510_v47 = vmov 0.0  }
 0x70e   :  { %v9043_v50 = vpop.permute.xlu1 %9042  ;;  %v9038_v55 = vpop.permute.xlu0 %9037 }
 0x70f   :  { %v9039_v1 = vunpack.i.l.bf16 %v9038_v55  ;;  %v9040_v41 = vunpack.i.h.bf16 %v9038_v55  ;;  %v9044_v49 = vunpack.i.l.bf16 %v9043_v50  ;;  %v9045_v10 = vunpack.i.h.bf16 %v9043_v50 }
 0x711   :  { %v6100_v14 = vsel %vm12248_vm11, %v6093_v60, %v9039_v1  ;;  %v6101_v18 = vsel %vm12249_vm13, %v6094_v59, %v9040_v41  ;;  %vm12261_vm11 = vmmov %vm12257_vm0 }
 0x712   :  { %v9048_v46 = vpop.permute.xlu1 %9047  ;;  %v9053_v26 = vpop.permute.xlu0 %9052  ;;  %v6107_v4 = vsel %vm12253_vm2, %v6100_v14, %v9044_v49  ;;  %v6108_v12 = vsel %vm12254_vm5, %v6101_v18, %v9045_v10  ;;  %v9035_v18 = vunpack.i.h.bf16 %v12086_v19  ;;  %vm12262_vm13 = vmmov %vm12250_vm14 }
 0x713   :  { %v9049_v27 = vunpack.i.l.bf16 %v9048_v46  ;;  %v9050_v39 = vunpack.i.h.bf16 %v9048_v46  ;;  %v9054_v40 = vunpack.i.l.bf16 %v9053_v26  ;;  %v9055_v11 = vunpack.i.h.bf16 %v9053_v26  ;;  %vm12263_vm14 = vmmov %vm12262_vm13 }
 0x714   :  { %vm12264_vm15 = vmmov %vm12262_vm13 }
 0x715   :  { %v6098_v29 = vsel %vm12252_vm1, %v6091_v42, %v9049_v27  ;;  %v6099_v32 = vsel %vm12255_vm6, %v6092_v7, %v9050_v39  ;;  %v9034_v39 = vunpack.i.l.bf16 %v12086_v19  ;;  %v6096_v7 = vsel %vm12264_vm15, %v11989_v62, %v9035_v18  ;;  %vm12265_vm2 = vmmov %vm12252_vm1 }
 0x716   :  { %v6105_v16 = vsel %vm12258_vm10, %v6098_v29, %v9054_v40  ;;  %v6106_v38 = vsel %vm12259_vm8, %v6099_v32, %v9055_v11  ;;  %vm12266_vm6 = vmmov %vm12254_vm5  ;;  %vm9509_vm15 = vmmov 0  }
 0x717   :  { %vm12268_vm10 = vmmov %vm12262_vm13  ;;  %8663 = vmatprep.mubr.msk.f32.mxu0 %vm9509_vm15, %v9510_v47 }
 0x718   :  { %vm12269_vm8 = vmmov %vm12268_vm10 }
 0x72e   :  { %v9063_v37 = vpop.permute.xlu1 %9062  ;;  %v9058_v24 = vpop.permute.xlu0 %9057 }
 0x72f   :  { %v9060_v33 = vunpack.i.h.bf16 %v9058_v24  ;;  %v9059_v61 = vunpack.i.l.bf16 %v9058_v24  ;;  %v9065_v15 = vunpack.i.h.bf16 %v9063_v37  ;;  %v9064_v56 = vunpack.i.l.bf16 %v9063_v37 }
 0x731   :  { %v6115_v34 = vsel %vm12256_vm7, %v6108_v12, %v9060_v33  ;;  %v6114_v31 = vsel %vm12257_vm0, %v6107_v4, %v9059_v61  ;;  %vm12267_vm7 = vmmov %vm12257_vm0 }
 0x732   :  { %v9068_v44 = vpop.permute.xlu1 %9067  ;;  %v9073_v17 = vpop.permute.xlu0 %9072  ;;  %v6122_v53 = vsel %vm6119_vm4, %v6114_v31, %v9064_v56  ;;  %v6123_v5 = vsel %vm6119_vm4, %v6115_v34, %v9065_v15 }
 0x733   :  { %v9070_v21 = vunpack.i.h.bf16 %v9068_v44  ;;  %v9069_v35 = vunpack.i.l.bf16 %v9068_v44  ;;  %v9075_v8 = vunpack.i.h.bf16 %v9073_v17  ;;  %v9074_v48 = vunpack.i.l.bf16 %v9073_v17 }
 0x734   :  { %v6095_v17 = vsel %vm12263_vm14, %v11987_v23, %v9034_v39  ;;  %vm12273_vm14 = vmmov %vm12269_vm8 }
 0x735   :  { %v6113_v58 = vsel %vm12260_vm9, %v6106_v38, %v9070_v21  ;;  %v6112_v50 = vsel %vm12261_vm11, %v6105_v16, %v9069_v35  ;;  %vm12270_vm9 = vmmov %vm12252_vm1 }
 0x736   :  { %v6121_v41 = vsel %vm6119_vm4, %v6113_v58, %v9075_v8  ;;  %v6120_v60 = vsel %vm6119_vm4, %v6112_v50, %v9074_v48  ;;  %vm12271_vm11 = vmmov %vm12254_vm5 }
 0x74e   :  { %v9083_v63 = vpop.permute.xlu1 %9082  ;;  %v9078_v2 = vpop.permute.xlu0 %9077 }
 0x74f   :  { %v9085_v30 = vunpack.i.h.bf16 %v9083_v63  ;;  %v9084_v36 = vunpack.i.l.bf16 %v9083_v63  ;;  %v9080_v54 = vunpack.i.h.bf16 %v9078_v2  ;;  %v9079_v0 = vunpack.i.l.bf16 %v9078_v2 }
 0x751   :  { %v6131_v22 = vsel %vm6127_vm12, %v6123_v5, %v9080_v54  ;;  %v6130_v52 = vsel %vm6127_vm12, %v6122_v53, %v9079_v0 }
 0x752   :  { %v6139_v55 = vsel %vm6135_vm3, %v6131_v22, %v9085_v30  ;;  %v6138_v46 = vsel %vm6135_vm3, %v6130_v52, %v9084_v36  ;;  %v9098_v26 = vpop.permute.xlu0 %9097  ;;  %v9088_v25 = vpop.permute.xlu1 %9087 }
 0x753   :  { %v6145_v20 = vpack.c.bf16 %v6139_v55, %v6138_v46  ;;  %v9100_v1 = vunpack.i.h.bf16 %v9098_v26  ;;  %v9099_v37 = vunpack.i.l.bf16 %v9098_v26  ;;  %v9090_v24 = vunpack.i.h.bf16 %v9088_v25 }
 0x754   :  { %v9089_v57 = vunpack.i.l.bf16 %v9088_v25 }
 0x755   :  { %v6129_v51 = vsel %vm6127_vm12, %v6121_v41, %v9090_v24 }
 0x756   :  { %v6137_v49 = vsel %vm6135_vm3, %v6129_v51, %v9100_v1  ;;  %v6128_v27 = vsel %vm6127_vm12, %v6120_v60, %v9089_v57  ;;  %v9103_v59 = vpop.permute.xlu0 %9102  ;;  %v9093_v10 = vpop.permute.xlu1 %9092  ;;  %v7236_v1 = vld [vmem:[%s12226_s10] ss:$0 sm:$0xff] }
 0x757   :  { %v6136_v14 = vsel %vm6135_vm3, %v6128_v27, %v9099_v37  ;;  %v9095_v61 = vunpack.i.h.bf16 %v9093_v10  ;;  %v9094_v42 = vunpack.i.l.bf16 %v9093_v10  ;;  %v9105_v29 = vunpack.i.h.bf16 %v9103_v59 }
 0x758   :  { %v6143_v33 = vpack.c.bf16 %v6137_v49, %v6136_v14  ;;  %v9104_v4 = vunpack.i.l.bf16 %v9103_v59 }
 0x759   :  { %v6103_v19 = vsel %vm12252_vm1, %v6096_v7, %v9095_v61  ;;  %v6102_v11 = vsel %vm12265_vm2, %v6095_v17, %v9094_v42  ;;  %vm12277_vm2 = vmmov %vm12252_vm1 }
 0x75a   :  { %6275 = vmatmul.mubr.bf16.vlgmr.msra.gmra.mrb[16].mxu1 %v6143_v33  ;;  %v9113_v40 = vpop.permute.xlu0 %9112  ;;  %v9108_v44 = vpop.permute.xlu1 %9107  ;;  %v6109_v9 = vsel %vm12254_vm5, %v6102_v11, %v9104_v4  ;;  %vm12278_vm5 = vmmov %vm12252_vm1 }
 0x75b   :  { %7247 = vmatprep.mubr.msk.bf16.mxu1 %vm12262_vm13, %v6146_v13  ;;  %v9110_v15 = vunpack.i.h.bf16 %v9108_v44  ;;  %v9109_v56 = vunpack.i.l.bf16 %v9108_v44  ;;  %v9115_v34 = vunpack.i.h.bf16 %v9113_v40  ;;  %v9114_v28 = vunpack.i.l.bf16 %v9113_v40  ;;  %vm12272_vm13 = vmmov %vm12257_vm0 }
 0x75c   :  { %v6110_v13 = vsel %vm12266_vm6, %v6103_v19, %v9105_v29  ;;  %vm6317_vm6 = vcmask 254976  }
 0x75d   :  { %v6116_v23 = vsel %vm12267_vm7, %v6109_v9, %v9109_v56  ;;  %v6117_v62 = vsel %vm12257_vm0, %v6110_v13, %v9110_v15  ;;  %vm12279_vm7 = vmmov %vm12252_vm1 }
 0x75e   :  { %v5943_v12 = vpop.permute.xlu0 %5942  ;;  %v5915_v32 = vpop.permute.xlu1 %5914  ;;  %v6124_v36 = vsel %vm6119_vm4, %v6116_v23, %v9114_v28  ;;  %v6125_v54 = vsel %vm6119_vm4, %v6117_v62, %v9115_v34  ;;  %vm12280_vm0 = vmmov %vm12252_vm1 }
 0x75f   :  { %v6097_v31 = vsel %vm12268_vm10, %v11985_v6, %v5915_v32  ;;  %vm12281_vm10 = vmmov %vm12280_vm0 }
 0x760   :  { %v6104_v53 = vsel %vm12270_vm9, %v6097_v31, %v5943_v12  ;;  %vm12283_vm9 = vmmov %vm12280_vm0 }
 0x762   :  { %6283 = vmatmul.mubr.bf16.gmra.mrb[20].mxu1 %v6145_v20  ;;  %v9118_v21 = vpop.permute.xlu1 %9117  ;;  %v9123_v16 = vpop.permute.xlu0 %9122  ;;  %v9508_v20 = vmov 0.0|0.0  }
 0x763   :  { %v9120_v35 = vunpack.i.h.bf16 %v9118_v21  ;;  %v9119_v63 = vunpack.i.l.bf16 %v9118_v21  ;;  %v9125_v2 = vunpack.i.h.bf16 %v9123_v16  ;;  %v9124_v30 = vunpack.i.l.bf16 %v9123_v16  ;;  %7248 = vmatprep.mubr.msk.bf16.mxu1 %vm12269_vm8, %v6148_v3  ;;  %8666 = vmatprep.subr.bf16.mxu0 %v9508_v20  ;;  %vm12282_vm8 = vmmov %vm12280_vm0 }
 0x765   :  { %v6133_v0 = vsel %vm6127_vm12, %v6125_v54, %v9120_v35  ;;  %v6132_v6 = vsel %vm6127_vm12, %v6124_v36, %v9119_v63 }
 0x766   :  { %v6140_v38 = vsel %vm6135_vm3, %v6132_v6, %v9124_v30  ;;  %v6141_v8 = vsel %vm6135_vm3, %v6133_v0, %v9125_v2  ;;  %v5971_v5 = vpop.permute.xlu1 %5970  ;;  %v5999_v58 = vpop.permute.xlu0 %5998 }
 0x767   :  { %v6147_v48 = vpack.c.bf16 %v6141_v8, %v6140_v38  ;;  %v6111_v43 = vsel %vm12271_vm11, %v6104_v53, %v5971_v5  ;;  %vm12284_vm11 = vmmov %vm12280_vm0 }
 0x768   :  { %v6118_v3 = vsel %vm12272_vm13, %v6111_v43, %v5999_v58 }
 0x76a   :  { %6291 = vmatmul.mubr.bf16.gmra.mrb[24].mxu1 %v6147_v48  ;;  %v6027_v22 = vpop.permute.xlu1 %6026  ;;  %v6055_v50 = vpop.permute.xlu0 %6054 }
 0x76b   :  { %v6126_v52 = vsel %vm6119_vm4, %v6118_v3, %v6027_v22  ;;  %7249 = vmatprep.mubr.msk.bf16.mxu1 %vm12273_vm14, %v6150_v45  ;;  %vm12274_vm4 = vmmov %vm12252_vm1 }
 0x76c   :  { %v6134_v55 = vsel %vm6127_vm12, %v6126_v52, %v6055_v50  ;;  %vm12275_vm12 = vmmov %vm12252_vm1 }
 0x76e   :  { %v6083_v46 = vpop.permute.xlu1 %6082 }
 0x76f   :  { %v6142_v26 = vsel %vm6135_vm3, %v6134_v55, %v6083_v46  ;;  %vm12276_vm3 = vmmov %vm12252_vm1 }
 0x770   :  { %v6149_v25 = vpack.c.bf16 %v6142_v26, %v6142_v26 }
 0x772   :  { %6299 = vmatmul.mubr.bf16.gmra.mrb[28].mxu1 %v6149_v25 }
 0x82d   :  { %v6276_v37 = vpop.f32.mrb[16].mxu1 }
 0x82e   :  { %v6277_v24 = vadd.f32 %v7236_v1, %v6276_v37  ;;  %v6278_v41 = vpop.f32.mrb[17].mxu1 }
 0x82f   :  { %v6279_v57 = vpop.f32.mrb[18].mxu1 }
 0x830   :  { %v6280_v60 = vadd.f32 %v7236_v1, %v6279_v57  ;;  %v6281_v51 = vpop.f32.mrb[19].mxu1  ;;  %v6306_v49 = vsel %vm12274_vm4, %v6277_v24, 0.0 }
 0x832   :  { %v6307_v27 = vsel %vm12275_vm12, %v6280_v60, 0.0 }
 0x833   :  { %v6308_v59 = vadd.f32 %v6307_v27, %v6306_v49 }
 0x835   :  { %v6284_v10 = vpop.f32.mrb[20].mxu1 }
 0x836   :  { %v6285_v14 = vadd.f32 %v7236_v1, %v6284_v10  ;;  %v6286_v18 = vpop.f32.mrb[21].mxu1 }
 0x837   :  { %v6287_v39 = vpop.f32.mrb[22].mxu1 }
 0x838   :  { %v6309_v33 = vsel %vm12276_vm3, %v6285_v14, 0.0  ;;  %v6288_v61 = vadd.f32 %v7236_v1, %v6287_v39  ;;  %v6289_v42 = vpop.f32.mrb[23].mxu1 }
 0x839   :  { %v6310_v40 = vadd.f32 %v6309_v33, %v6308_v59 }
 0x83a   :  { %v6311_v44 = vsel %vm12252_vm1, %v6288_v61, 0.0 }
 0x83b   :  { %v6312_v17 = vadd.f32 %v6311_v44, %v6310_v40  ;;  %v7250_v44 = vld [vmem:[%s12227_s11] ss:$0 sm:$0xff] }
 0x83d   :  { %v6292_v7 = vpop.f32.mrb[24].mxu1 }
 0x83e   :  { %v6293_v29 = vadd.f32 %v7236_v1, %v6292_v7  ;;  %v6294_v4 = vpop.f32.mrb[25].mxu1 }
 0x83f   :  { %v6295_v19 = vpop.f32.mrb[26].mxu1 }
 0x840   :  { %v6313_v11 = vsel %vm12277_vm2, %v6293_v29, 0.0  ;;  %v6296_v15 = vadd.f32 %v7236_v1, %v6295_v19  ;;  %v6297_v56 = vpop.f32.mrb[27].mxu1  ;;  %v7251_v19 = vld [vmem:[%s12228_s12] ss:$0 sm:$0xff]  ;;  %vm6439_vm2 = vcmask 1041408  }
 0x841   :  { %v6314_v12 = vadd.f32 %v6313_v11, %v6312_v17 }
 0x842   :  { %v6315_v32 = vsel %vm12278_vm5, %v6296_v15, 0.0  ;;  %vm6435_vm5 = vcmask 408576  }
 0x843   :  { %v6316_v34 = vadd.f32 %v6315_v32, %v6314_v12 }
 0x845   :  { %v6300_v28 = vpop.f32.mrb[28].mxu1 }
 0x846   :  { %v6301_v9 = vadd.f32 %v7236_v1, %v6300_v28  ;;  %v6302_v13 = vpop.f32.mrb[29].mxu1 }
 0x847   :  { %v6303_v23 = vpop.f32.mrb[30].mxu1 }
 0x848   :  { %v6318_v62 = vsel %vm6317_vm6, %v6301_v9, 0.0  ;;  %v6304_v31 = vpop.f32.mrb[31].mxu1 }
 0x849   :  { %v6319_v21 = vadd.f32 %v6318_v62, %v6316_v34 }
 0x84b   :  { %v6320_v16 = vrot.slane %v6319_v21, 4 }
 0x84d   :  { %v6321_v35 = vadd.f32 %v6320_v16, %v6319_v21 }
 0x84f   :  { %v6322_v63 = vrot.slane %v6321_v35, 2 }
 0x851   :  { %v6323_v2 = vadd.f32 %v6322_v63, %v6321_v35 }
 0x853   :  { %v6324_v30 = vrot.slane %v6323_v2, 1 }
 0x855   :  { %v6325_v36 = vadd.f32 %v6324_v30, %v6323_v2  ;;  %v6420_v30 = vld [vmem:[%s12229_s13] sm:$0xff] }
 0x857   :  { %v6327_v54 = vmul.f32 0.02, %v6325_v36  ;;  %v6421_v36 = vld [vmem:[%s12229_s13 + $0x8] sm:$0xff] }
 0x859   :  { %v6328_v0 = vsub.f32 %v6277_v24, %v6327_v54  ;;  %v6329_v6 = vsub.f32 %v6280_v60, %v6327_v54  ;;  %v6330_v38 = vsub.f32 %v6285_v14, %v6327_v54  ;;  %v6331_v8 = vsub.f32 %v6288_v61, %v6327_v54 }
 0x85a   :  { %v6332_v53 = vsub.f32 %v6293_v29, %v6327_v54  ;;  %v6333_v5 = vsub.f32 %v6296_v15, %v6327_v54  ;;  %v6334_v58 = vsub.f32 %v6301_v9, %v6327_v54 }
 0x85b   :  { %v6335_v48 = vmul.f32 %v6328_v0, %v6328_v0  ;;  %v6336_v43 = vmul.f32 %v6329_v6, %v6329_v6  ;;  %v6337_v45 = vmul.f32 %v6330_v38, %v6330_v38  ;;  %v6338_v3 = vmul.f32 %v6331_v8, %v6331_v8 }
 0x85c   :  { %v6339_v55 = vmul.f32 %v6332_v53, %v6332_v53  ;;  %v6340_v25 = vmul.f32 %v6333_v5, %v6333_v5  ;;  %v6341_v24 = vmul.f32 %v6334_v58, %v6334_v58 }
 0x85d   :  { %v6342_v22 = vsel %vm12279_vm7, %v6335_v48, 0.0  ;;  %v6343_v52 = vsel %vm12280_vm0, %v6336_v43, 0.0  ;;  %v6345_v46 = vsel %vm12281_vm10, %v6337_v45, 0.0  ;;  %v6347_v1 = vsel %vm12282_vm8, %v6338_v3, 0.0  ;;  %v6424_v43 = vld [vmem:[%s12229_s13 + $0x20] sm:$0xff] }
 0x85e   :  { %v6344_v50 = vadd.f32 %v6343_v52, %v6342_v22  ;;  %v6349_v41 = vsel %vm12283_vm9, %v6339_v55, 0.0  ;;  %v6351_v60 = vsel %vm12284_vm11, %v6340_v25, 0.0  ;;  %v6353_v49 = vsel %vm6317_vm6, %v6341_v24, 0.0 }
 0x860   :  { %v6346_v26 = vadd.f32 %v6345_v46, %v6344_v50  ;;  %v6425_v50 = vld [vmem:[%s12229_s13 + $0x28] sm:$0xff] }
 0x862   :  { %v6348_v37 = vadd.f32 %v6347_v1, %v6346_v26 }
 0x864   :  { %v6350_v57 = vadd.f32 %v6349_v41, %v6348_v37 }
 0x866   :  { %v6352_v51 = vadd.f32 %v6351_v60, %v6350_v57 }
 0x868   :  { %v6354_v27 = vadd.f32 %v6353_v49, %v6352_v51 }
 0x86a   :  { %v6355_v59 = vrot.slane %v6354_v27, 4 }
 0x86c   :  { %v6356_v10 = vadd.f32 %v6355_v59, %v6354_v27  ;;  %v6426_v27 = vld [vmem:[%s12229_s13 + $0x30] sm:$0x3] }
 0x86e   :  { %v6357_v14 = vrot.slane %v6356_v10, 2 }
 0x870   :  { %v6358_v18 = vadd.f32 %v6357_v14, %v6356_v10  ;;  %v6434_v10 = vld [vmem:[%s12230_s14] sm:$0x3] }
 0x872   :  { %v6359_v39 = vrot.slane %v6358_v18, 1 }
 0x874   :  { %v6360_v33 = vadd.f32 %v6359_v39, %v6358_v18 }
 0x876   :  { %v6361_v61 = vmul.f32 0.02, %v6360_v33 }
 0x878   :  { %v6362_v42 = vadd.f32 1e-05, %v6361_v61 }
 0x87a   :  { %9491 = vrsqrt.f32 %v6362_v42 }
 0x884   :  { %v9492_v40 = vpop.eup %9491 }
 0x885   :  { %v6368_v17 = vmul.f32 %v9492_v40, %v6332_v53  ;;  %v6369_v7 = vmul.f32 %v9492_v40, %v6333_v5  ;;  %v6370_v29 = vmul.f32 %v9492_v40, %v6334_v58  ;;  %v6364_v4 = vmul.f32 %v9492_v40, %v6328_v0  ;;  %v6422_v0 = vld [vmem:[%s12229_s13 + $0x10] sm:$0xff]  ;;  %v6423_v53 = vld [vmem:[%s12229_s13 + $0x18] sm:$0xff] }
 0x886   :  { %v6365_v11 = vmul.f32 %v9492_v40, %v6329_v6  ;;  %v6366_v15 = vmul.f32 %v9492_v40, %v6330_v38  ;;  %v6367_v56 = vmul.f32 %v9492_v40, %v6331_v8 }
 0x887   :  { %v6378_v12 = vmul.f32 %v7250_v44, %v6364_v4  ;;  %v6382_v32 = vmul.f32 %v7250_v44, %v6368_v17  ;;  %v6383_v34 = vmul.f32 %v7250_v44, %v6369_v7  ;;  %v6384_v63 = vmul.f32 %v7250_v44, %v6370_v29 }
 0x888   :  { %v6379_v28 = vmul.f32 %v7250_v44, %v6365_v11  ;;  %v6380_v9 = vmul.f32 %v7250_v44, %v6366_v15  ;;  %v6381_v13 = vmul.f32 %v7250_v44, %v6367_v56 }
 0x889   :  { %v6392_v23 = vadd.f32 %v7251_v19, %v6378_v12  ;;  %v6396_v62 = vadd.f32 %v7251_v19, %v6382_v32  ;;  %v6397_v35 = vadd.f32 %v7251_v19, %v6383_v34  ;;  %v6398_v24 = vadd.f32 %v7251_v19, %v6384_v63 }
 0x88a   :  { %v6393_v31 = vadd.f32 %v7251_v19, %v6379_v28  ;;  %v6394_v21 = vadd.f32 %v7251_v19, %v6380_v9  ;;  %v6395_v16 = vadd.f32 %v7251_v19, %v6381_v13 }
 0x88b   :  { %vm6399_vm13 = vcmp.ge.f32.partialorder %v6392_v23, 0.0  ;;  %v6406_v2 = vmul.f32 0.2, %v6392_v23  ;;  %vm6403_vm12 = vcmp.ge.f32.partialorder %v6396_v62, 0.0  ;;  %vm6404_vm3 = vcmp.ge.f32.partialorder %v6397_v35, 0.0 }
 0x88c   :  { %vm6400_vm14 = vcmp.ge.f32.partialorder %v6393_v31, 0.0  ;;  %v6407_v54 = vmul.f32 0.2, %v6393_v31  ;;  %vm6401_vm15 = vcmp.ge.f32.partialorder %v6394_v21, 0.0  ;;  %vm6402_vm4 = vcmp.ge.f32.partialorder %v6395_v16, 0.0 }
 0x88d   :  { %v6413_v6 = vsel %vm6399_vm13, %v6392_v23, %v6406_v2  ;;  %v6408_v38 = vmul.f32 0.2, %v6394_v21  ;;  %v6409_v8 = vmul.f32 0.2, %v6395_v16  ;;  %v6410_v48 = vmul.f32 0.2, %v6396_v62 }
 0x88e   :  { %v6414_v5 = vsel %vm6400_vm14, %v6393_v31, %v6407_v54  ;;  %v6427_v58 = vmul.f32 %v6420_v30, %v6413_v6  ;;  %v6411_v52 = vmul.f32 0.2, %v6397_v35  ;;  %v6412_v51 = vmul.f32 0.2, %v6398_v24 }
 0x88f   :  { %v6428_v45 = vmul.f32 %v6421_v36, %v6414_v5  ;;  %v6415_v3 = vsel %vm6401_vm15, %v6394_v21, %v6408_v38  ;;  %v6416_v22 = vsel %vm6402_vm4, %v6395_v16, %v6409_v8  ;;  %v6417_v26 = vsel %vm6403_vm12, %v6396_v62, %v6410_v48 }
 0x890   :  { %v6429_v55 = vmul.f32 %v6422_v0, %v6415_v3  ;;  %v6430_v46 = vmul.f32 %v6423_v53, %v6416_v22  ;;  %v6418_v1 = vsel %vm6404_vm3, %v6397_v35, %v6411_v52  ;;  %v6431_v37 = vmul.f32 %v6424_v43, %v6417_v26 }
 0x891   :  { %v8667_v25 = vpack.c.bf16 %v6428_v45, %v6427_v58  ;;  %v6432_v57 = vmul.f32 %v6425_v50, %v6418_v1  ;;  %vm6405_vm1 = vcmp.ge.f32.partialorder %v6398_v24, 0.0 }
 0x892   :  { %v8670_v41 = vpack.c.bf16 %v6430_v46, %v6429_v55  ;;  %v6419_v49 = vsel %vm6405_vm1, %v6398_v24, %v6412_v51 }
 0x893   :  { %8668 = vmatpush3.bf16.msra.mxu0 %v8667_v25  ;;  %v8673_v60 = vpack.c.bf16 %v6432_v57, %v6431_v37  ;;  %v6433_v59 = vmul.f32 %v6426_v27, %v6419_v49 }
 0x894   :  { %8669 = vmatprep.subr.bf16.mxu0 %v9508_v20 }
 0x897   :  { %8671 = vmatpush3.bf16.msra.mxu0 %v8670_v41 }
 0x898   :  { %8672 = vmatprep.subr.bf16.mxu0 %v9508_v20  ;;  %v21_v20 = vstv %s12231_s15 }
 0x899   :  { %22 = vst [vmem:[#allocation2] sm:$0x1] %v21_v20 }
 0x89b   :  { %8674 = vmatpush3.bf16.msra.mxu0 %v8673_v60 }
 0x89c   :  { %8661 = vmatprep.subr.mxu0 %v9510_v47 }
 0x89f   :  { %8662 = vmatpush3.msk.msra.mxu0 %vm6439_vm2, %v6433_v59 }
 0x8a0   :  { %8664 = vmatmul.mubr.msk.f32.vlgmr.msra.gmra.mrb[36].mxu0 %vm6435_vm5, %v6434_v10  ;;  %v7254_v47 = vld [vmem:[#allocation2] ss:$0 sm:$0xff] }
 0x973   :  { %v6509_v14 = vpop.f32.mrb[36].mxu0 }
 0x974   :  { %v8665_v18 = vpop.f32.mrb[37].mxu0  ;;  %v6513_v39 = vsel %vm6317_vm6, %v6509_v14, 0.0 }
 0x975   :  { %6514 = vadd.xlane.f32.xlu0 %v6513_v39 }
 0xa02   :  { %v6515_v33 = vpop.xlane.xlu0 %6514 }
 0xa03   :  { %v6523_v61 = vadd.f32 %v7254_v47, %v6515_v33 }
 0xa05   :  { %v6524_v42 = vmul.f32 0.5, %v6523_v61 }
 0xa07   :  { %9493 = vtanh.f32 %v6524_v42 }
 0xa11   :  { %v9494_v40 = vpop.eup %9493 }
 0xa12   :  { %v6526_v44 = vadd.f32 1.0, %v9494_v40 }
 0xa14   :  { %v6527_v17 = vmul.f32 0.5, %v6526_v44 }
 0xa16   :  { %6530 = vperm.xlu1 %9126, %v6527_v17  }
 0xa95   :  { %v6531_v7 = vpop.permute.xlu1 %6530 }
 0xa96   :  { %6533 = vst [vmem:[%s12232_s16] sm:$0x3] %v6531_v7 }

</bundles_post_ra>
